<compile_context>
chip_gen: v6e
topology: v6e:2x2x1
jax: 0.10.0
libtpu: 0.0.40
codegen_flags: <defaults>
</compile_context>

<pallas_src>
import math

import jax
import jax.numpy as jnp
import numpy as np
from jax.experimental import pallas as pl
from jax.experimental.pallas import tpu as pltpu

_OUT_LANE = 128          # lane-dense classifier output width
_TARGET_ROWS = 512       # flattened rows (B*S) per grid block


def _layernorm(x, gamma, beta, eps=1e-5):
    # PyTorch LayerNorm: biased variance, eps inside sqrt, affine on last dim.
    # One-pass statistics: var = E[x^2] - mu^2 (saves a full subtract+square
    # pass and an extra XLU reduction per LayerNorm).
    mu = jnp.mean(x, axis=-1, keepdims=True)
    ms = jnp.mean(x * x, axis=-1, keepdims=True)
    var = ms - mu * mu
    return (x - mu) * jax.lax.rsqrt(var + eps) * gamma + beta


def _forward_math(x, pos, w_in, wqkv, bqkv, wo, w1, b1, w2, vec, w_fc, b_fc,
                  *, num_layers, num_heads, seq_len, recip=None):
    """Shared forward math (plain jnp). Used both inside the Pallas kernel (on
    values loaded from VMEM refs) and on the host as the mirrored-precision
    reference. `recip` lets the kernel use pl.reciprocal(approx=True)."""
    f32, bf16 = jnp.float32, jnp.bfloat16
    if recip is None:
        recip = lambda v: 1.0 / v
    Mb = x.shape[0]                      # flattened (batch_block * seq_len)
    Bb = Mb // seq_len
    H = w_in.shape[1]
    nh = num_heads
    hd = H // nh

    # input projection + positional encoding (input-proj bias folded into `pos`;
    # pos is (S, H) and broadcast over the batch here — never tiled in HBM).
    h = jnp.dot(x.astype(bf16), w_in, preferred_element_type=f32)          # (Mb, H)
    h = (h.reshape(Bb, seq_len, H) + pos).reshape(Mb, H)

    def layer_step(l, h):
        # per-layer packed vectors: [o_bias, gamma1, beta1, ffn_b2, gamma2, beta2]
        vl = vec[l]
        o_b, g1, be1 = vl[0:1], vl[1:2], vl[2:3]
        b2, g2, be2 = vl[3:4], vl[4:5], vl[5:6]

        # ---- fused QKV projection (1/sqrt(hd) pre-folded into the Q slice) ----
        qkv = jnp.dot(h.astype(bf16), wqkv[l], preferred_element_type=f32) + bqkv[l]
        # split q/k/v + heads; the head/seq relayout is done in bf16 (half the
        # bytes of the previous f32 relayout), slices are on leading axes only.
        qkv = qkv.astype(bf16).reshape(Bb, seq_len, 3 * nh, hd)
        qkv = jnp.transpose(qkv, (0, 2, 1, 3))                # (Bb, 3*nh, S, hd)
        q = qkv[:, 0:nh].reshape(Bb * nh, seq_len, hd)
        k = qkv[:, nh:2 * nh].reshape(Bb * nh, seq_len, hd)
        v = qkv[:, 2 * nh:].reshape(Bb * nh, seq_len, hd)

        # ---- head-batched attention (single leading batch dim) ----
        s = jnp.einsum('nqd,nkd->nqk', q, k, preferred_element_type=f32)
        s = s - jnp.max(s, axis=-1, keepdims=True)
        p = jnp.exp(s)
        p = p * recip(jnp.sum(p, axis=-1, keepdims=True))      # EUP recip in kernel
        ctx = jnp.einsum('nqk,nkd->nqd', p.astype(bf16), v,
                         preferred_element_type=f32)           # (Bb*nh, S, hd)
        ctx = ctx.astype(bf16).reshape(Bb, nh, seq_len, hd)
        ctx = jnp.transpose(ctx, (0, 2, 1, 3)).reshape(Mb, H)

        attn = jnp.dot(ctx, wo[l], preferred_element_type=f32) + o_b
        h1 = _layernorm(h + attn, g1, be1)                     # post-norm layer

        # ---- feed-forward (dim_feedforward = 4H, ReLU) ----
        ff = jnp.dot(h1.astype(bf16), w1[l], preferred_element_type=f32) + b1[l]
        ff = jnp.maximum(ff, 0.0)
        ff = jnp.dot(ff.astype(bf16), w2[l], preferred_element_type=f32) + b2
        return _layernorm(h1 + ff, g2, be2)

    if num_layers > 4:
        # deep stacks: bound per-layer live ranges (vreg/VMEM pressure) with a
        # real loop instead of static unrolling.
        h = jax.lax.fori_loop(0, num_layers, layer_step, h)
    else:
        for l in range(num_layers):
            h = layer_step(l, h)

    # last-token readout + classifier (dropout is a no-op in eval)
    last = h.reshape(Bb, seq_len, H)[:, seq_len - 1, :]        # (Bb, H)
    return jnp.dot(last.astype(bf16), w_fc, preferred_element_type=f32) + b_fc


def _make_kernel(num_layers, num_heads, seq_len):
    def kernel(x_ref, pos_ref, w_in_ref, wqkv_ref, bqkv_ref, wo_ref,
               w1_ref, b1_ref, w2_ref, vec_ref, w_fc_ref, b_fc_ref, out_ref):
        out_ref[0] = _forward_math(
            x_ref[0], pos_ref[...], w_in_ref[...], wqkv_ref[...], bqkv_ref[...],
            wo_ref[...], w1_ref[...], b1_ref[...], w2_ref[...], vec_ref[...],
            w_fc_ref[...], b_fc_ref[...],
            num_layers=num_layers, num_heads=num_heads, seq_len=seq_len,
            recip=lambda v: pl.reciprocal(v, approx=True))
    return kernel


def _prepare_params(params, seq_len, num_heads, out_pad):
    """One-time host-side repack: transpose to (in,out), fuse QKV (with the
    attention scale folded into the Q columns AND q bias), pack small per-layer
    vectors, fold the input-proj bias into the positional table, cast matmul
    weights to bf16, pad the classifier to a lane-dense width."""
    f32, bf16 = jnp.float32, jnp.bfloat16
    t = lambda w: jnp.swapaxes(w, -1, -2)             # PyTorch (out,in) -> (in,out)
    H = params['w_in'].shape[0]
    scale = 1.0 / math.sqrt(H // num_heads)
    pos = (params['pos_table'][:seq_len] + params['b_in']).astype(f32)     # (S, H)
    out_dim = params['w_fc'].shape[0]
    w_fc = jnp.pad(t(params['w_fc']), ((0, 0), (0, out_pad - out_dim)))
    b_fc = jnp.pad(params['b_fc'], ((0, 0), (0, out_pad - out_dim)))
    return dict(
        pos=pos,                                                            # (S, H)
        w_in=t(params['w_in']).astype(bf16),                                # (Din, H)
        wqkv=jnp.concatenate([t(params['w_q']) * scale, t(params['w_k']),
                              t(params['w_v'])], axis=-1).astype(bf16),     # (L, H, 3H)
        bqkv=jnp.concatenate([params['b_q'] * scale, params['b_k'],
                              params['b_v']], axis=-1).astype(f32),         # (L, 1, 3H)
        wo=t(params['w_o']).astype(bf16),                                   # (L, H, H)
        w1=t(params['w1']).astype(bf16),                                    # (L, H, 4H)
        b1=params['b1'].astype(f32),                                        # (L, 1, 4H)
        w2=t(params['w2']).astype(bf16),                                    # (L, 4H, H)
        vec=jnp.concatenate([params['b_o'], params['g1'], params['be1'],
                             params['b2'], params['g2'], params['be2']],
                            axis=1).astype(f32),                            # (L, 6, H)
        w_fc=w_fc.astype(bf16),                                             # (H, out_pad)
        b_fc=b_fc.astype(f32),                                              # (1, out_pad)
    )


def _num_tensorcores():
    try:
        kind = jax.devices()[0].device_kind.lower()
    except Exception:
        return 1
    return 2 if "v7" in kind else 1


def _choose_block_b(batch, seq_len):
    """Whole sequences per block, ~_TARGET_ROWS flattened rows per block; on
    multi-TC parts guarantee >=2 parallel blocks once the problem is big enough
    to be worth splitting (>= one vreg-row-ish of work per core)."""
    block_b = max(1, _TARGET_ROWS // seq_len)
    if _num_tensorcores() >= 2 and batch >= 2 and batch * seq_len >= 128:
        block_b = min(block_b, -(-batch // 2))      # ceil(batch/2) -> >= 2 blocks
    return min(block_b, batch)


def _resident_spec(arr, single_buffer):
    """Whole array resident in VMEM, same block every grid step. When the grid
    has >1 step, request single buffering so constant weights don't occupy 2x
    VMEM (critical headroom on 64 MiB v7x)."""
    nd = arr.ndim
    idx = lambda b, _nd=nd: (0,) * _nd
    if single_buffer and hasattr(pl, "Buffered"):
        try:
            return pl.BlockSpec(arr.shape, idx, pipeline_mode=pl.Buffered(1))
        except Exception:
            pass
    return pl.BlockSpec(arr.shape, idx)


def _vmem_limit_bytes(resident_bytes, stream_bytes, act_bytes):
    """Activation-aware scoped-VMEM request, capped per device generation."""
    try:
        cap = int(pltpu.get_tpu_info().vmem_capacity_bytes)
    except Exception:
        cap = 64 << 20                       # conservative (v7x-sized) fallback
    ceiling = (cap * 7) // 8                 # leave compiler-scratch headroom
    want = resident_bytes + stream_bytes + act_bytes + (8 << 20)
    return int(min(max(want, 32 << 20), ceiling))


def transformer_pose_classifier(x, params, *, num_layers, num_heads):
    B, S, Din = x.shape
    H = params['w_in'].shape[0]
    F = params['w1'].shape[1]
    out_dim = params['w_fc'].shape[0]
    out_pad = ((out_dim + _OUT_LANE - 1) // _OUT_LANE) * _OUT_LANE

    block_b = _choose_block_b(B, S)
    num_blocks = -(-B // block_b)
    B_pad = num_blocks * block_b
    Mb = block_b * S

    prep = _prepare_params(params, S, num_heads, out_pad)

    # x streamed as bf16 (it is consumed in bf16 by the input projection anyway)
    xp = x.astype(jnp.bfloat16)
    if B_pad != B:
        xp = jnp.concatenate(
            [xp, jnp.zeros((B_pad - B, S, Din), jnp.bfloat16)], axis=0)
    x3 = xp.reshape(num_blocks, Mb, Din)

    args = (x3, prep['pos'], prep['w_in'], prep['wqkv'], prep['bqkv'], prep['wo'],
            prep['w1'], prep['b1'], prep['w2'], prep['vec'], prep['w_fc'],
            prep['b_fc'])

    single_buffer = num_blocks > 1
    in_specs = ([pl.BlockSpec((1, Mb, Din), lambda b: (b, 0, 0))]
                + [_resident_spec(a, single_buffer) for a in args[1:]])
    out_specs = pl.BlockSpec((1, block_b, out_pad), lambda b: (b, 0, 0))

    # VMEM budget: resident weights (x buffer count) + streamed x/out blocks
    # (double-buffered) + per-block activation intermediates (rough, x2 safety).
    weight_bufs = 1 if single_buffer else 2
    resident_bytes = weight_bufs * sum(int(a.size) * a.dtype.itemsize
                                       for a in args[1:])
    stream_bytes = 2 * (Mb * Din * 2 + block_b * out_pad * 4)
    act_bytes = 2 * (Mb * (3 * H + F) * 6          # qkv / ffn (f32 + bf16 shadow)
                     + Mb * H * 4 * 6              # h, residuals, attn, ctx copies
                     + block_b * num_heads * S * S * 4 * 2)   # scores + probs
    vmem_limit = _vmem_limit_bytes(resident_bytes, stream_bytes, act_bytes)

    out = pl.pallas_call(
        _make_kernel(num_layers, num_heads, S),
        out_shape=jax.ShapeDtypeStruct((num_blocks, block_b, out_pad), jnp.float32),
        grid=(num_blocks,),
        in_specs=in_specs,
        out_specs=out_specs,
        compiler_params=pltpu.CompilerParams(
            dimension_semantics=("parallel",),
            vmem_limit_bytes=vmem_limit),
    )(*args)
    return out.reshape(B_pad, out_pad)[:B, :out_dim]


def init_params(key, input_dim, output_dim, num_heads, num_layers,
                hidden_dim, max_len):
    H, F, L = hidden_dim, 4 * hidden_dim, num_layers
    ks = jax.random.split(key, 16)

    def w(k, shape, scale=0.1):
        return (scale * jax.random.normal(k, shape)).astype(jnp.float32)

    return dict(
        w_in=w(ks[0], (H, input_dim)), b_in=w(ks[1], (1, H)),
        pos_table=w(ks[2], (max_len, H)),
        w_q=w(ks[3], (L, H, H)), b_q=w(ks[4], (L, 1, H)),
        w_k=w(ks[5], (L, H, H)), b_k=w(ks[6], (L, 1, H)),
        w_v=w(ks[7], (L, H, H)), b_v=w(ks[8], (L, 1, H)),
        w_o=w(ks[9], (L, H, H)), b_o=w(ks[10], (L, 1, H)),
        g1=jnp.ones((L, 1, H), jnp.float32),
        be1=jnp.zeros((L, 1, H), jnp.float32),
        w1=w(ks[11], (L, F, H)), b1=w(ks[12], (L, 1, F)),
        w2=w(ks[13], (L, H, F)), b2=w(ks[14], (L, 1, H)),
        g2=jnp.ones((L, 1, H), jnp.float32),
        be2=jnp.zeros((L, 1, H), jnp.float32),
        w_fc=w(ks[15], (output_dim, H)),
        b_fc=jnp.zeros((1, output_dim), jnp.float32),
    )


def reference_forward_f32(x, params, *, num_layers, num_heads):
    """Pure-f32 reference mirroring nn.TransformerEncoder (post-norm, ReLU, eval)."""
    B, S, _ = x.shape
    H = params['w_in'].shape[0]
    hd = H // num_heads
    h = jnp.einsum('bsi,hi->bsh', x, params['w_in']) + params['b_in']
    h = h + params['pos_table'][:S]
    for l in range(num_layers):
        q = jnp.einsum('bsh,oh->bso', h, params['w_q'][l]) + params['b_q'][l]
        k = jnp.einsum('bsh,oh->bso', h, params['w_k'][l]) + params['b_k'][l]
        v = jnp.einsum('bsh,oh->bso', h, params['w_v'][l]) + params['b_v'][l]
        qh = q.reshape(B, S, num_heads, hd)
        kh = k.reshape(B, S, num_heads, hd)
        vh = v.reshape(B, S, num_heads, hd)
        s = jnp.einsum('bqnd,bknd->bnqk', qh, kh) / math.sqrt(hd)
        p = jax.nn.softmax(s, axis=-1)
        attn = jnp.einsum('bnqk,bknd->bqnd', p, vh).reshape(B, S, H)
        attn = jnp.einsum('bsh,oh->bso', attn, params['w_o'][l]) + params['b_o'][l]
        h = _layernorm(h + attn, params['g1'][l], params['be1'][l])
        ff = jnp.einsum('bsh,fh->bsf', h, params['w1'][l]) + params['b1'][l]
        ff = jnp.maximum(ff, 0.0)
        ff = jnp.einsum('bsf,of->bso', ff, params['w2'][l]) + params['b2'][l]
        h = _layernorm(h + ff, params['g2'][l], params['be2'][l])
    last = h[:, -1, :]
    return jnp.einsum('bh,oh->bo', last, params['w_fc']) + params['b_fc']


if __name__ == "__main__":
    B, S = 2, 8
    input_dim, output_dim = 16, 8
    num_heads, num_layers = 4, 2
    hidden_dim, max_len = 32, 16

    key = jax.random.PRNGKey(0)
    kx, kp = jax.random.split(key)
    x = jax.random.normal(kx, (B, S, input_dim), dtype=jnp.float32)
    params = init_params(kp, input_dim, output_dim, num_heads, num_layers,
                         hidden_dim, max_len)

    out = transformer_pose_classifier(x, params,
                                      num_layers=num_layers, num_heads=num_heads)
    out = jax.block_until_ready(out)

    # (1) Mirrored mixed-precision math run through plain XLA (verifies the
    #     Pallas lowering; the only deliberate delta is the in-kernel
    #     approximate EUP reciprocal in the softmax, hence 1e-2 tolerance).
    out_pad = ((output_dim + _OUT_LANE - 1) // _OUT_LANE) * _OUT_LANE
    prep_full = _prepare_params(params, S, num_heads, out_pad)
    mirror = _forward_math(
        x.astype(jnp.bfloat16).reshape(B * S, input_dim), prep_full['pos'],
        prep_full['w_in'], prep_full['wqkv'], prep_full['bqkv'], prep_full['wo'],
        prep_full['w1'], prep_full['b1'], prep_full['w2'], prep_full['vec'],
        prep_full['w_fc'], prep_full['b_fc'], num_layers=num_layers,
        num_heads=num_heads, seq_len=S)[:, :output_dim]
    np.testing.assert_allclose(np.asarray(out), np.asarray(mirror),
                               rtol=1e-2, atol=1e-2)

    # (2) Sanity check against pure-f32 PyTorch-style semantics; bf16 matmul
    #     inputs (with f32 accumulation) introduce O(1e-2) deviation, hence the
    #     looser tolerance.
    ref = reference_forward_f32(x, params, num_layers=num_layers,
                                num_heads=num_heads)
    np.testing.assert_allclose(np.asarray(out), np.asarray(ref),
                               rtol=5e-2, atol=5e-2)

    print("KERNEL_OK")
</pallas_src>

<mosaic_0001>
module attributes {stable_mosaic.version = 11 : i64} {
  func.func @kernel(%arg0: i32, %arg1: memref<1x16x16xbf16, #tpu.memory_space<vmem>>, %arg2: memref<8x32xf32, #tpu.memory_space<vmem>>, %arg3: memref<16x32xbf16, #tpu.memory_space<vmem>>, %arg4: memref<2x32x96xbf16, #tpu.memory_space<vmem>>, %arg5: memref<2x1x96xf32, #tpu.memory_space<vmem>>, %arg6: memref<2x32x32xbf16, #tpu.memory_space<vmem>>, %arg7: memref<2x32x128xbf16, #tpu.memory_space<vmem>>, %arg8: memref<2x1x128xf32, #tpu.memory_space<vmem>>, %arg9: memref<2x128x32xbf16, #tpu.memory_space<vmem>>, %arg10: memref<2x6x32xf32, #tpu.memory_space<vmem>>, %arg11: memref<32x128xbf16, #tpu.memory_space<vmem>>, %arg12: memref<1x128xf32, #tpu.memory_space<vmem>>, %arg13: memref<1x2x128xf32, #tpu.memory_space<vmem>>) attributes {dimension_semantics = [#tpu.dimension_semantics<parallel>], iteration_bounds = array<i64: 1>, scalar_prefetch = 0 : i64, scratch_operands = 0 : i64, tpu.core_type = #tpu.core_type<tc>, window_params = [{transform_indices = @transform_0, window_bounds = array<i64: 1, 16, 16>}, {pipeline_mode = #tpu.pipeline_mode<synchronous>, transform_indices = @transform_1, window_bounds = array<i64: 8, 32>}, {pipeline_mode = #tpu.pipeline_mode<synchronous>, transform_indices = @transform_2, window_bounds = array<i64: 16, 32>}, {pipeline_mode = #tpu.pipeline_mode<synchronous>, transform_indices = @transform_3, window_bounds = array<i64: 2, 32, 96>}, {pipeline_mode = #tpu.pipeline_mode<synchronous>, transform_indices = @transform_4, window_bounds = array<i64: 2, 1, 96>}, {pipeline_mode = #tpu.pipeline_mode<synchronous>, transform_indices = @transform_5, window_bounds = array<i64: 2, 32, 32>}, {pipeline_mode = #tpu.pipeline_mode<synchronous>, transform_indices = @transform_6, window_bounds = array<i64: 2, 32, 128>}, {pipeline_mode = #tpu.pipeline_mode<synchronous>, transform_indices = @transform_7, window_bounds = array<i64: 2, 1, 128>}, {pipeline_mode = #tpu.pipeline_mode<synchronous>, transform_indices = @transform_8, window_bounds = array<i64: 2, 128, 32>}, {pipeline_mode = #tpu.pipeline_mode<synchronous>, transform_indices = @transform_9, window_bounds = array<i64: 2, 6, 32>}, {pipeline_mode = #tpu.pipeline_mode<synchronous>, transform_indices = @transform_10, window_bounds = array<i64: 32, 128>}, {pipeline_mode = #tpu.pipeline_mode<synchronous>, transform_indices = @transform_11, window_bounds = array<i64: 1, 128>}, {transform_indices = @transform_12, window_bounds = array<i64: 1, 2, 128>}]} {
    %c0 = arith.constant 0 : index
    %c0_0 = arith.constant 0 : index
    %c0_1 = arith.constant 0 : index
    %0 = vector.load %arg1[%c0, %c0_0, %c0_1] : memref<1x16x16xbf16, #tpu.memory_space<vmem>>, vector<1x16x16xbf16>
    %1 = vector.shape_cast %0 : vector<1x16x16xbf16> to vector<16x16xbf16>
    %c0_2 = arith.constant 0 : index
    %c0_3 = arith.constant 0 : index
    %2 = vector.load %arg2[%c0_2, %c0_3] : memref<8x32xf32, #tpu.memory_space<vmem>>, vector<8x32xf32>
    %c0_4 = arith.constant 0 : index
    %c0_5 = arith.constant 0 : index
    %3 = vector.load %arg3[%c0_4, %c0_5] : memref<16x32xbf16, #tpu.memory_space<vmem>>, vector<16x32xbf16>
    %c0_6 = arith.constant 0 : index
    %c0_7 = arith.constant 0 : index
    %c0_8 = arith.constant 0 : index
    %4 = vector.load %arg4[%c0_6, %c0_7, %c0_8] : memref<2x32x96xbf16, #tpu.memory_space<vmem>>, vector<2x32x96xbf16>
    %c0_9 = arith.constant 0 : index
    %c0_10 = arith.constant 0 : index
    %c0_11 = arith.constant 0 : index
    %5 = vector.load %arg5[%c0_9, %c0_10, %c0_11] : memref<2x1x96xf32, #tpu.memory_space<vmem>>, vector<2x1x96xf32>
    %c0_12 = arith.constant 0 : index
    %c0_13 = arith.constant 0 : index
    %c0_14 = arith.constant 0 : index
    %6 = vector.load %arg6[%c0_12, %c0_13, %c0_14] : memref<2x32x32xbf16, #tpu.memory_space<vmem>>, vector<2x32x32xbf16>
    %c0_15 = arith.constant 0 : index
    %c0_16 = arith.constant 0 : index
    %c0_17 = arith.constant 0 : index
    %7 = vector.load %arg7[%c0_15, %c0_16, %c0_17] : memref<2x32x128xbf16, #tpu.memory_space<vmem>>, vector<2x32x128xbf16>
    %c0_18 = arith.constant 0 : index
    %c0_19 = arith.constant 0 : index
    %c0_20 = arith.constant 0 : index
    %8 = vector.load %arg8[%c0_18, %c0_19, %c0_20] : memref<2x1x128xf32, #tpu.memory_space<vmem>>, vector<2x1x128xf32>
    %c0_21 = arith.constant 0 : index
    %c0_22 = arith.constant 0 : index
    %c0_23 = arith.constant 0 : index
    %9 = vector.load %arg9[%c0_21, %c0_22, %c0_23] : memref<2x128x32xbf16, #tpu.memory_space<vmem>>, vector<2x128x32xbf16>
    %c0_24 = arith.constant 0 : index
    %c0_25 = arith.constant 0 : index
    %c0_26 = arith.constant 0 : index
    %10 = vector.load %arg10[%c0_24, %c0_25, %c0_26] : memref<2x6x32xf32, #tpu.memory_space<vmem>>, vector<2x6x32xf32>
    %c0_27 = arith.constant 0 : index
    %c0_28 = arith.constant 0 : index
    %11 = vector.load %arg11[%c0_27, %c0_28] : memref<32x128xbf16, #tpu.memory_space<vmem>>, vector<32x128xbf16>
    %c0_29 = arith.constant 0 : index
    %c0_30 = arith.constant 0 : index
    %12 = vector.load %arg12[%c0_29, %c0_30] : memref<1x128xf32, #tpu.memory_space<vmem>>, vector<1x128xf32>
    %cst = arith.constant dense<0.000000e+00> : vector<16x32xf32>
    %13 = tpu.matmul %1, %3, %cst {dimension_numbers = #tpu.dot_dimension_numbers<[1], [0], [0], [1], [0, 0, 1, 1], [], []>} : vector<16x16xbf16>, vector<16x32xbf16>, vector<16x32xf32> -> vector<16x32xf32>
    %14 = vector.shape_cast %13 : vector<16x32xf32> to vector<2x8x32xf32>
    %15 = vector.shape_cast %2 : vector<8x32xf32> to vector<1x8x32xf32>
    %16 = vector.broadcast %15 : vector<1x8x32xf32> to vector<2x8x32xf32>
    %17 = arith.addf %14, %16 : vector<2x8x32xf32>
    %18 = vector.shape_cast %17 : vector<2x8x32xf32> to vector<16x32xf32>
    %19 = vector.extract_strided_slice %10 {offsets = [0, 0, 0], sizes = [1, 6, 32], strides = [1, 1, 1]} : vector<2x6x32xf32> to vector<1x6x32xf32>
    %20 = vector.shape_cast %19 : vector<1x6x32xf32> to vector<6x32xf32>
    %21 = vector.extract_strided_slice %20 {offsets = [0, 0], sizes = [1, 32], strides = [1, 1]} : vector<6x32xf32> to vector<1x32xf32>
    %22 = vector.extract_strided_slice %20 {offsets = [1, 0], sizes = [1, 32], strides = [1, 1]} : vector<6x32xf32> to vector<1x32xf32>
    %23 = vector.extract_strided_slice %20 {offsets = [2, 0], sizes = [1, 32], strides = [1, 1]} : vector<6x32xf32> to vector<1x32xf32>
    %24 = vector.extract_strided_slice %20 {offsets = [3, 0], sizes = [1, 32], strides = [1, 1]} : vector<6x32xf32> to vector<1x32xf32>
    %25 = vector.extract_strided_slice %20 {offsets = [4, 0], sizes = [1, 32], strides = [1, 1]} : vector<6x32xf32> to vector<1x32xf32>
    %26 = vector.extract_strided_slice %20 {offsets = [5, 0], sizes = [1, 32], strides = [1, 1]} : vector<6x32xf32> to vector<1x32xf32>
    %27 = arith.truncf %18 : vector<16x32xf32> to vector<16x32xbf16>
    %28 = vector.extract_strided_slice %4 {offsets = [0, 0, 0], sizes = [1, 32, 96], strides = [1, 1, 1]} : vector<2x32x96xbf16> to vector<1x32x96xbf16>
    %29 = vector.shape_cast %28 : vector<1x32x96xbf16> to vector<32x96xbf16>
    %cst_31 = arith.constant dense<0.000000e+00> : vector<16x96xf32>
    %30 = tpu.matmul %27, %29, %cst_31 {dimension_numbers = #tpu.dot_dimension_numbers<[1], [0], [0], [1], [0, 0, 1, 1], [], []>} : vector<16x32xbf16>, vector<32x96xbf16>, vector<16x96xf32> -> vector<16x96xf32>
    %31 = vector.extract_strided_slice %5 {offsets = [0, 0, 0], sizes = [1, 1, 96], strides = [1, 1, 1]} : vector<2x1x96xf32> to vector<1x1x96xf32>
    %32 = vector.shape_cast %31 : vector<1x1x96xf32> to vector<1x96xf32>
    %33 = vector.broadcast %32 : vector<1x96xf32> to vector<16x96xf32>
    %34 = arith.addf %30, %33 : vector<16x96xf32>
    %35 = arith.truncf %34 : vector<16x96xf32> to vector<16x96xbf16>
    %36 = vector.shape_cast %35 : vector<16x96xbf16> to vector<2x8x12x8xbf16>
    %37 = tpu.transpose %36, [0, 2, 1, 3] : vector<2x8x12x8xbf16> -> vector<2x12x8x8xbf16>
    %38 = vector.extract_strided_slice %37 {offsets = [0, 0, 0, 0], sizes = [2, 4, 8, 8], strides = [1, 1, 1, 1]} : vector<2x12x8x8xbf16> to vector<2x4x8x8xbf16>
    %39 = vector.shape_cast %38 : vector<2x4x8x8xbf16> to vector<8x8x8xbf16>
    %40 = vector.extract_strided_slice %37 {offsets = [0, 4, 0, 0], sizes = [2, 4, 8, 8], strides = [1, 1, 1, 1]} : vector<2x12x8x8xbf16> to vector<2x4x8x8xbf16>
    %41 = vector.shape_cast %40 : vector<2x4x8x8xbf16> to vector<8x8x8xbf16>
    %42 = vector.extract_strided_slice %37 {offsets = [0, 8, 0, 0], sizes = [2, 4, 8, 8], strides = [1, 1, 1, 1]} : vector<2x12x8x8xbf16> to vector<2x4x8x8xbf16>
    %43 = vector.shape_cast %42 : vector<2x4x8x8xbf16> to vector<8x8x8xbf16>
    "tpu.trace_start"() <{level = 10 : i32, message = "nqd,nkd->nqk"}> : () -> ()
    %cst_32 = arith.constant dense<0.000000e+00> : vector<8x8x8xf32>
    %44 = tpu.matmul %39, %41, %cst_32 {dimension_numbers = #tpu.dot_dimension_numbers<[2], [2], [1], [1], [0, 0, 0, 1, 1, 1], [0], [0]>} : vector<8x8x8xbf16>, vector<8x8x8xbf16>, vector<8x8x8xf32> -> vector<8x8x8xf32>
    "tpu.trace_stop"() : () -> ()
    %cst_33 = arith.constant dense<0xFF800000> : vector<8x8xf32>
    %45 = vector.multi_reduction <maximumf>, %44, %cst_33 [2] : vector<8x8x8xf32> to vector<8x8xf32>
    %46 = vector.shape_cast %45 : vector<8x8xf32> to vector<8x8x1xf32>
    %47 = vector.broadcast %46 : vector<8x8x1xf32> to vector<8x8x8xf32>
    %48 = arith.subf %44, %47 : vector<8x8x8xf32>
    %49 = math.exp %48 : vector<8x8x8xf32>
    %cst_34 = arith.constant dense<0.000000e+00> : vector<8x8xf32>
    %50 = vector.multi_reduction <add>, %49, %cst_34 [2] : vector<8x8x8xf32> to vector<8x8xf32>
    %51 = vector.shape_cast %50 : vector<8x8xf32> to vector<8x8x1xf32>
    %52 = tpu.reciprocal %51 {approx = true} : vector<8x8x1xf32> -> vector<8x8x1xf32>
    %53 = vector.broadcast %52 : vector<8x8x1xf32> to vector<8x8x8xf32>
    %54 = arith.mulf %49, %53 : vector<8x8x8xf32>
    %55 = arith.truncf %54 : vector<8x8x8xf32> to vector<8x8x8xbf16>
    "tpu.trace_start"() <{level = 10 : i32, message = "nqk,nkd->nqd"}> : () -> ()
    %cst_35 = arith.constant dense<0.000000e+00> : vector<8x8x8xf32>
    %56 = tpu.matmul %55, %43, %cst_35 {dimension_numbers = #tpu.dot_dimension_numbers<[2], [1], [1], [2], [0, 0, 0, 1, 1, 2], [0], [0]>} : vector<8x8x8xbf16>, vector<8x8x8xbf16>, vector<8x8x8xf32> -> vector<8x8x8xf32>
    "tpu.trace_stop"() : () -> ()
    %57 = arith.truncf %56 : vector<8x8x8xf32> to vector<8x8x8xbf16>
    %58 = vector.shape_cast %57 : vector<8x8x8xbf16> to vector<2x4x8x8xbf16>
    %59 = tpu.transpose %58, [0, 2, 1, 3] : vector<2x4x8x8xbf16> -> vector<2x8x4x8xbf16>
    %60 = vector.shape_cast %59 : vector<2x8x4x8xbf16> to vector<16x32xbf16>
    %61 = vector.extract_strided_slice %6 {offsets = [0, 0, 0], sizes = [1, 32, 32], strides = [1, 1, 1]} : vector<2x32x32xbf16> to vector<1x32x32xbf16>
    %62 = vector.shape_cast %61 : vector<1x32x32xbf16> to vector<32x32xbf16>
    %cst_36 = arith.constant dense<0.000000e+00> : vector<16x32xf32>
    %63 = tpu.matmul %60, %62, %cst_36 {dimension_numbers = #tpu.dot_dimension_numbers<[1], [0], [0], [1], [0, 0, 1, 1], [], []>} : vector<16x32xbf16>, vector<32x32xbf16>, vector<16x32xf32> -> vector<16x32xf32>
    %64 = vector.broadcast %21 : vector<1x32xf32> to vector<16x32xf32>
    %65 = arith.addf %63, %64 : vector<16x32xf32>
    %66 = arith.addf %18, %65 : vector<16x32xf32>
    %cst_37 = arith.constant dense<0.000000e+00> : vector<16xf32>
    %67 = vector.multi_reduction <add>, %66, %cst_37 [1] : vector<16x32xf32> to vector<16xf32>
    %68 = vector.shape_cast %67 : vector<16xf32> to vector<16x1xf32>
    %cst_38 = arith.constant 3.200000e+01 : f32
    %69 = vector.broadcast %cst_38 : f32 to vector<16x1xf32>
    %70 = arith.divf %68, %69 : vector<16x1xf32>
    %71 = arith.mulf %66, %66 : vector<16x32xf32>
    %cst_39 = arith.constant dense<0.000000e+00> : vector<16xf32>
    %72 = vector.multi_reduction <add>, %71, %cst_39 [1] : vector<16x32xf32> to vector<16xf32>
    %73 = vector.shape_cast %72 : vector<16xf32> to vector<16x1xf32>
    %cst_40 = arith.constant 3.200000e+01 : f32
    %74 = vector.broadcast %cst_40 : f32 to vector<16x1xf32>
    %75 = arith.divf %73, %74 : vector<16x1xf32>
    %76 = arith.mulf %70, %70 : vector<16x1xf32>
    %77 = arith.subf %75, %76 : vector<16x1xf32>
    %78 = vector.broadcast %70 : vector<16x1xf32> to vector<16x32xf32>
    %79 = arith.subf %66, %78 : vector<16x32xf32>
    %cst_41 = arith.constant 9.99999974E-6 : f32
    %80 = vector.broadcast %cst_41 : f32 to vector<16x1xf32>
    %81 = arith.addf %77, %80 : vector<16x1xf32>
    %82 = math.rsqrt %81 : vector<16x1xf32>
    %83 = vector.broadcast %82 : vector<16x1xf32> to vector<16x32xf32>
    %84 = arith.mulf %79, %83 : vector<16x32xf32>
    %85 = vector.broadcast %22 : vector<1x32xf32> to vector<16x32xf32>
    %86 = arith.mulf %84, %85 : vector<16x32xf32>
    %87 = vector.broadcast %23 : vector<1x32xf32> to vector<16x32xf32>
    %88 = arith.addf %86, %87 : vector<16x32xf32>
    %89 = arith.truncf %88 : vector<16x32xf32> to vector<16x32xbf16>
    %90 = vector.extract_strided_slice %7 {offsets = [0, 0, 0], sizes = [1, 32, 128], strides = [1, 1, 1]} : vector<2x32x128xbf16> to vector<1x32x128xbf16>
    %91 = vector.shape_cast %90 : vector<1x32x128xbf16> to vector<32x128xbf16>
    %cst_42 = arith.constant dense<0.000000e+00> : vector<16x128xf32>
    %92 = tpu.matmul %89, %91, %cst_42 {dimension_numbers = #tpu.dot_dimension_numbers<[1], [0], [0], [1], [0, 0, 1, 1], [], []>} : vector<16x32xbf16>, vector<32x128xbf16>, vector<16x128xf32> -> vector<16x128xf32>
    %93 = vector.extract_strided_slice %8 {offsets = [0, 0, 0], sizes = [1, 1, 128], strides = [1, 1, 1]} : vector<2x1x128xf32> to vector<1x1x128xf32>
    %94 = vector.shape_cast %93 : vector<1x1x128xf32> to vector<1x128xf32>
    %95 = vector.broadcast %94 : vector<1x128xf32> to vector<16x128xf32>
    %96 = arith.addf %92, %95 : vector<16x128xf32>
    %cst_43 = arith.constant 0.000000e+00 : f32
    %97 = vector.broadcast %cst_43 : f32 to vector<16x128xf32>
    %98 = arith.maximumf %96, %97 : vector<16x128xf32>
    %99 = arith.truncf %98 : vector<16x128xf32> to vector<16x128xbf16>
    %100 = vector.extract_strided_slice %9 {offsets = [0, 0, 0], sizes = [1, 128, 32], strides = [1, 1, 1]} : vector<2x128x32xbf16> to vector<1x128x32xbf16>
    %101 = vector.shape_cast %100 : vector<1x128x32xbf16> to vector<128x32xbf16>
    %cst_44 = arith.constant dense<0.000000e+00> : vector<16x32xf32>
    %102 = tpu.matmul %99, %101, %cst_44 {dimension_numbers = #tpu.dot_dimension_numbers<[1], [0], [0], [1], [0, 0, 1, 1], [], []>} : vector<16x128xbf16>, vector<128x32xbf16>, vector<16x32xf32> -> vector<16x32xf32>
    %103 = vector.broadcast %24 : vector<1x32xf32> to vector<16x32xf32>
    %104 = arith.addf %102, %103 : vector<16x32xf32>
    %105 = arith.addf %88, %104 : vector<16x32xf32>
    %cst_45 = arith.constant dense<0.000000e+00> : vector<16xf32>
    %106 = vector.multi_reduction <add>, %105, %cst_45 [1] : vector<16x32xf32> to vector<16xf32>
    %107 = vector.shape_cast %106 : vector<16xf32> to vector<16x1xf32>
    %cst_46 = arith.constant 3.200000e+01 : f32
    %108 = vector.broadcast %cst_46 : f32 to vector<16x1xf32>
    %109 = arith.divf %107, %108 : vector<16x1xf32>
    %110 = arith.mulf %105, %105 : vector<16x32xf32>
    %cst_47 = arith.constant dense<0.000000e+00> : vector<16xf32>
    %111 = vector.multi_reduction <add>, %110, %cst_47 [1] : vector<16x32xf32> to vector<16xf32>
    %112 = vector.shape_cast %111 : vector<16xf32> to vector<16x1xf32>
    %cst_48 = arith.constant 3.200000e+01 : f32
    %113 = vector.broadcast %cst_48 : f32 to vector<16x1xf32>
    %114 = arith.divf %112, %113 : vector<16x1xf32>
    %115 = arith.mulf %109, %109 : vector<16x1xf32>
    %116 = arith.subf %114, %115 : vector<16x1xf32>
    %117 = vector.broadcast %109 : vector<16x1xf32> to vector<16x32xf32>
    %118 = arith.subf %105, %117 : vector<16x32xf32>
    %cst_49 = arith.constant 9.99999974E-6 : f32
    %119 = vector.broadcast %cst_49 : f32 to vector<16x1xf32>
    %120 = arith.addf %116, %119 : vector<16x1xf32>
    %121 = math.rsqrt %120 : vector<16x1xf32>
    %122 = vector.broadcast %121 : vector<16x1xf32> to vector<16x32xf32>
    %123 = arith.mulf %118, %122 : vector<16x32xf32>
    %124 = vector.broadcast %25 : vector<1x32xf32> to vector<16x32xf32>
    %125 = arith.mulf %123, %124 : vector<16x32xf32>
    %126 = vector.broadcast %26 : vector<1x32xf32> to vector<16x32xf32>
    %127 = arith.addf %125, %126 : vector<16x32xf32>
    %128 = vector.extract_strided_slice %10 {offsets = [1, 0, 0], sizes = [1, 6, 32], strides = [1, 1, 1]} : vector<2x6x32xf32> to vector<1x6x32xf32>
    %129 = vector.shape_cast %128 : vector<1x6x32xf32> to vector<6x32xf32>
    %130 = vector.extract_strided_slice %129 {offsets = [0, 0], sizes = [1, 32], strides = [1, 1]} : vector<6x32xf32> to vector<1x32xf32>
    %131 = vector.extract_strided_slice %129 {offsets = [1, 0], sizes = [1, 32], strides = [1, 1]} : vector<6x32xf32> to vector<1x32xf32>
    %132 = vector.extract_strided_slice %129 {offsets = [2, 0], sizes = [1, 32], strides = [1, 1]} : vector<6x32xf32> to vector<1x32xf32>
    %133 = vector.extract_strided_slice %129 {offsets = [3, 0], sizes = [1, 32], strides = [1, 1]} : vector<6x32xf32> to vector<1x32xf32>
    %134 = vector.extract_strided_slice %129 {offsets = [4, 0], sizes = [1, 32], strides = [1, 1]} : vector<6x32xf32> to vector<1x32xf32>
    %135 = vector.extract_strided_slice %129 {offsets = [5, 0], sizes = [1, 32], strides = [1, 1]} : vector<6x32xf32> to vector<1x32xf32>
    %136 = arith.truncf %127 : vector<16x32xf32> to vector<16x32xbf16>
    %137 = vector.extract_strided_slice %4 {offsets = [1, 0, 0], sizes = [1, 32, 96], strides = [1, 1, 1]} : vector<2x32x96xbf16> to vector<1x32x96xbf16>
    %138 = vector.shape_cast %137 : vector<1x32x96xbf16> to vector<32x96xbf16>
    %cst_50 = arith.constant dense<0.000000e+00> : vector<16x96xf32>
    %139 = tpu.matmul %136, %138, %cst_50 {dimension_numbers = #tpu.dot_dimension_numbers<[1], [0], [0], [1], [0, 0, 1, 1], [], []>} : vector<16x32xbf16>, vector<32x96xbf16>, vector<16x96xf32> -> vector<16x96xf32>
    %140 = vector.extract_strided_slice %5 {offsets = [1, 0, 0], sizes = [1, 1, 96], strides = [1, 1, 1]} : vector<2x1x96xf32> to vector<1x1x96xf32>
    %141 = vector.shape_cast %140 : vector<1x1x96xf32> to vector<1x96xf32>
    %142 = vector.broadcast %141 : vector<1x96xf32> to vector<16x96xf32>
    %143 = arith.addf %139, %142 : vector<16x96xf32>
    %144 = arith.truncf %143 : vector<16x96xf32> to vector<16x96xbf16>
    %145 = vector.shape_cast %144 : vector<16x96xbf16> to vector<2x8x12x8xbf16>
    %146 = tpu.transpose %145, [0, 2, 1, 3] : vector<2x8x12x8xbf16> -> vector<2x12x8x8xbf16>
    %147 = vector.extract_strided_slice %146 {offsets = [0, 0, 0, 0], sizes = [2, 4, 8, 8], strides = [1, 1, 1, 1]} : vector<2x12x8x8xbf16> to vector<2x4x8x8xbf16>
    %148 = vector.shape_cast %147 : vector<2x4x8x8xbf16> to vector<8x8x8xbf16>
    %149 = vector.extract_strided_slice %146 {offsets = [0, 4, 0, 0], sizes = [2, 4, 8, 8], strides = [1, 1, 1, 1]} : vector<2x12x8x8xbf16> to vector<2x4x8x8xbf16>
    %150 = vector.shape_cast %149 : vector<2x4x8x8xbf16> to vector<8x8x8xbf16>
    %151 = vector.extract_strided_slice %146 {offsets = [0, 8, 0, 0], sizes = [2, 4, 8, 8], strides = [1, 1, 1, 1]} : vector<2x12x8x8xbf16> to vector<2x4x8x8xbf16>
    %152 = vector.shape_cast %151 : vector<2x4x8x8xbf16> to vector<8x8x8xbf16>
    "tpu.trace_start"() <{level = 10 : i32, message = "nqd,nkd->nqk"}> : () -> ()
    %cst_51 = arith.constant dense<0.000000e+00> : vector<8x8x8xf32>
    %153 = tpu.matmul %148, %150, %cst_51 {dimension_numbers = #tpu.dot_dimension_numbers<[2], [2], [1], [1], [0, 0, 0, 1, 1, 1], [0], [0]>} : vector<8x8x8xbf16>, vector<8x8x8xbf16>, vector<8x8x8xf32> -> vector<8x8x8xf32>
    "tpu.trace_stop"() : () -> ()
    %cst_52 = arith.constant dense<0xFF800000> : vector<8x8xf32>
    %154 = vector.multi_reduction <maximumf>, %153, %cst_52 [2] : vector<8x8x8xf32> to vector<8x8xf32>
    %155 = vector.shape_cast %154 : vector<8x8xf32> to vector<8x8x1xf32>
    %156 = vector.broadcast %155 : vector<8x8x1xf32> to vector<8x8x8xf32>
    %157 = arith.subf %153, %156 : vector<8x8x8xf32>
    %158 = math.exp %157 : vector<8x8x8xf32>
    %cst_53 = arith.constant dense<0.000000e+00> : vector<8x8xf32>
    %159 = vector.multi_reduction <add>, %158, %cst_53 [2] : vector<8x8x8xf32> to vector<8x8xf32>
    %160 = vector.shape_cast %159 : vector<8x8xf32> to vector<8x8x1xf32>
    %161 = tpu.reciprocal %160 {approx = true} : vector<8x8x1xf32> -> vector<8x8x1xf32>
    %162 = vector.broadcast %161 : vector<8x8x1xf32> to vector<8x8x8xf32>
    %163 = arith.mulf %158, %162 : vector<8x8x8xf32>
    %164 = arith.truncf %163 : vector<8x8x8xf32> to vector<8x8x8xbf16>
    "tpu.trace_start"() <{level = 10 : i32, message = "nqk,nkd->nqd"}> : () -> ()
    %cst_54 = arith.constant dense<0.000000e+00> : vector<8x8x8xf32>
    %165 = tpu.matmul %164, %152, %cst_54 {dimension_numbers = #tpu.dot_dimension_numbers<[2], [1], [1], [2], [0, 0, 0, 1, 1, 2], [0], [0]>} : vector<8x8x8xbf16>, vector<8x8x8xbf16>, vector<8x8x8xf32> -> vector<8x8x8xf32>
    "tpu.trace_stop"() : () -> ()
    %166 = arith.truncf %165 : vector<8x8x8xf32> to vector<8x8x8xbf16>
    %167 = vector.shape_cast %166 : vector<8x8x8xbf16> to vector<2x4x8x8xbf16>
    %168 = tpu.transpose %167, [0, 2, 1, 3] : vector<2x4x8x8xbf16> -> vector<2x8x4x8xbf16>
    %169 = vector.shape_cast %168 : vector<2x8x4x8xbf16> to vector<16x32xbf16>
    %170 = vector.extract_strided_slice %6 {offsets = [1, 0, 0], sizes = [1, 32, 32], strides = [1, 1, 1]} : vector<2x32x32xbf16> to vector<1x32x32xbf16>
    %171 = vector.shape_cast %170 : vector<1x32x32xbf16> to vector<32x32xbf16>
    %cst_55 = arith.constant dense<0.000000e+00> : vector<16x32xf32>
    %172 = tpu.matmul %169, %171, %cst_55 {dimension_numbers = #tpu.dot_dimension_numbers<[1], [0], [0], [1], [0, 0, 1, 1], [], []>} : vector<16x32xbf16>, vector<32x32xbf16>, vector<16x32xf32> -> vector<16x32xf32>
    %173 = vector.broadcast %130 : vector<1x32xf32> to vector<16x32xf32>
    %174 = arith.addf %172, %173 : vector<16x32xf32>
    %175 = arith.addf %127, %174 : vector<16x32xf32>
    %cst_56 = arith.constant dense<0.000000e+00> : vector<16xf32>
    %176 = vector.multi_reduction <add>, %175, %cst_56 [1] : vector<16x32xf32> to vector<16xf32>
    %177 = vector.shape_cast %176 : vector<16xf32> to vector<16x1xf32>
    %cst_57 = arith.constant 3.200000e+01 : f32
    %178 = vector.broadcast %cst_57 : f32 to vector<16x1xf32>
    %179 = arith.divf %177, %178 : vector<16x1xf32>
    %180 = arith.mulf %175, %175 : vector<16x32xf32>
    %cst_58 = arith.constant dense<0.000000e+00> : vector<16xf32>
    %181 = vector.multi_reduction <add>, %180, %cst_58 [1] : vector<16x32xf32> to vector<16xf32>
    %182 = vector.shape_cast %181 : vector<16xf32> to vector<16x1xf32>
    %cst_59 = arith.constant 3.200000e+01 : f32
    %183 = vector.broadcast %cst_59 : f32 to vector<16x1xf32>
    %184 = arith.divf %182, %183 : vector<16x1xf32>
    %185 = arith.mulf %179, %179 : vector<16x1xf32>
    %186 = arith.subf %184, %185 : vector<16x1xf32>
    %187 = vector.broadcast %179 : vector<16x1xf32> to vector<16x32xf32>
    %188 = arith.subf %175, %187 : vector<16x32xf32>
    %cst_60 = arith.constant 9.99999974E-6 : f32
    %189 = vector.broadcast %cst_60 : f32 to vector<16x1xf32>
    %190 = arith.addf %186, %189 : vector<16x1xf32>
    %191 = math.rsqrt %190 : vector<16x1xf32>
    %192 = vector.broadcast %191 : vector<16x1xf32> to vector<16x32xf32>
    %193 = arith.mulf %188, %192 : vector<16x32xf32>
    %194 = vector.broadcast %131 : vector<1x32xf32> to vector<16x32xf32>
    %195 = arith.mulf %193, %194 : vector<16x32xf32>
    %196 = vector.broadcast %132 : vector<1x32xf32> to vector<16x32xf32>
    %197 = arith.addf %195, %196 : vector<16x32xf32>
    %198 = arith.truncf %197 : vector<16x32xf32> to vector<16x32xbf16>
    %199 = vector.extract_strided_slice %7 {offsets = [1, 0, 0], sizes = [1, 32, 128], strides = [1, 1, 1]} : vector<2x32x128xbf16> to vector<1x32x128xbf16>
    %200 = vector.shape_cast %199 : vector<1x32x128xbf16> to vector<32x128xbf16>
    %cst_61 = arith.constant dense<0.000000e+00> : vector<16x128xf32>
    %201 = tpu.matmul %198, %200, %cst_61 {dimension_numbers = #tpu.dot_dimension_numbers<[1], [0], [0], [1], [0, 0, 1, 1], [], []>} : vector<16x32xbf16>, vector<32x128xbf16>, vector<16x128xf32> -> vector<16x128xf32>
    %202 = vector.extract_strided_slice %8 {offsets = [1, 0, 0], sizes = [1, 1, 128], strides = [1, 1, 1]} : vector<2x1x128xf32> to vector<1x1x128xf32>
    %203 = vector.shape_cast %202 : vector<1x1x128xf32> to vector<1x128xf32>
    %204 = vector.broadcast %203 : vector<1x128xf32> to vector<16x128xf32>
    %205 = arith.addf %201, %204 : vector<16x128xf32>
    %cst_62 = arith.constant 0.000000e+00 : f32
    %206 = vector.broadcast %cst_62 : f32 to vector<16x128xf32>
    %207 = arith.maximumf %205, %206 : vector<16x128xf32>
    %208 = arith.truncf %207 : vector<16x128xf32> to vector<16x128xbf16>
    %209 = vector.extract_strided_slice %9 {offsets = [1, 0, 0], sizes = [1, 128, 32], strides = [1, 1, 1]} : vector<2x128x32xbf16> to vector<1x128x32xbf16>
    %210 = vector.shape_cast %209 : vector<1x128x32xbf16> to vector<128x32xbf16>
    %cst_63 = arith.constant dense<0.000000e+00> : vector<16x32xf32>
    %211 = tpu.matmul %208, %210, %cst_63 {dimension_numbers = #tpu.dot_dimension_numbers<[1], [0], [0], [1], [0, 0, 1, 1], [], []>} : vector<16x128xbf16>, vector<128x32xbf16>, vector<16x32xf32> -> vector<16x32xf32>
    %212 = vector.broadcast %133 : vector<1x32xf32> to vector<16x32xf32>
    %213 = arith.addf %211, %212 : vector<16x32xf32>
    %214 = arith.addf %197, %213 : vector<16x32xf32>
    %cst_64 = arith.constant dense<0.000000e+00> : vector<16xf32>
    %215 = vector.multi_reduction <add>, %214, %cst_64 [1] : vector<16x32xf32> to vector<16xf32>
    %216 = vector.shape_cast %215 : vector<16xf32> to vector<16x1xf32>
    %cst_65 = arith.constant 3.200000e+01 : f32
    %217 = vector.broadcast %cst_65 : f32 to vector<16x1xf32>
    %218 = arith.divf %216, %217 : vector<16x1xf32>
    %219 = arith.mulf %214, %214 : vector<16x32xf32>
    %cst_66 = arith.constant dense<0.000000e+00> : vector<16xf32>
    %220 = vector.multi_reduction <add>, %219, %cst_66 [1] : vector<16x32xf32> to vector<16xf32>
    %221 = vector.shape_cast %220 : vector<16xf32> to vector<16x1xf32>
    %cst_67 = arith.constant 3.200000e+01 : f32
    %222 = vector.broadcast %cst_67 : f32 to vector<16x1xf32>
    %223 = arith.divf %221, %222 : vector<16x1xf32>
    %224 = arith.mulf %218, %218 : vector<16x1xf32>
    %225 = arith.subf %223, %224 : vector<16x1xf32>
    %226 = vector.broadcast %218 : vector<16x1xf32> to vector<16x32xf32>
    %227 = arith.subf %214, %226 : vector<16x32xf32>
    %cst_68 = arith.constant 9.99999974E-6 : f32
    %228 = vector.broadcast %cst_68 : f32 to vector<16x1xf32>
    %229 = arith.addf %225, %228 : vector<16x1xf32>
    %230 = math.rsqrt %229 : vector<16x1xf32>
    %231 = vector.broadcast %230 : vector<16x1xf32> to vector<16x32xf32>
    %232 = arith.mulf %227, %231 : vector<16x32xf32>
    %233 = vector.broadcast %134 : vector<1x32xf32> to vector<16x32xf32>
    %234 = arith.mulf %232, %233 : vector<16x32xf32>
    %235 = vector.broadcast %135 : vector<1x32xf32> to vector<16x32xf32>
    %236 = arith.addf %234, %235 : vector<16x32xf32>
    %237 = vector.shape_cast %236 : vector<16x32xf32> to vector<2x8x32xf32>
    %238 = vector.extract_strided_slice %237 {offsets = [0, 7, 0], sizes = [2, 1, 32], strides = [1, 1, 1]} : vector<2x8x32xf32> to vector<2x1x32xf32>
    %239 = vector.shape_cast %238 : vector<2x1x32xf32> to vector<2x32xf32>
    %240 = arith.truncf %239 : vector<2x32xf32> to vector<2x32xbf16>
    %cst_69 = arith.constant dense<0.000000e+00> : vector<2x128xf32>
    %241 = tpu.matmul %240, %11, %cst_69 {dimension_numbers = #tpu.dot_dimension_numbers<[1], [0], [0], [1], [0, 0, 1, 1], [], []>} : vector<2x32xbf16>, vector<32x128xbf16>, vector<2x128xf32> -> vector<2x128xf32>
    %242 = vector.broadcast %12 : vector<1x128xf32> to vector<2x128xf32>
    %243 = arith.addf %241, %242 : vector<2x128xf32>
    %c0_70 = arith.constant 0 : index
    %c0_71 = arith.constant 0 : index
    %c0_72 = arith.constant 0 : index
    %244 = vector.load %arg13[%c0_70, %c0_71, %c0_72] : memref<1x2x128xf32, #tpu.memory_space<vmem>>, vector<1x2x128xf32>
    %245 = vector.shape_cast %244 : vector<1x2x128xf32> to vector<2x128xf32>
    %246 = vector.shape_cast %243 : vector<2x128xf32> to vector<1x2x128xf32>
    tpu.vector_store %arg13[%c0_70, %c0_71, %c0_72], %246 {strides = array<i32>} : memref<1x2x128xf32, #tpu.memory_space<vmem>>, vector<1x2x128xf32>,
    return
  }
  func.func @transform_0(%arg0: i32) -> (i32, i32, i32) {
    %c0_i32 = arith.constant 0 : i32
    %c0_i32_0 = arith.constant 0 : i32
    %c0_i32_1 = arith.constant 0 : i32
    return %arg0, %c0_i32, %c0_i32_0 : i32, i32, i32
  }
  func.func @transform_1(%arg0: i32) -> (i32, i32) {
    %c0_i32 = arith.constant 0 : i32
    %c0_i32_0 = arith.constant 0 : i32
    %c0_i32_1 = arith.constant 0 : i32
    return %c0_i32, %c0_i32_0 : i32, i32
  }
  func.func @transform_2(%arg0: i32) -> (i32, i32) {
    %c0_i32 = arith.constant 0 : i32
    %c0_i32_0 = arith.constant 0 : i32
    %c0_i32_1 = arith.constant 0 : i32
    return %c0_i32, %c0_i32_0 : i32, i32
  }
  func.func @transform_3(%arg0: i32) -> (i32, i32, i32) {
    %c0_i32 = arith.constant 0 : i32
    %c0_i32_0 = arith.constant 0 : i32
    %c0_i32_1 = arith.constant 0 : i32
    %c0_i32_2 = arith.constant 0 : i32
    return %c0_i32, %c0_i32_0, %c0_i32_1 : i32, i32, i32
  }
  func.func @transform_4(%arg0: i32) -> (i32, i32, i32) {
    %c0_i32 = arith.constant 0 : i32
    %c0_i32_0 = arith.constant 0 : i32
    %c0_i32_1 = arith.constant 0 : i32
    %c0_i32_2 = arith.constant 0 : i32
    return %c0_i32, %c0_i32_0, %c0_i32_1 : i32, i32, i32
  }
  func.func @transform_5(%arg0: i32) -> (i32, i32, i32) {
    %c0_i32 = arith.constant 0 : i32
    %c0_i32_0 = arith.constant 0 : i32
    %c0_i32_1 = arith.constant 0 : i32
    %c0_i32_2 = arith.constant 0 : i32
    return %c0_i32, %c0_i32_0, %c0_i32_1 : i32, i32, i32
  }
  func.func @transform_6(%arg0: i32) -> (i32, i32, i32) {
    %c0_i32 = arith.constant 0 : i32
    %c0_i32_0 = arith.constant 0 : i32
    %c0_i32_1 = arith.constant 0 : i32
    %c0_i32_2 = arith.constant 0 : i32
    return %c0_i32, %c0_i32_0, %c0_i32_1 : i32, i32, i32
  }
  func.func @transform_7(%arg0: i32) -> (i32, i32, i32) {
    %c0_i32 = arith.constant 0 : i32
    %c0_i32_0 = arith.constant 0 : i32
    %c0_i32_1 = arith.constant 0 : i32
    %c0_i32_2 = arith.constant 0 : i32
    return %c0_i32, %c0_i32_0, %c0_i32_1 : i32, i32, i32
  }
  func.func @transform_8(%arg0: i32) -> (i32, i32, i32) {
    %c0_i32 = arith.constant 0 : i32
    %c0_i32_0 = arith.constant 0 : i32
    %c0_i32_1 = arith.constant 0 : i32
    %c0_i32_2 = arith.constant 0 : i32
    return %c0_i32, %c0_i32_0, %c0_i32_1 : i32, i32, i32
  }
  func.func @transform_9(%arg0: i32) -> (i32, i32, i32) {
    %c0_i32 = arith.constant 0 : i32
    %c0_i32_0 = arith.constant 0 : i32
    %c0_i32_1 = arith.constant 0 : i32
    %c0_i32_2 = arith.constant 0 : i32
    return %c0_i32, %c0_i32_0, %c0_i32_1 : i32, i32, i32
  }
  func.func @transform_10(%arg0: i32) -> (i32, i32) {
    %c0_i32 = arith.constant 0 : i32
    %c0_i32_0 = arith.constant 0 : i32
    %c0_i32_1 = arith.constant 0 : i32
    return %c0_i32, %c0_i32_0 : i32, i32
  }
  func.func @transform_11(%arg0: i32) -> (i32, i32) {
    %c0_i32 = arith.constant 0 : i32
    %c0_i32_0 = arith.constant 0 : i32
    %c0_i32_1 = arith.constant 0 : i32
    return %c0_i32, %c0_i32_0 : i32, i32
  }
  func.func @transform_12(%arg0: i32) -> (i32, i32, i32) {
    %c0_i32 = arith.constant 0 : i32
    %c0_i32_0 = arith.constant 0 : i32
    %c0_i32_1 = arith.constant 0 : i32
    return %arg0, %c0_i32, %c0_i32_0 : i32, i32, i32
  }
}

</mosaic_0001>

<bundles_post_ra>
// kernel: tpu_custom_call.1
= control target key start
LH: loop header
LB: loop body
LE: loop exit
PB: predicated region body
PF: predicated region fallthrough
CT: control target
= control target key end

     0   :  { %v5281_v1 = vmov 0.0   ;;  %vm5282_vm0 = vmmov 0   ;;  %vm126_vm1 = vcmask 130048   ;;  %s6219_s0 = inlined_call_operand.vmem [shape: bf16[1,16,16], index: 0, kind: input, shape index: {}]   ;;  %s6220_s1 = inlined_call_operand.vmem [shape: f32[8,32], index: 1, kind: input, shape index: {}]   ;;  %s6221_s2 = inlined_call_operand.vmem [shape: bf16[16,32], index: 2, kind: input, shape index: {}]   ;;  %s6222_s3 = inlined_call_operand.vmem [shape: bf16[2,32,96], index: 3, kind: input, shape index: {}]   ;;  %s6223_s4 = inlined_call_operand.vmem [shape: f32[2,1,96], index: 4, kind: input, shape index: {}]   ;;  %s6224_s5 = inlined_call_operand.vmem [shape: bf16[2,32,32], index: 5, kind: input, shape index: {}]   ;;  %s6225_s6 = inlined_call_operand.vmem [shape: bf16[2,32,128], index: 6, kind: input, shape index: {}]   ;;  %s6226_s7 = inlined_call_operand.vmem [shape: f32[2,1,128], index: 7, kind: input, shape index: {}]   ;;  %s6227_s8 = inlined_call_operand.vmem [shape: bf16[2,128,32], index: 8, kind: input, shape index: {}]   ;;  %s6228_s9 = inlined_call_operand.vmem [shape: f32[2,6,32], index: 9, kind: input, shape index: {}]   ;;  %s6229_s10 = inlined_call_operand.vmem [shape: bf16[32,128], index: 10, kind: input, shape index: {}]   ;;  %s6230_s11 = inlined_call_operand.vmem [shape: f32[1,128], index: 11, kind: input, shape index: {}]   ;;  %s6231_s12 = inlined_call_operand.hbm [shape: f32[1,2,128], index: 12, kind: output, shape index: {}]  }
   0x1   :  { %v5147_v0 = vld [vmem:[%s6221_s2] sm:$0xff]   ;;  %4833 = vmatprep.subr.bf16.mxu0 %v5281_v1  ;;  %4853 = vmatprep.subr.bf16.mxu1 %v5281_v1 }
   0x2   :  { %v5148_v2 = vld [vmem:[%s6219_s0] sm:$0xff]   ;;  %4834 = vmatpush3.bf16.msra.mxu0 %v5147_v0  ;;  %4835 = vmatprep.mubr.msk.bf16.mxu0 %vm5282_vm0, %v5281_v1 }
   0x3   :  { %4839 = vmatprep.subr.bf16.mxu0 %v5281_v1  ;;  %4855 = vmatprep.mubr.msk.bf16.mxu1 %vm5282_vm0, %v5281_v1 }
   0x5   :  { %4836 = vmatmul.mubr.msk.bf16.vlgmr.msra.gmra.mxu0 %vm126_vm1, %v5148_v2 }
   0x6   :  { %4843 = vmatprep.mubr.msk.bf16.mxu0 %vm5282_vm0, %v5281_v1 }
   0x7   :  { %17 = vsyncpa [#allocation3], 0  ;;  %v5149_v3 = vld [vmem:[%s6222_s3 + $0x8] sm:$0xff]   ;;  %v5150_v4 = vld [vmem:[%s6222_s3] sm:$0xff]   ;;  %vm192_vm2 = vcmask 261120   ;;  %s5284_s13 = smov 120   ;;  %v320_v26 = vlaneseq }
   0x8   :  { %4840 = vmatpush3.bf16.msra.mxu0 %v5149_v3  ;;  %v45_v6 = vld [vmem:[%s6220_s1] sm:$0xff]  ;;  %s5283_s1 = smov 104   ;;  %s5285_s14 = smov 96   ;;  %v5290_v24 = vmov 1983009808   ;;  %vm891_vm3 = vcmask 64512  }
   0x9   :  { %4841 = vmatprep.subr.bf16.mxu0 %v5281_v1  ;;  %v4622_v14 = vld [vmem:[%s6223_s4] ss:$0 sm:$0xff]  ;;  %s5286_s15 = smov 112   ;;  %s5287_s16 = smov 80   ;;  %v318_v25 = vunpack.c.l.s4 %v5290_v24  ;;  %v5421_v29 = vshrl.u32 %v320_v26, 7  ;;  %vm1359_vm4 = vcmask 1043456  }
   0xa   :  { %s5288_s17 = smov 88   ;;  %s5289_s18 = smov 72   ;;  %v5291_v32 = vmov 1934713408   ;;  %vm2048_vm5 = vcmask 195584   ;;  %vm4546_vm6 = vcmask 1041409  }
   0xb   :  { %v319_v28 = vunpack.c.0.s8 %v318_v25  ;;  %v380_v33 = vunpack.c.l.s4 %v5291_v32  ;;  %s5293_s19 = smov 56   ;;  %s5294_s20 = smov 64  }
   0xc   :  { %4842 = vmatpush3.bf16.msra.mxu0 %v5150_v4  ;;  %s5295_s21 = smov 48   ;;  %s5296_s22 = smov 40  }
   0xd   :  { %4847 = vmatprep.subr.bf16.mxu0 %v5281_v1  ;;  %v5426_v41 = vsub.s32 %v319_v28, %v5421_v29  ;;  %v381_v46 = vunpack.c.0.s8 %v380_v33  ;;  %s5297_s25 = smov 16   ;;  %s5298_s26 = smov 8  }
   0xe   :  { %s6232_s27 = smov 24  }
   0xf   :  { %v5429_v59 = vsub.s32 %v381_v46, %v5421_v29 }
  0xc5   :  { %v164_v5 = vpop.f32.mrf.mxu0 }
  0xc6   :  { %v5393_v9 = vadd.f32 %v164_v5, %v45_v6 }
  0xc7   :  { %v4837_v7 = vpop.f32.mrf.mxu0 }
  0xc9   :  { %v167_v8 = vpop.f32.mrf.mxu0 }
  0xca   :  { %v5395_v10 = vadd.f32 %v167_v8, %v45_v6 }
  0xcb   :  { %v4838_v11 = vpop.f32.mrf.mxu0 }
  0xcc   :  { %v173_v12 = vpack.c.bf16 %v5395_v10, %v5393_v9 }
  0xce   :  { %4844 = vmatmul.mubr.msk.bf16.vlgmr.msra.gmra.mxu0 %vm192_vm2, %v173_v12 }
  0xcf   :  { %4849 = vmatprep.mubr.msk.bf16.mxu0 %vm5282_vm0, %v5281_v1 }
 0x18e   :  { %v230_v13 = vpop.f32.mrf.mxu0 }
 0x18f   :  { %v231_v17 = vadd.f32 %v4622_v14, %v230_v13 }
 0x190   :  { %v4845_v15 = vpop.f32.mrf.mxu0 }
 0x192   :  { %v233_v16 = vpop.f32.mrf.mxu0 }
 0x193   :  { %v234_v18 = vadd.f32 %v4622_v14, %v233_v16 }
 0x194   :  { %v4846_v19 = vpop.f32.mrf.mxu0 }
 0x195   :  { %v5405_v20 = vpack.c.bf16 %v234_v18, %v231_v17 }
 0x197   :  { %243 = vrot.lane.b32.xlu1 %v5405_v20, %s5283_s1  ;;  %239 = vrot.lane.b32.xlu0 %v5405_v20, %s5284_s13  ;;  %v265_v39 = vshrl.u32 %v5405_v20, 16 }
 0x19b   :  { %245 = vrot.lane.b32.xlu1 %v5405_v20, %s5285_s14  ;;  %241 = vrot.lane.b32.xlu0 %v5405_v20, %s5286_s15 }
 0x19f   :  { %249 = vrot.lane.b32.xlu1 %v5405_v20, %s5287_s16  ;;  %247 = vrot.lane.b32.xlu0 %v5405_v20, %s5288_s17 }
 0x1a3   :  { %251 = vrot.lane.b32.xlu0 %v5405_v20, %s5289_s18 }
 0x209   :  { %v244_v21 = vpop.permute.xlu1 %243  ;;  %v240_v22 = vpop.permute.xlu0 %239 }
 0x20a   :  { %v266_v35 = vshrl.u32 %v240_v22, 16  ;;  %v263_v38 = vpack.i.b16 %v240_v22, %v5405_v20  ;;  %v274_v43 = vshrl.u32 %v244_v21, 16 }
 0x20c   :  { %v267_v51 = vpack.i.b16 %v266_v35, %v265_v39 }
 0x20d   :  { %v242_v23 = vpop.permute.xlu0 %241  ;;  %v246_v27 = vpop.permute.xlu1 %245 }
 0x20e   :  { %v281_v36 = vshrl.u32 %v246_v27, 16  ;;  %v273_v40 = vshrl.u32 %v242_v23, 16  ;;  %v271_v44 = vpack.i.b16 %v244_v21, %v242_v23 }
 0x210   :  { %v275_v52 = vpack.i.b16 %v274_v43, %v273_v40 }
 0x211   :  { %v248_v30 = vpop.permute.xlu0 %247  ;;  %v250_v37 = vpop.permute.xlu1 %249 }
 0x212   :  { %v282_v31 = vshrl.u32 %v248_v30, 16  ;;  %v279_v34 = vpack.i.b16 %v248_v30, %v246_v27  ;;  %v289_v47 = vshrl.u32 %v250_v37, 16 }
 0x214   :  { %v283_v45 = vpack.i.b16 %v282_v31, %v281_v36  ;;  %v315_v48 = vcombine.low %v263_v38, %v279_v34  ;;  %v316_v56 = vcombine.high %v263_v38, %v279_v34 }
 0x215   :  { %v252_v42 = vpop.permute.xlu0 %251 }
 0x216   :  { %v287_v49 = vpack.i.b16 %v252_v42, %v250_v37  ;;  %v290_v50 = vshrl.u32 %v252_v42, 16  ;;  %v449_v57 = vcombine.low %v267_v51, %v283_v45  ;;  %v450_v58 = vcombine.high %v267_v51, %v283_v45 }
 0x217   :  { %v323_v60 = vrot.slane %v315_v48, %v5426_v41  ;;  %v330_v8 = vrot.slane %v316_v56, %v5426_v41  ;;  %v5292_v51 = vmov 0  }
 0x218   :  { %v291_v53 = vpack.i.b16 %v290_v50, %v289_v47  ;;  %v331_v54 = vcombine.low %v271_v44, %v287_v49  ;;  %v332_v55 = vcombine.high %v271_v44, %v287_v49  ;;  %v457_v4 = vrot.slane %v449_v57, %v5426_v41 }
 0x219   :  { %v464_v5 = vrot.slane %v450_v58, %v5426_v41 }
 0x21a   :  { %v339_v61 = vrot.slane %v331_v54, %v5426_v41  ;;  %v465_v62 = vcombine.low %v275_v52, %v291_v53  ;;  %v466_v63 = vcombine.high %v275_v52, %v291_v53  ;;  %v346_v0 = vrot.slane %v332_v55, %v5426_v41 }
 0x21c   :  { %v377_v2 = vcombine.low %v323_v60, %v339_v61  ;;  %v378_v3 = vcombine.high %v323_v60, %v339_v61  ;;  %v473_v6 = vrot.slane %v465_v62, %v5426_v41  ;;  %v480_v7 = vrot.slane %v466_v63, %v5426_v41 }
 0x21d   :  { %v393_v17 = vcombine.low %v330_v8, %v346_v0  ;;  %v394_v18 = vcombine.high %v330_v8, %v346_v0 }
 0x21e   :  { %v385_v11 = vrot.slane %v377_v2, %v5429_v59  ;;  %v392_v12 = vrot.slane %v378_v3, %v5429_v59  ;;  %v511_v13 = vcombine.low %v457_v4, %v473_v6  ;;  %v512_v14 = vcombine.high %v457_v4, %v473_v6 }
 0x21f   :  { %v527_v15 = vcombine.low %v464_v5, %v480_v7  ;;  %v528_v16 = vcombine.high %v464_v5, %v480_v7  ;;  %v401_v31 = vrot.slane %v393_v17, %v5429_v59  ;;  %v408_v32 = vrot.slane %v394_v18, %v5429_v59 }
 0x220   :  { %v4626_v19 = vcombine.low %v385_v11, %v392_v12  ;;  %v4628_v21 = vcombine.high %v385_v11, %v392_v12  ;;  %v519_v22 = vrot.slane %v511_v13, %v5429_v59  ;;  %v526_v23 = vrot.slane %v512_v14, %v5429_v59 }
 0x221   :  { %v535_v24 = vrot.slane %v527_v15, %v5429_v59  ;;  %v542_v25 = vrot.slane %v528_v16, %v5429_v59  ;;  %v4634_v40 = vcombine.low %v401_v31, %v408_v32  ;;  %v4636_v42 = vcombine.high %v401_v31, %v408_v32 }
 0x222   :  { %v591_v26 = vrot.slane %v4626_v19, %v5426_v41  ;;  %v607_v27 = vrot.slane %v4628_v21, %v5426_v41  ;;  %v4630_v28 = vcombine.low %v519_v22, %v526_v23  ;;  %v4632_v30 = vcombine.high %v519_v22, %v526_v23 }
 0x223   :  { %v4638_v36 = vcombine.low %v535_v24, %v542_v25  ;;  %v4640_v37 = vcombine.high %v535_v24, %v542_v25  ;;  %v709_v53 = vrot.slane %v4634_v40, %v5426_v41  ;;  %v725_v54 = vrot.slane %v4636_v42, %v5426_v41 }
 0x224   :  { %v616_v33 = vcombine.high %v591_v26, %v607_v27  ;;  %v650_v34 = vrot.slane %v4630_v28, %v5426_v41  ;;  %v666_v35 = vrot.slane %v4632_v30, %v5426_v41  ;;  %v615_v45 = vcombine.low %v591_v26, %v607_v27 }
 0x225   :  { %v768_v46 = vrot.slane %v4638_v36, %v5426_v41  ;;  %v784_v47 = vrot.slane %v4640_v37, %v5426_v41  ;;  %v734_v4 = vcombine.high %v709_v53, %v725_v54  ;;  %v733_v23 = vcombine.low %v709_v53, %v725_v54 }
 0x226   :  { %v630_v38 = vrot.slane %v616_v33, %v5429_v59  ;;  %v675_v39 = vcombine.high %v650_v34, %v666_v35  ;;  %v674_v43 = vcombine.low %v650_v34, %v666_v35  ;;  %v623_v61 = vrot.slane %v615_v45, %v5429_v59 }
 0x227   :  { %v793_v63 = vcombine.high %v768_v46, %v784_v47  ;;  %v748_v14 = vrot.slane %v734_v4, %v5429_v59  ;;  %v792_v18 = vcombine.low %v768_v46, %v784_v47  ;;  %v741_v34 = vrot.slane %v733_v23, %v5429_v59 }
 0x228   :  { %v689_v44 = vrot.slane %v675_v39, %v5429_v59  ;;  %v834_v49 = vshrl.u32 %v630_v38, 16  ;;  %v682_v57 = vrot.slane %v674_v43, %v5429_v59  ;;  %v640_v58 = vcombine.high %v630_v38, %v5292_v51 }
 0x229   :  { %v822_v6 = vshrl.u32 %v623_v61, 16  ;;  %v807_v8 = vrot.slane %v793_v63, %v5429_v59  ;;  %v639_v16 = vcombine.high %v623_v61, %v5292_v51  ;;  %v870_v22 = vshrl.u32 %v748_v14, 16 }
 0x22a   :  { %v833_v48 = vpack.i.b16 %v689_v44, %v630_v38  ;;  %v835_v50 = vshrl.u32 %v689_v44, 16  ;;  %v699_v52 = vcombine.high %v689_v44, %v5292_v51  ;;  %v823_v2 = vshrl.u32 %v682_v57, 16 }
 0x22b   :  { %v840_v3 = vshrl.u32 %v640_v58, 16  ;;  %v821_v5 = vpack.i.b16 %v682_v57, %v623_v61  ;;  %v698_v13 = vcombine.high %v682_v57, %v5292_v51  ;;  %v871_v17 = vshrl.u32 %v807_v8, 16 }
 0x22c   :  { %v896_v55 = vsel %vm891_vm3, %v833_v48, 0  ;;  %v836_v56 = vpack.i.b16 %v835_v50, %v834_v49  ;;  %v841_v62 = vshrl.u32 %v699_v52, 16  ;;  %v839_v0 = vpack.i.b16 %v699_v52, %v640_v58 }
 0x22d   :  { %4848 = vmatpush3.bf16.xpose.msra.mxu0 %v896_v55  ;;  %v824_v12 = vpack.i.b16 %v823_v2, %v822_v6  ;;  %v869_v19 = vpack.i.b16 %v807_v8, %v748_v14  ;;  %v829_v21 = vshrl.u32 %v698_v13, 16  ;;  %v827_v24 = vpack.i.b16 %v698_v13, %v639_v16 }
 0x22e   :  { %v942_v60 = vsel %vm891_vm3, %v836_v56, 0  ;;  %4859 = vmatprep.subr.bf16.mxu0 %v5281_v1  ;;  %v842_v7 = vpack.i.b16 %v841_v62, %v840_v3  ;;  %v988_v11 = vsel %vm891_vm3, %v839_v0, 0  ;;  %v828_v25 = vshrl.u32 %v639_v16, 16 }
 0x22f   :  { %4854 = vmatpush3.bf16.xpose.msra.mxu1 %v942_v60  ;;  %v872_v26 = vpack.i.b16 %v871_v17, %v870_v22  ;;  %v817_v27 = vcombine.high %v807_v8, %v5292_v51  ;;  %v1080_v28 = vsel %vm891_vm3, %v869_v19, 0  ;;  %v800_v31 = vrot.slane %v792_v18, %v5429_v59 }
 0x230   :  { %4865 = vmatprep.subr.bf16.mxu1 %v5281_v1  ;;  %v1034_v15 = vsel %vm891_vm3, %v842_v7, 0  ;;  %v830_v30 = vpack.i.b16 %v829_v21, %v828_v25  ;;  %v758_v32 = vcombine.high %v748_v14, %v5292_v51  ;;  %v858_v40 = vshrl.u32 %v741_v34, 16 }
 0x231   :  { %v1126_v33 = vsel %vm891_vm3, %v872_v26, 0  ;;  %v877_v35 = vshrl.u32 %v817_v27, 16  ;;  %v859_v37 = vshrl.u32 %v800_v31, 16  ;;  %v857_v39 = vpack.i.b16 %v800_v31, %v741_v34 }
 0x232   :  { %v875_v36 = vpack.i.b16 %v817_v27, %v758_v32  ;;  %v876_v38 = vshrl.u32 %v758_v32, 16  ;;  %v816_v45 = vcombine.high %v800_v31, %v5292_v51  ;;  %v757_v47 = vcombine.high %v741_v34, %v5292_v51 }
 0x233   :  { %v860_v44 = vpack.i.b16 %v859_v37, %v858_v40 }
 0x234   :  { %4850 = vmatmul.mubr.msk.bf16.vlgmr.msra.gmra.mxu0 %vm891_vm3, %v821_v5  ;;  %v878_v42 = vpack.i.b16 %v877_v35, %v876_v38  ;;  %v1172_v43 = vsel %vm891_vm3, %v875_v36, 0  ;;  %v865_v48 = vshrl.u32 %v816_v45, 16  ;;  %v863_v49 = vpack.i.b16 %v816_v45, %v757_v47 }
 0x235   :  { %4860 = vmatpush3.bf16.xpose.msra.mxu0 %v988_v11  ;;  %4861 = vmatprep.mubr.msk.bf16.mxu0 %vm5282_vm0, %v5281_v1  ;;  %v864_v50 = vshrl.u32 %v757_v47, 16 }
 0x236   :  { %4856 = vmatmul.mubr.msk.bf16.vlgmr.msra.gmra.mxu1 %vm891_vm3, %v824_v12  ;;  %4871 = vmatprep.subr.bf16.mxu0 %v5281_v1  ;;  %v1218_v46 = vsel %vm891_vm3, %v878_v42, 0 }
 0x237   :  { %4866 = vmatpush3.bf16.xpose.msra.mxu1 %v1034_v15  ;;  %4867 = vmatprep.mubr.msk.bf16.mxu1 %vm5282_vm0, %v5281_v1  ;;  %v866_v52 = vpack.i.b16 %v865_v48, %v864_v50 }
 0x238   :  { %4877 = vmatprep.subr.bf16.mxu1 %v5281_v1 }
 0x23c   :  { %4862 = vmatmul.mubr.msk.bf16.vlgmr.msra.gmra.mxu0 %vm891_vm3, %v827_v24 }
 0x23d   :  { %4872 = vmatpush3.bf16.xpose.msra.mxu0 %v1080_v28  ;;  %4873 = vmatprep.mubr.msk.bf16.mxu0 %vm5282_vm0, %v5281_v1 }
 0x23e   :  { %4868 = vmatmul.mubr.msk.bf16.vlgmr.msra.gmra.mxu1 %vm891_vm3, %v830_v30  ;;  %4883 = vmatprep.subr.bf16.mxu0 %v5281_v1 }
 0x23f   :  { %4878 = vmatpush3.bf16.xpose.msra.mxu1 %v1126_v33  ;;  %4879 = vmatprep.mubr.msk.bf16.mxu1 %vm5282_vm0, %v5281_v1 }
 0x240   :  { %4889 = vmatprep.subr.bf16.mxu1 %v5281_v1 }
 0x244   :  { %4874 = vmatmul.mubr.msk.bf16.vlgmr.msra.gmra.mxu0 %vm891_vm3, %v857_v39 }
 0x245   :  { %4884 = vmatpush3.bf16.xpose.msra.mxu0 %v1172_v43  ;;  %4885 = vmatprep.mubr.msk.bf16.mxu0 %vm5282_vm0, %v5281_v1 }
 0x246   :  { %4880 = vmatmul.mubr.msk.bf16.vlgmr.msra.gmra.mxu1 %vm891_vm3, %v860_v44  ;;  %4895 = vmatprep.subr.bf16.mxu0 %v5281_v1 }
 0x247   :  { %4890 = vmatpush3.bf16.xpose.msra.mxu1 %v1218_v46  ;;  %4891 = vmatprep.mubr.msk.bf16.mxu1 %vm5282_vm0, %v5281_v1 }
 0x248   :  { %4901 = vmatprep.subr.bf16.mxu1 %v5281_v1 }
 0x24c   :  { %4886 = vmatmul.mubr.msk.bf16.vlgmr.msra.gmra.mxu0 %vm891_vm3, %v863_v49 }
 0x24d   :  { %4897 = vmatprep.mubr.msk.bf16.mxu0 %vm5282_vm0, %v5281_v1 }
 0x24e   :  { %4892 = vmatmul.mubr.msk.bf16.vlgmr.msra.gmra.mxu1 %vm891_vm3, %v866_v52 }
 0x24f   :  { %4903 = vmatprep.mubr.msk.bf16.mxu1 %vm5282_vm0, %v5281_v1 }
 0x2f4   :  { %v932_v53 = vpop.f32.mrf.mxu0 }
 0x2f5   :  { %v1260_v54 = vsel %vm891_vm3, %v932_v53, -inf }
 0x2f6   :  { %v978_v55 = vpop.f32.mrf.mxu1  ;;  %1261 = vmax.xlane.f32.xlu1 %v1260_v54  ;;  %v4851_v56 = vpop.f32.mrf.mxu0 }
 0x2f7   :  { %v1263_v57 = vsel %vm891_vm3, %v978_v55, -inf }
 0x2f8   :  { %1264 = vmax.xlane.f32.xlu0 %v1263_v57  ;;  %v935_v58 = vpop.f32.mrf.mxu0  ;;  %v4857_v60 = vpop.f32.mrf.mxu1 }
 0x2fa   :  { %v4852_v61 = vpop.f32.mrf.mxu0  ;;  %v981_v62 = vpop.f32.mrf.mxu1 }
 0x2fc   :  { %v4858_v63 = vpop.f32.mrf.mxu1  ;;  %v5513_v0 = vpop.f32.mrf.mxu0 }
 0x2fd   :  { %v1266_v2 = vsel %vm891_vm3, %v5513_v0, -inf }
 0x2fe   :  { %v1070_v3 = vpop.f32.mrf.mxu1  ;;  %1267 = vmax.xlane.f32.xlu0 %v1266_v2  ;;  %v4863_v4 = vpop.f32.mrf.mxu0 }
 0x2ff   :  { %v1269_v5 = vsel %vm891_vm3, %v1070_v3, -inf }
 0x300   :  { %v4869_v6 = vpop.f32.mrf.mxu1  ;;  %1270 = vmax.xlane.f32.xlu1 %v1269_v5  ;;  %v1027_v7 = vpop.f32.mrf.mxu0 }
 0x302   :  { %v4864_v8 = vpop.f32.mrf.mxu0  ;;  %v1073_v11 = vpop.f32.mrf.mxu1 }
 0x304   :  { %v4870_v12 = vpop.f32.mrf.mxu1  ;;  %v1116_v13 = vpop.f32.mrf.mxu0 }
 0x305   :  { %v1272_v14 = vsel %vm891_vm3, %v1116_v13, -inf }
 0x306   :  { %v1162_v15 = vpop.f32.mrf.mxu1  ;;  %1273 = vmax.xlane.f32.xlu0 %v1272_v14  ;;  %v4875_v16 = vpop.f32.mrf.mxu0 }
 0x307   :  { %v1275_v17 = vsel %vm891_vm3, %v1162_v15, -inf }
 0x308   :  { %v4881_v18 = vpop.f32.mrf.mxu1  ;;  %1276 = vmax.xlane.f32.xlu1 %v1275_v17  ;;  %v1119_v19 = vpop.f32.mrf.mxu0 }
 0x30a   :  { %v4876_v21 = vpop.f32.mrf.mxu0  ;;  %v1165_v22 = vpop.f32.mrf.mxu1 }
 0x30c   :  { %v4882_v23 = vpop.f32.mrf.mxu1  ;;  %v1208_v24 = vpop.f32.mrf.mxu0 }
 0x30d   :  { %v1278_v25 = vsel %vm891_vm3, %v1208_v24, -inf }
 0x30e   :  { %v1254_v26 = vpop.f32.mrf.mxu1  ;;  %1279 = vmax.xlane.f32.xlu0 %v1278_v25  ;;  %v4887_v27 = vpop.f32.mrf.mxu0 }
 0x30f   :  { %v1281_v28 = vsel %vm891_vm3, %v1254_v26, -inf }
 0x310   :  { %v4893_v30 = vpop.f32.mrf.mxu1  ;;  %1282 = vmax.xlane.f32.xlu1 %v1281_v28  ;;  %v1211_v31 = vpop.f32.mrf.mxu0 }
 0x312   :  { %v4888_v32 = vpop.f32.mrf.mxu0  ;;  %v1257_v33 = vpop.f32.mrf.mxu1 }
 0x314   :  { %v4894_v34 = vpop.f32.mrf.mxu1 }
 0x321   :  { %255 = vrot.lane.b32.xlu1 %v5405_v20, %s5293_s19 }
 0x324   :  { %253 = vrot.lane.b32.xlu0 %v5405_v20, %s5294_s20 }
 0x37f   :  { %v1262_v35 = vpop.xlane.xlu1 %1261 }
 0x380   :  { %v1284_v36 = vsub.f32 %v932_v53, %v1262_v35 }
 0x381   :  { %v1265_v37 = vpop.xlane.xlu0 %1264 }
 0x382   :  { %v1292_v38 = vmul.f32 1.442695, %v1284_v36  ;;  %v1285_v39 = vsub.f32 %v978_v55, %v1265_v37 }
 0x384   :  { %5179 = vpow2.f32 %v1292_v38  ;;  %v1294_v40 = vmul.f32 1.442695, %v1285_v39 }
 0x386   :  { %5181 = vpow2.f32 %v1294_v40 }
 0x387   :  { %v1268_v46 = vpop.xlane.xlu0 %1267 }
 0x388   :  { %v1286_v50 = vsub.f32 %v5513_v0, %v1268_v46 }
 0x389   :  { %v1271_v47 = vpop.xlane.xlu1 %1270 }
 0x38a   :  { %v1287_v48 = vsub.f32 %v1070_v3, %v1271_v47  ;;  %v1296_v56 = vmul.f32 1.442695, %v1286_v50 }
 0x38c   :  { %v1298_v53 = vmul.f32 1.442695, %v1287_v48 }
 0x38e   :  { %5183 = vpow2.f32 %v1298_v53 }
 0x38f   :  { %v1274_v49 = vpop.xlane.xlu0 %1273  ;;  %5185 = vpow2.f32 %v1296_v56 }
 0x390   :  { %v1288_v54 = vsub.f32 %v1116_v13, %v1274_v49 }
 0x391   :  { %v5526_v42 = vpop.eup %5179  ;;  %v1277_v52 = vpop.xlane.xlu1 %1276 }
 0x392   :  { %v1308_v43 = vsel %vm891_vm3, %v5526_v42, 0.0  ;;  %v1289_v57 = vsub.f32 %v1162_v15, %v1277_v52  ;;  %v1300_v60 = vmul.f32 1.442695, %v1288_v54 }
 0x393   :  { %v5530_v44 = vpop.eup %5181  ;;  %1309 = vadd.xlane.f32.xlu0 %v1308_v43 }
 0x394   :  { %v1311_v45 = vsel %vm891_vm3, %v5530_v44, 0.0  ;;  %v1302_v62 = vmul.f32 1.442695, %v1289_v57  ;;  %5187 = vpow2.f32 %v1300_v60 }
 0x395   :  { %1312 = vadd.xlane.f32.xlu1 %v1311_v45 }
 0x396   :  { %5189 = vpow2.f32 %v1302_v62 }
 0x397   :  { %v1280_v55 = vpop.xlane.xlu0 %1279 }
 0x398   :  { %v1290_v61 = vsub.f32 %v1208_v24, %v1280_v55 }
 0x399   :  { %v1283_v58 = vpop.xlane.xlu1 %1282 }
 0x39a   :  { %v1291_v63 = vsub.f32 %v1254_v26, %v1283_v58 }
 0x39b   :  { %v5539_v0 = vpop.eup %5183  ;;  %v254_v16 = vpop.permute.xlu0 %253 }
 0x39c   :  { %v1306_v2 = vmul.f32 1.442695, %v1291_v63  ;;  %v5541_v3 = vpop.eup %5185  ;;  %v1317_v4 = vsel %vm891_vm3, %v5539_v0, 0.0  ;;  %v297_v24 = vshrl.u32 %v254_v16, 16 }
 0x39d   :  { %v1314_v6 = vsel %vm891_vm3, %v5541_v3, 0.0  ;;  %v256_v17 = vpop.permute.xlu1 %255 }
 0x39e   :  { %v298_v21 = vshrl.u32 %v256_v17, 16  ;;  %v5563_v23 = vpack.i.b16 %v256_v17, %v254_v16 }
 0x3a0   :  { %v5567_v30 = vpack.i.b16 %v298_v21, %v297_v24  ;;  %v354_v31 = vrot.slane %v5563_v23, %v5426_v41 }
 0x3a1   :  { %v5545_v5 = vpop.eup %5187 }
 0x3a2   :  { %v1320_v8 = vsel %vm891_vm3, %v5545_v5, 0.0  ;;  %v488_v36 = vrot.slane %v5567_v30, %v5426_v41 }
 0x3a3   :  { %v5549_v7 = vpop.eup %5189 }
 0x3a4   :  { %v1323_v12 = vsel %vm891_vm3, %v5549_v7, 0.0 }
 0x3a6   :  { %257 = vrot.lane.b32.xlu1 %v5405_v20, %s5295_s21 }
 0x3a9   :  { %259 = vrot.lane.b32.xlu0 %v5405_v20, %s5296_s22  ;;  %v1304_v20 = vmul.f32 1.442695, %v1290_v61 }
 0x3ab   :  { %5191 = vpow2.f32 %v1304_v20 }
 0x3ac   :  { %5193 = vpow2.f32 %v1306_v2 }
 0x3b8   :  { %v5553_v11 = vpop.eup %5191 }
 0x3b9   :  { %v5557_v13 = vpop.eup %5193  ;;  %v1326_v14 = vsel %vm891_vm3, %v5553_v11, 0.0 }
 0x3ba   :  { %v1329_v15 = vsel %vm891_vm3, %v5557_v13, 0.0 }
 0x3c8   :  { %1318 = vadd.xlane.f32.xlu0 %v1317_v4 }
 0x3ca   :  { %1315 = vadd.xlane.f32.xlu1 %v1314_v6 }
 0x3cc   :  { %1321 = vadd.xlane.f32.xlu0 %v1320_v8 }
 0x3ce   :  { %1324 = vadd.xlane.f32.xlu1 %v1323_v12 }
 0x3d0   :  { %1327 = vadd.xlane.f32.xlu0 %v1326_v14 }
 0x3d2   :  { %1330 = vadd.xlane.f32.xlu1 %v1329_v15 }
 0x41c   :  { %v1310_v18 = vpop.xlane.xlu0 %1309 }
 0x41d   :  { %5195 = vrcp.f32 %v1310_v18 }
 0x41e   :  { %v1313_v19 = vpop.xlane.xlu1 %1312 }
 0x41f   :  { %5197 = vrcp.f32 %v1313_v19  ;;  %v5596_v19 = vpack.i.b16 %v5292_v51, %v5292_v51 }
 0x420   :  { %v260_v22 = vpop.permute.xlu0 %259 }
 0x421   :  { %v306_v26 = vshrl.u32 %v260_v22, 16 }
 0x422   :  { %v258_v25 = vpop.permute.xlu1 %257 }
 0x423   :  { %v5565_v27 = vpack.i.b16 %v260_v22, %v258_v25  ;;  %v305_v28 = vshrl.u32 %v258_v25, 16 }
 0x425   :  { %v5571_v32 = vpack.i.b16 %v306_v26, %v305_v28  ;;  %v369_v33 = vrot.slane %v5565_v27, %v5426_v41  ;;  %v481_v26 = vcombine.high %v5567_v30, %v5596_v19  ;;  %v362_v28 = vcombine.high %v5565_v27, %v5596_v19 }
 0x427   :  { %v409_v34 = vcombine.low %v354_v31, %v369_v33  ;;  %v410_v35 = vcombine.high %v354_v31, %v369_v33  ;;  %v503_v37 = vrot.slane %v5571_v32, %v5426_v41  ;;  %v495_v30 = vrot.slane %v481_v26, %v5426_v41 }
 0x428   :  { %v376_v27 = vrot.slane %v362_v28, %v5426_v41 }
 0x429   :  { %v417_v38 = vrot.slane %v409_v34, %v5429_v59  ;;  %v424_v39 = vrot.slane %v410_v35, %v5429_v59  ;;  %v543_v40 = vcombine.low %v488_v36, %v503_v37  ;;  %v544_v43 = vcombine.high %v488_v36, %v503_v37 }
 0x42a   :  { %v5196_v58 = vpop.eup %5195 }
 0x42b   :  { %v4627_v45 = vcombine.low %v417_v38, %v424_v39  ;;  %v4629_v46 = vcombine.high %v417_v38, %v424_v39  ;;  %v551_v47 = vrot.slane %v543_v40, %v5429_v59  ;;  %v558_v48 = vrot.slane %v544_v43, %v5429_v59 }
 0x42c   :  { %v5198_v62 = vpop.eup %5197  ;;  %v1340_v20 = vmul.f32 %v5196_v58, %v5526_v42 }
 0x42d   :  { %v598_v49 = vrot.slane %v4627_v45, %v5426_v41  ;;  %v614_v50 = vrot.slane %v4629_v46, %v5426_v41  ;;  %v4631_v52 = vcombine.low %v551_v47, %v558_v48  ;;  %v4633_v53 = vcombine.high %v551_v47, %v558_v48 }
 0x42e   :  { %v1341_v12 = vmul.f32 %v5198_v62, %v5530_v44  ;;  %v1348_v21 = vpack.c.bf16 %v1340_v20, %v1340_v20  ;;  %v496_v44 = vcombine.high %v5571_v32, %v5596_v19  ;;  %v347_v32 = vcombine.high %v5563_v23, %v5596_v19 }
 0x42f   :  { %v631_v54 = vcombine.low %v598_v49, %v614_v50  ;;  %v657_v55 = vrot.slane %v4631_v52, %v5426_v41  ;;  %v673_v56 = vrot.slane %v4633_v53, %v5426_v41 }
 0x430   :  { %v1349_v25 = vpack.c.bf16 %v1341_v12, %v1341_v12  ;;  %v510_v33 = vrot.slane %v496_v44, %v5426_v41  ;;  %v361_v34 = vrot.slane %v347_v32, %v5426_v41 }
 0x431   :  { %v638_v57 = vrot.slane %v631_v54, %v5429_v59  ;;  %v690_v60 = vcombine.low %v657_v55, %v673_v56 }
 0x432   :  { %v559_v35 = vcombine.low %v495_v30, %v510_v33  ;;  %v560_v36 = vcombine.high %v495_v30, %v510_v33  ;;  %v425_v37 = vcombine.low %v361_v34, %v376_v27  ;;  %v426_v38 = vcombine.high %v361_v34, %v376_v27 }
 0x433   :  { %v641_v61 = vcombine.high %v638_v57, %v5292_v51  ;;  %v697_v63 = vrot.slane %v690_v60, %v5429_v59  ;;  %v846_v4 = vshrl.u32 %v638_v57, 16 }
 0x434   :  { %v567_v39 = vrot.slane %v559_v35, %v5429_v59  ;;  %v574_v40 = vrot.slane %v560_v36, %v5429_v59  ;;  %v433_v23 = vrot.slane %v425_v37, %v5429_v59  ;;  %v440_v43 = vrot.slane %v426_v38, %v5429_v59 }
 0x435   :  { %v845_v2 = vpack.i.b16 %v697_v63, %v638_v57  ;;  %v847_v6 = vshrl.u32 %v697_v63, 16  ;;  %v700_v8 = vcombine.high %v697_v63, %v5292_v51  ;;  %v852_v14 = vshrl.u32 %v641_v61, 16 }
 0x436   :  { %v4639_v45 = vcombine.low %v567_v39, %v574_v40  ;;  %v4641_v46 = vcombine.high %v567_v39, %v574_v40  ;;  %v4635_v47 = vcombine.low %v433_v23, %v440_v43  ;;  %v4637_v48 = vcombine.high %v433_v23, %v440_v43 }
 0x437   :  { %v1361_v15 = vsel %vm1359_vm4, %v845_v2, 0  ;;  %v848_v16 = vpack.i.b16 %v847_v6, %v846_v4  ;;  %v851_v17 = vpack.i.b16 %v700_v8, %v641_v61  ;;  %v853_v18 = vshrl.u32 %v700_v8, 16 }
 0x438   :  { %4896 = vmatpush3.bf16.msra.mxu0 %v1361_v15  ;;  %v775_v49 = vrot.slane %v4639_v45, %v5426_v41  ;;  %v791_v50 = vrot.slane %v4641_v46, %v5426_v41  ;;  %v716_v53 = vrot.slane %v4635_v47, %v5426_v41  ;;  %v732_v54 = vrot.slane %v4637_v48, %v5426_v41 }
 0x439   :  { %v1407_v42 = vsel %vm1359_vm4, %v848_v16, 0  ;;  %4907 = vmatprep.subr.bf16.mxu0 %v5281_v1  ;;  %v854_v22 = vpack.i.b16 %v853_v18, %v852_v14  ;;  %v1453_v24 = vsel %vm1359_vm4, %v851_v17, 0 }
 0x43a   :  { %4902 = vmatpush3.bf16.msra.mxu1 %v1407_v42  ;;  %v808_v56 = vcombine.low %v775_v49, %v791_v50  ;;  %v749_v58 = vcombine.low %v716_v53, %v732_v54 }
 0x43b   :  { %4898 = vmatmul.mubr.msk.bf16.vlgmr.msra.gmra.mxu0 %vm891_vm3, %v1348_v21  ;;  %4913 = vmatprep.subr.bf16.mxu1 %v5281_v1  ;;  %v1499_v31 = vsel %vm1359_vm4, %v854_v22, 0 }
 0x43c   :  { %4908 = vmatpush3.bf16.msra.mxu0 %v1453_v24  ;;  %4909 = vmatprep.mubr.msk.bf16.mxu0 %vm5282_vm0, %v5281_v1  ;;  %v815_v61 = vrot.slane %v808_v56, %v5429_v59  ;;  %v756_v62 = vrot.slane %v749_v58, %v5429_v59 }
 0x43d   :  { %4904 = vmatmul.mubr.msk.bf16.vlgmr.msra.gmra.mxu1 %vm891_vm3, %v1349_v25  ;;  %4919 = vmatprep.subr.bf16.mxu0 %v5281_v1 }
 0x43e   :  { %4914 = vmatpush3.bf16.msra.mxu1 %v1499_v31  ;;  %4915 = vmatprep.mubr.msk.bf16.mxu1 %vm5282_vm0, %v5281_v1  ;;  %v883_v20 = vshrl.u32 %v815_v61, 16  ;;  %v882_v4 = vshrl.u32 %v756_v62, 16  ;;  %v818_v14 = vcombine.high %v815_v61, %v5292_v51  ;;  %v881_v18 = vpack.i.b16 %v815_v61, %v756_v62 }
 0x43f   :  { %4925 = vmatprep.subr.bf16.mxu1 %v5281_v1  ;;  %v759_v42 = vcombine.high %v756_v62, %v5292_v51 }
 0x440   :  { %v884_v12 = vpack.i.b16 %v883_v20, %v882_v4  ;;  %v889_v24 = vshrl.u32 %v818_v14, 16 }
 0x441   :  { %v888_v26 = vshrl.u32 %v759_v42, 16  ;;  %v887_v33 = vpack.i.b16 %v818_v14, %v759_v42 }
 0x442   :  { %v1591_v22 = vsel %vm1359_vm4, %v884_v12, 0 }
 0x443   :  { %v890_v28 = vpack.i.b16 %v889_v24, %v888_v26 }
 0x445   :  { %v1683_v27 = vsel %vm1359_vm4, %v890_v28, 0 }
 0x451   :  { %v1319_v52 = vpop.xlane.xlu0 %1318 }
 0x452   :  { %5199 = vrcp.f32 %v1319_v52 }
 0x453   :  { %v1316_v55 = vpop.xlane.xlu1 %1315 }
 0x454   :  { %5201 = vrcp.f32 %v1316_v55 }
 0x455   :  { %v1322_v57 = vpop.xlane.xlu0 %1321 }
 0x456   :  { %5203 = vrcp.f32 %v1322_v57 }
 0x457   :  { %v1325_v60 = vpop.xlane.xlu1 %1324 }
 0x458   :  { %5205 = vrcp.f32 %v1325_v60 }
 0x459   :  { %v1328_v2 = vpop.xlane.xlu0 %1327 }
 0x45b   :  { %v1331_v63 = vpop.xlane.xlu1 %1330 }
 0x45c   :  { %5207 = vrcp.f32 %v1331_v63 }
 0x45d   :  { %5209 = vrcp.f32 %v1328_v2 }
 0x45f   :  { %v5200_v6 = vpop.eup %5199 }
 0x460   :  { %v1343_v8 = vmul.f32 %v5200_v6, %v5539_v0  ;;  %v1545_v0 = vsel %vm1359_vm4, %v881_v18, 0 }
 0x461   :  { %v5202_v15 = vpop.eup %5201 }
 0x462   :  { %v1351_v16 = vpack.c.bf16 %v1343_v8, %v1343_v8  ;;  %v1342_v17 = vmul.f32 %v5202_v15, %v5541_v3 }
 0x463   :  { %v5204_v21 = vpop.eup %5203 }
 0x464   :  { %4916 = vmatmul.mubr.msk.bf16.vlgmr.msra.gmra.mxu1 %vm891_vm3, %v1351_v16  ;;  %v1350_v44 = vpack.c.bf16 %v1342_v17, %v1342_v17  ;;  %v1344_v31 = vmul.f32 %v5204_v21, %v5545_v5 }
 0x465   :  { %v5206_v25 = vpop.eup %5205  ;;  %4926 = vmatpush3.bf16.msra.mxu1 %v1591_v22  ;;  %4927 = vmatprep.mubr.msk.bf16.mxu1 %vm5282_vm0, %v5281_v1 }
 0x466   :  { %4910 = vmatmul.mubr.msk.bf16.vlgmr.msra.gmra.mxu0 %vm891_vm3, %v1350_v44  ;;  %4937 = vmatprep.subr.bf16.mxu1 %v5281_v1  ;;  %v1345_v3 = vmul.f32 %v5206_v25, %v5549_v7  ;;  %v1352_v34 = vpack.c.bf16 %v1344_v31, %v1344_v31  ;;  %v1637_v7 = vsel %vm1359_vm4, %v887_v33, 0 }
 0x467   :  { %4920 = vmatpush3.bf16.msra.mxu0 %v1545_v0  ;;  %4921 = vmatprep.mubr.msk.bf16.mxu0 %vm5282_vm0, %v5281_v1 }
 0x468   :  { %4931 = vmatprep.subr.bf16.mxu0 %v5281_v1  ;;  %v1353_v32 = vpack.c.bf16 %v1345_v3, %v1345_v3 }
 0x469   :  { %v5208_v30 = vpop.eup %5207 }
 0x46a   :  { %v5210_v35 = vpop.eup %5209  ;;  %v1347_v36 = vmul.f32 %v5208_v30, %v5557_v13  ;;  %v5151_v13 = vld [vmem:[%s6224_s5 + $0x8] sm:$0xff]  }
 0x46b   :  { %v1346_v5 = vmul.f32 %v5210_v35, %v5553_v11 }
 0x46c   :  { %4928 = vmatmul.mubr.msk.bf16.vlgmr.msra.gmra.mxu1 %vm891_vm3, %v1353_v32  ;;  %v1355_v37 = vpack.c.bf16 %v1347_v36, %v1347_v36 }
 0x46d   :  { %4938 = vmatpush3.bf16.msra.mxu1 %v1683_v27  ;;  %4939 = vmatprep.mubr.msk.bf16.mxu1 %vm5282_vm0, %v5281_v1  ;;  %v1354_v38 = vpack.c.bf16 %v1346_v5, %v1346_v5 }
 0x46e   :  { %4922 = vmatmul.mubr.msk.bf16.vlgmr.msra.gmra.mxu0 %vm891_vm3, %v1352_v34  ;;  %4951 = vmatprep.subr.bf16.mxu1 %v5281_v1 }
 0x46f   :  { %4932 = vmatpush3.bf16.msra.mxu0 %v1637_v7  ;;  %4933 = vmatprep.mubr.msk.bf16.mxu0 %vm5282_vm0, %v5281_v1 }
 0x470   :  { %4943 = vmatprep.subr.bf16.mxu0 %v5281_v1 }
 0x474   :  { %4940 = vmatmul.mubr.msk.bf16.vlgmr.msra.gmra.mxu1 %vm891_vm3, %v1355_v37 }
 0x475   :  { %4955 = vmatprep.mubr.msk.bf16.mxu1 %vm5282_vm0, %v5281_v1 }
 0x476   :  { %4934 = vmatmul.mubr.msk.bf16.vlgmr.msra.gmra.mxu0 %vm891_vm3, %v1354_v38 }
 0x477   :  { %4947 = vmatprep.mubr.msk.bf16.mxu0 %vm5282_vm0, %v5281_v1  ;;  %4944 = vmatpush3.bf16.msra.mxu0 %v5151_v13 }
 0x478   :  { %4945 = vmatprep.subr.bf16.mxu0 %v5281_v1 }
 0x4fb   :  { %v1397_v11 = vpop.f32.mrf.mxu0 }
 0x4fc   :  { %v1725_v49 = vpack.c.bf16 %v1397_v11, %v1397_v11 }
 0x4fd   :  { %v4899_v39 = vpop.f32.mrf.mxu0  ;;  %v1443_v40 = vpop.f32.mrf.mxu1 }
 0x4fe   :  { %v1759_v50 = vpack.c.bf16 %v1443_v40, %v1443_v40  ;;  %v1732_v60 = vrot.slane %v1725_v49, %v5426_v41 }
 0x4ff   :  { %v1400_v23 = vpop.f32.mrf.mxu0  ;;  %v4905_v43 = vpop.f32.mrf.mxu1 }
 0x500   :  { %v1766_v61 = vrot.slane %v1759_v50, %v5426_v41 }
 0x501   :  { %v4900_v45 = vpop.f32.mrf.mxu0  ;;  %v1446_v46 = vpop.f32.mrf.mxu1 }
 0x503   :  { %v4906_v47 = vpop.f32.mrf.mxu1 }
 0x524   :  { %v1535_v48 = vpop.f32.mrf.mxu1 }
 0x525   :  { %v1767_v52 = vpack.c.bf16 %v1535_v48, %v1535_v48 }
 0x526   :  { %v1489_v53 = vpop.f32.mrf.mxu0  ;;  %v4917_v54 = vpop.f32.mrf.mxu1 }
 0x527   :  { %v1774_v55 = vrot.slane %v1767_v52, %v5426_v41  ;;  %v1733_v56 = vpack.c.bf16 %v1489_v53, %v1489_v53 }
 0x528   :  { %v4911_v57 = vpop.f32.mrf.mxu0  ;;  %v1538_v58 = vpop.f32.mrf.mxu1 }
 0x529   :  { %v1740_v62 = vrot.slane %v1733_v56, %v5426_v41  ;;  %v1775_v2 = vcombine.low %v1766_v61, %v1774_v55  ;;  %v1776_v8 = vcombine.high %v1766_v61, %v1774_v55 }
 0x52a   :  { %v1492_v63 = vpop.f32.mrf.mxu0  ;;  %v4918_v20 = vpop.f32.mrf.mxu1 }
 0x52b   :  { %v1741_v4 = vcombine.low %v1732_v60, %v1740_v62  ;;  %v1742_v6 = vcombine.high %v1732_v60, %v1740_v62  ;;  %v1783_v42 = vrot.slane %v1775_v2, %v5429_v59  ;;  %v1790_v21 = vrot.slane %v1776_v8, %v5429_v59 }
 0x52c   :  { %v4912_v12 = vpop.f32.mrf.mxu0  ;;  %v1627_v14 = vpop.f32.mrf.mxu1 }
 0x52d   :  { %v1749_v15 = vrot.slane %v1741_v4, %v5429_v59  ;;  %v1756_v16 = vrot.slane %v1742_v6, %v5429_v59  ;;  %v1791_v26 = vcombine.high %v1783_v42, %v5292_v51  ;;  %v1827_v28 = vpack.c.bf16 %v1627_v14, %v1627_v14 }
 0x52e   :  { %v1581_v17 = vpop.f32.mrf.mxu0  ;;  %v4929_v18 = vpop.f32.mrf.mxu1  ;;  %v1792_v31 = vcombine.high %v1790_v21, %v5292_v51  ;;  %v1866_v32 = vshrl.u32 %v1783_v42, 16  ;;  %v1882_v34 = vshrl.u32 %v1790_v21, 16 }
 0x52f   :  { %v1757_v24 = vcombine.high %v1749_v15, %v5292_v51  ;;  %v1758_v25 = vcombine.high %v1756_v16, %v5292_v51  ;;  %v1793_v33 = vpack.c.bf16 %v1581_v17, %v1581_v17  ;;  %v1865_v35 = vshrl.u32 %v1749_v15, 16 }
 0x530   :  { %v4923_v22 = vpop.f32.mrf.mxu0  ;;  %v1630_v44 = vpop.f32.mrf.mxu1  ;;  %v1881_v7 = vshrl.u32 %v1756_v16, 16  ;;  %v1874_v40 = vshrl.u32 %v1791_v26, 16  ;;  %v1834_v23 = vrot.slane %v1827_v28, %v5426_v41  ;;  %v1890_v46 = vshrl.u32 %v1792_v31, 16 }
 0x531   :  { %v1871_v5 = vpack.i.b16 %v1791_v26, %v1757_v24  ;;  %v1873_v37 = vshrl.u32 %v1757_v24, 16  ;;  %v1887_v38 = vpack.i.b16 %v1792_v31, %v1758_v25  ;;  %v1889_v13 = vshrl.u32 %v1758_v25, 16 }
 0x532   :  { %v1584_v0 = vpop.f32.mrf.mxu0  ;;  %v4930_v3 = vpop.f32.mrf.mxu1  ;;  %v1863_v47 = vpack.i.b16 %v1783_v42, %v1749_v15  ;;  %v1879_v48 = vpack.i.b16 %v1790_v21, %v1756_v16  ;;  %v1800_v49 = vrot.slane %v1793_v33, %v5426_v41  ;;  %v1867_v53 = vpack.i.b16 %v1866_v32, %v1865_v35 }
 0x533   :  { %v1875_v57 = vpack.i.b16 %v1874_v40, %v1873_v37  ;;  %v1883_v58 = vpack.i.b16 %v1882_v34, %v1881_v7  ;;  %v1891_v60 = vpack.i.b16 %v1890_v46, %v1889_v13  ;;  %v1933_v63 = vcombine.low %v1871_v5, %v1887_v38 }
 0x534   :  { %v4924_v30 = vpop.f32.mrf.mxu0  ;;  %v1719_v27 = vpop.f32.mrf.mxu1  ;;  %v1925_v14 = vcombine.low %v1863_v47, %v1879_v48  ;;  %v5152_v48 = vld [vmem:[%s6224_s5] sm:$0xff]  }
 0x535   :  { %v1835_v36 = vpack.c.bf16 %v1719_v27, %v1719_v27  ;;  %v1975_v17 = vcombine.low %v1867_v53, %v1883_v58  ;;  %v1940_v21 = vrot.slane %v1933_v63, %v5426_v41  ;;  %v1983_v22 = vcombine.low %v1875_v57, %v1891_v60  ;;  %4946 = vmatpush3.bf16.msra.mxu0 %v5152_v48 }
 0x536   :  { %v1673_v11 = vpop.f32.mrf.mxu0  ;;  %v4941_v39 = vpop.f32.mrf.mxu1  ;;  %v1932_v37 = vrot.slane %v1925_v14, %v5426_v41  ;;  %4959 = vmatprep.subr.bf16.mxu0 %v5281_v1 }
 0x537   :  { %v1842_v43 = vrot.slane %v1835_v36, %v5426_v41  ;;  %v1801_v45 = vpack.c.bf16 %v1673_v11, %v1673_v11  ;;  %v1990_v11 = vrot.slane %v1983_v22, %v5426_v41  ;;  %v2053_v22 = vsub.s32 0, %v5421_v29 }
 0x538   :  { %v4935_v50 = vpop.f32.mrf.mxu0  ;;  %v1722_v52 = vpop.f32.mrf.mxu1 }
 0x539   :  { %v1843_v54 = vcombine.low %v1834_v23, %v1842_v43  ;;  %v1844_v55 = vcombine.high %v1834_v23, %v1842_v43  ;;  %v1808_v56 = vrot.slane %v1801_v45, %v5426_v41  ;;  %v1957_v43 = vcombine.low %v1932_v37, %v1940_v21  ;;  %v5156_v37 = vld [vmem:[%s6227_s8 + $0x30] sm:$0xff]  }
 0x53a   :  { %v1676_v61 = vpop.f32.mrf.mxu0  ;;  %v4942_v62 = vpop.f32.mrf.mxu1  ;;  %v1982_v45 = vrot.slane %v1975_v17, %v5426_v41 }
 0x53b   :  { %v1851_v20 = vrot.slane %v1843_v54, %v5429_v59  ;;  %v1858_v2 = vrot.slane %v1844_v55, %v5429_v59  ;;  %v1809_v4 = vcombine.low %v1800_v49, %v1808_v56  ;;  %v1810_v6 = vcombine.high %v1800_v49, %v1808_v56 }
 0x53c   :  { %v4936_v8 = vpop.f32.mrf.mxu0  ;;  %v2007_v52 = vcombine.low %v1982_v45, %v1990_v11  ;;  %v1964_v53 = vrot.slane %v1957_v43, %v5429_v59  ;;  %v5159_v11 = vld [vmem:[%s6227_s8 + $0x18] sm:$0xff]  }
 0x53d   :  { %v1859_v12 = vcombine.high %v1851_v20, %v5292_v51  ;;  %v1817_v15 = vrot.slane %v1809_v4, %v5429_v59  ;;  %v1824_v16 = vrot.slane %v1810_v6, %v5429_v59  ;;  %v1860_v18 = vcombine.high %v1858_v2, %v5292_v51 }
 0x53e   :  { %v1898_v42 = vshrl.u32 %v1851_v20, 16  ;;  %v1914_v26 = vshrl.u32 %v1858_v2, 16  ;;  %v2014_v57 = vrot.slane %v2007_v52, %v5429_v59 }
 0x53f   :  { %v1825_v44 = vcombine.high %v1817_v15, %v5292_v51  ;;  %v1826_v24 = vcombine.high %v1824_v16, %v5292_v51  ;;  %v1895_v25 = vpack.i.b16 %v1851_v20, %v1817_v15  ;;  %v1897_v0 = vshrl.u32 %v1817_v15, 16 }
 0x540   :  { %v1906_v3 = vshrl.u32 %v1859_v12, 16  ;;  %v1911_v28 = vpack.i.b16 %v1858_v2, %v1824_v16  ;;  %v1913_v31 = vshrl.u32 %v1824_v16, 16  ;;  %v1922_v34 = vshrl.u32 %v1860_v18, 16 }
 0x541   :  { %v1899_v32 = vpack.i.b16 %v1898_v42, %v1897_v0  ;;  %v1903_v33 = vpack.i.b16 %v1859_v12, %v1825_v44  ;;  %v1905_v30 = vshrl.u32 %v1825_v44, 16  ;;  %v1919_v27 = vpack.i.b16 %v1860_v18, %v1826_v24  ;;  %v5724_v44 = vld [vmem:[%s6228_s9] sm:$0x3f] }
 0x542   :  { %v1915_v35 = vpack.i.b16 %v1914_v26, %v1913_v31  ;;  %v1921_v7 = vshrl.u32 %v1826_v24, 16  ;;  %v1941_v36 = vcombine.low %v1895_v25, %v1911_v28  ;;  %v2054_v24 = vrot.slane %v5724_v44, %v2053_v22 }
 0x543   :  { %v1907_v5 = vpack.i.b16 %v1906_v3, %v1905_v30  ;;  %v1949_v38 = vcombine.low %v1903_v33, %v1919_v27 }
 0x544   :  { %v1923_v13 = vpack.i.b16 %v1922_v34, %v1921_v7  ;;  %v1991_v39 = vcombine.low %v1899_v32, %v1915_v35  ;;  %v1948_v40 = vrot.slane %v1941_v36, %v5426_v41 }
 0x545   :  { %v1956_v23 = vrot.slane %v1949_v38, %v5426_v41  ;;  %v5157_v38 = vld [vmem:[%s6227_s8 + $0x28] sm:$0xff]  }
 0x546   :  { %v1999_v46 = vcombine.low %v1907_v5, %v1923_v13  ;;  %v1998_v49 = vrot.slane %v1991_v39, %v5426_v41  ;;  %v5154_v5 = vld [vmem:[%s6225_s6] sm:$0xff]  }
 0x547   :  { %v1965_v47 = vcombine.low %v1948_v40, %v1956_v23  ;;  %v5158_v13 = vld [vmem:[%s6227_s8 + $0x20] sm:$0xff]  }
 0x548   :  { %v2006_v50 = vrot.slane %v1999_v46, %v5426_v41 }
 0x549   :  { %v1972_v54 = vrot.slane %v1965_v47, %v5429_v59 }
 0x54a   :  { %v2015_v55 = vcombine.low %v1998_v49, %v2006_v50 }
 0x54b   :  { %v1973_v56 = vcombine.low %v1964_v53, %v1972_v54  ;;  %v1974_v60 = vcombine.high %v1964_v53, %v1972_v54 }
 0x54c   :  { %v2022_v58 = vrot.slane %v2015_v55, %v5429_v59 }
 0x54d   :  { %v2028_v63 = vshrl.u32 %v1973_v56, 16  ;;  %v2034_v12 = vshrl.u32 %v1974_v60, 16 }
 0x54e   :  { %v2024_v61 = vcombine.high %v2014_v57, %v2022_v58  ;;  %v2023_v62 = vcombine.low %v2014_v57, %v2022_v58 }
 0x550   :  { %v2033_v20 = vpack.i.b16 %v2024_v61, %v1974_v60  ;;  %v2029_v2 = vshrl.u32 %v2023_v62, 16  ;;  %v2035_v4 = vshrl.u32 %v2024_v61, 16  ;;  %v2027_v6 = vpack.i.b16 %v2023_v62, %v1973_v56 }
 0x551   :  { %v2145_v56 = vsub.s32 1, %v5421_v29  ;;  %v2151_v62 = vsub.s32 2, %v5421_v29 }
 0x552   :  { %2039 = vrot.lane.b32.xlu1 %v2033_v20, %s5297_s25  ;;  %v2030_v8 = vpack.i.b16 %v2029_v2, %v2028_v63  ;;  %v2036_v14 = vpack.i.b16 %v2035_v4, %v2034_v12 }
 0x553   :  { %v2146_v61 = vrot.slane %v5724_v44, %v2145_v56 }
 0x554   :  { %2037 = vrot.lane.b32.xlu0 %v2030_v8, %s5298_s26 }
 0x556   :  { %2041 = vrot.lane.b32.xlu1 %v2036_v14, %s6232_s27 }
 0x5c4   :  { %v2040_v15 = vpop.permute.xlu1 %2039 }
 0x5c6   :  { %v2038_v16 = vpop.permute.xlu0 %2037 }
 0x5c7   :  { %v2045_v17 = vsel %vm891_vm3, %v2027_v6, %v2038_v16  ;;  %v2152_v6 = vrot.slane %v5724_v44, %v2151_v62  ;;  %v5160_v16 = vld [vmem:[%s6227_s8 + $0x10] sm:$0xff]  }
 0x5c8   :  { %v2042_v18 = vpop.permute.xlu1 %2041  ;;  %v2047_v42 = vsel %vm126_vm1, %v2045_v17, %v2040_v15  ;;  %v5161_v17 = vld [vmem:[%s6227_s8 + $0x8] sm:$0xff]  }
 0x5c9   :  { %v2050_v21 = vsel %vm2048_vm5, %v2047_v42, %v2042_v18  ;;  %v5162_v18 = vld [vmem:[%s6227_s8] sm:$0xff]  }
 0x5ca   :  { %4948 = vmatmul.mubr.msk.bf16.vlgmr.msra.gmra.mxu0 %vm192_vm2, %v2050_v21  ;;  %v4661_v42 = vld [vmem:[%s6226_s7] ss:$0 sm:$0xff] }
 0x5cb   :  { %4975 = vmatprep.mubr.msk.bf16.mxu0 %vm5282_vm0, %v5281_v1 }
 0x68a   :  { %v2103_v25 = vpop.f32.mrf.mxu0 }
 0x68b   :  { %v2104_v0 = vadd.f32 %v2103_v25, %v2054_v24 }
 0x68c   :  { %v4949_v3 = vpop.f32.mrf.mxu0 }
 0x68d   :  { %v2110_v26 = vadd.f32 %v2104_v0, %v5393_v9  ;;  %v5153_v9 = vld [vmem:[%s6225_s6 + $0x8] sm:$0xff]  }
 0x68e   :  { %v2106_v28 = vpop.f32.mrf.mxu0  ;;  %4952 = vmatpush3.bf16.msra.mxu1 %v5153_v9 }
 0x68f   :  { %v2107_v31 = vadd.f32 %v2106_v28, %v2054_v24  ;;  %v2112_v32 = vsel %vm192_vm2, %v2110_v26, 0.0  ;;  %v2121_v33 = vmul.f32 %v2110_v26, %v2110_v26  ;;  %4953 = vmatprep.subr.bf16.mxu1 %v5281_v1 }
 0x690   :  { %2113 = vadd.xlane.f32.xlu0 %v2112_v32  ;;  %v4950_v30 = vpop.f32.mrf.mxu0 }
 0x691   :  { %v2111_v27 = vadd.f32 %v2107_v31, %v5395_v10  ;;  %v2123_v34 = vsel %vm192_vm2, %v2121_v33, 0.0  ;;  %v5155_v10 = vld [vmem:[%s6227_s8 + $0x38] sm:$0xff]   ;;  %v2223_v33 = vsub.s32 3, %v5421_v29 }
 0x692   :  { %4954 = vmatpush3.bf16.msra.mxu1 %v5154_v5  ;;  %4960 = vmatpush3.bf16.msra.mxu0 %v5155_v10 }
 0x693   :  { %v2115_v35 = vsel %vm192_vm2, %v2111_v27, 0.0  ;;  %v2122_v7 = vmul.f32 %v2111_v27, %v2111_v27  ;;  %4979 = vmatprep.subr.bf16.mxu1 %v5281_v1  ;;  %4961 = vmatprep.subr.bf16.mxu0 %v5281_v1  ;;  %v2224_v30 = vrot.slane %v5724_v44, %v2223_v33 }
 0x694   :  { %2124 = vadd.xlane.f32.xlu0 %v2123_v34  ;;  %2116 = vadd.xlane.f32.xlu1 %v2115_v35 }
 0x695   :  { %v2126_v36 = vsel %vm192_vm2, %v2122_v7, 0.0 }
 0x696   :  { %4962 = vmatpush3.bf16.msra.mxu0 %v5156_v37 }
 0x697   :  { %4963 = vmatprep.subr.bf16.mxu0 %v5281_v1 }
 0x698   :  { %2127 = vadd.xlane.f32.xlu0 %v2126_v36 }
 0x69a   :  { %4964 = vmatpush3.bf16.msra.mxu0 %v5157_v38 }
 0x69b   :  { %4965 = vmatprep.subr.bf16.mxu0 %v5281_v1 }
 0x69e   :  { %4966 = vmatpush3.bf16.msra.mxu0 %v5158_v13 }
 0x69f   :  { %4967 = vmatprep.subr.bf16.mxu0 %v5281_v1 }
 0x6a2   :  { %4968 = vmatpush3.bf16.msra.mxu0 %v5159_v11 }
 0x6a3   :  { %4969 = vmatprep.subr.bf16.mxu0 %v5281_v1 }
 0x6a6   :  { %4970 = vmatpush3.bf16.msra.mxu0 %v5160_v16 }
 0x6a7   :  { %4971 = vmatprep.subr.bf16.mxu0 %v5281_v1 }
 0x6aa   :  { %4972 = vmatpush3.bf16.msra.mxu0 %v5161_v17 }
 0x6ab   :  { %4973 = vmatprep.subr.bf16.mxu0 %v5281_v1 }
 0x6ae   :  { %4974 = vmatpush3.bf16.msra.mxu0 %v5162_v18 }
 0x6af   :  { %5005 = vmatprep.subr.bf16.mxu0 %v5281_v1 }
 0x719   :  { %v2114_v39 = vpop.xlane.xlu0 %2113 }
 0x71a   :  { %v2119_v40 = vmul.f32 0.03125, %v2114_v39 }
 0x71c   :  { %v2131_v45 = vmul.f32 %v2119_v40, %v2119_v40  ;;  %v2135_v57 = vsub.f32 %v2110_v26, %v2119_v40 }
 0x71d   :  { %v2125_v23 = vpop.xlane.xlu0 %2124  ;;  %v2117_v43 = vpop.xlane.xlu1 %2116 }
 0x71e   :  { %v2129_v46 = vmul.f32 0.03125, %v2125_v23  ;;  %v2120_v47 = vmul.f32 0.03125, %v2117_v43  ;;  %v5163_v23 = vld [vmem:[%s6222_s3 + $0x18] sm:$0xff]   ;;  %v5164_v43 = vld [vmem:[%s6222_s3 + $0x10] sm:$0xff]  }
 0x720   :  { %v2133_v48 = vsub.f32 %v2129_v46, %v2131_v45  ;;  %v2132_v52 = vmul.f32 %v2120_v47, %v2120_v47  ;;  %v2136_v63 = vsub.f32 %v2111_v27, %v2120_v47 }
 0x721   :  { %v2128_v49 = vpop.xlane.xlu0 %2127 }
 0x722   :  { %v2137_v50 = vadd.f32 1e-05, %v2133_v48  ;;  %v2130_v53 = vmul.f32 0.03125, %v2128_v49 }
 0x724   :  { %5211 = vrsqrt.f32 %v2137_v50  ;;  %v2134_v54 = vsub.f32 %v2130_v53, %v2132_v52 }
 0x726   :  { %v2138_v55 = vadd.f32 1e-05, %v2134_v54 }
 0x728   :  { %5213 = vrsqrt.f32 %v2138_v55 }
 0x731   :  { %v5212_v58 = vpop.eup %5211 }
 0x732   :  { %v2141_v60 = vmul.f32 %v5212_v58, %v2135_v57 }
 0x734   :  { %v2147_v4 = vmul.f32 %v2146_v61, %v2141_v60 }
 0x735   :  { %v5214_v20 = vpop.eup %5213 }
 0x736   :  { %v2142_v2 = vmul.f32 %v5214_v20, %v2136_v63  ;;  %v2153_v12 = vadd.f32 %v2152_v6, %v2147_v4  ;;  %v2348_v63 = vsub.s32 4, %v5421_v29 }
 0x738   :  { %v2148_v8 = vmul.f32 %v2146_v61, %v2142_v2 }
 0x73a   :  { %v2154_v14 = vadd.f32 %v2152_v6, %v2148_v8  ;;  %v2349_v6 = vrot.slane %v5724_v44, %v2348_v63  ;;  %v2354_v8 = vsub.s32 5, %v5421_v29  ;;  %v4724_v29 = vld [vmem:[%s6230_s11] ss:$0 sm:$0xff] }
 0x73c   :  { %v2155_v15 = vpack.c.bf16 %v2154_v14, %v2153_v12  ;;  %v2355_v17 = vrot.slane %v5724_v44, %v2354_v8 }
 0x73e   :  { %4956 = vmatmul.mubr.msk.bf16.vlgmr.msra.gmra.mxu1 %vm192_vm2, %v2155_v15 }
 0x73f   :  { %4983 = vmatprep.mubr.msk.bf16.mxu1 %vm5282_vm0, %v5281_v1  ;;  %4980 = vmatpush3.bf16.msra.mxu1 %v5163_v23 }
 0x740   :  { %4981 = vmatprep.subr.bf16.mxu1 %v5281_v1 }
 0x743   :  { %4982 = vmatpush3.bf16.msra.mxu1 %v5164_v43 }
 0x744   :  { %4987 = vmatprep.subr.bf16.mxu1 %v5281_v1 }
 0x7fe   :  { %v2211_v21 = vpop.f32.mrf.mxu1 }
 0x7ff   :  { %v2212_v25 = vadd.f32 %v4661_v42, %v2211_v21 }
 0x800   :  { %v4957_v24 = vpop.f32.mrf.mxu1 }
 0x801   :  { %v2218_v28 = vmax.f32 %v2212_v25, 0.0 }
 0x802   :  { %v2214_v0 = vpop.f32.mrf.mxu1 }
 0x803   :  { %v2215_v3 = vadd.f32 %v4661_v42, %v2214_v0  ;;  %v4673_v0 = vld [vmem:[%s6223_s4 + $0x1] ss:$0 sm:$0xff] }
 0x804   :  { %v4958_v26 = vpop.f32.mrf.mxu1 }
 0x805   :  { %v2219_v31 = vmax.f32 %v2215_v3, 0.0 }
 0x807   :  { %v2220_v32 = vpack.c.bf16 %v2219_v31, %v2218_v28 }
 0x809   :  { %4976 = vmatmul.mubr.bf16.vlgmr.msra.gmra.mxu0 %v2220_v32 }
 0x80a   :  { %5007 = vmatprep.mubr.msk.bf16.mxu0 %vm5282_vm0, %v5281_v1 }
 0x8c9   :  { %v2307_v27 = vpop.f32.mrf.mxu0 }
 0x8ca   :  { %v2308_v34 = vadd.f32 %v2307_v27, %v2224_v30 }
 0x8cb   :  { %v4977_v35 = vpop.f32.mrf.mxu0 }
 0x8cc   :  { %v2314_v7 = vadd.f32 %v2308_v34, %v2153_v12 }
 0x8cd   :  { %v2310_v36 = vpop.f32.mrf.mxu0 }
 0x8ce   :  { %v2311_v9 = vadd.f32 %v2310_v36, %v2224_v30  ;;  %v2316_v5 = vsel %vm192_vm2, %v2314_v7, 0.0  ;;  %v2324_v10 = vmul.f32 %v2314_v7, %v2314_v7 }
 0x8cf   :  { %2317 = vadd.xlane.f32.xlu1 %v2316_v5  ;;  %v4978_v37 = vpop.f32.mrf.mxu0 }
 0x8d0   :  { %v2315_v38 = vadd.f32 %v2311_v9, %v2154_v14  ;;  %v2326_v13 = vsel %vm192_vm2, %v2324_v10, 0.0 }
 0x8d2   :  { %v2319_v11 = vsel %vm192_vm2, %v2315_v38, 0.0  ;;  %v2325_v39 = vmul.f32 %v2315_v38, %v2315_v38 }
 0x8d3   :  { %2327 = vadd.xlane.f32.xlu1 %v2326_v13  ;;  %2320 = vadd.xlane.f32.xlu0 %v2319_v11 }
 0x8d4   :  { %v2329_v40 = vsel %vm192_vm2, %v2325_v39, 0.0 }
 0x8d7   :  { %2330 = vadd.xlane.f32.xlu0 %v2329_v40 }
 0x958   :  { %v2318_v45 = vpop.xlane.xlu1 %2317 }
 0x959   :  { %v2322_v46 = vmul.f32 0.03125, %v2318_v45 }
 0x95b   :  { %v2334_v49 = vmul.f32 %v2322_v46, %v2322_v46  ;;  %v2338_v20 = vsub.f32 %v2314_v7, %v2322_v46 }
 0x95c   :  { %v2328_v47 = vpop.xlane.xlu1 %2327  ;;  %v2321_v48 = vpop.xlane.xlu0 %2320 }
 0x95d   :  { %v2332_v50 = vmul.f32 0.03125, %v2328_v47  ;;  %v2323_v52 = vmul.f32 0.03125, %v2321_v48 }
 0x95f   :  { %v2336_v53 = vsub.f32 %v2332_v50, %v2334_v49  ;;  %v2335_v57 = vmul.f32 %v2323_v52, %v2323_v52  ;;  %v2339_v12 = vsub.f32 %v2315_v38, %v2323_v52 }
 0x960   :  { %v2331_v54 = vpop.xlane.xlu0 %2330 }
 0x961   :  { %v2340_v55 = vadd.f32 1e-05, %v2336_v53  ;;  %v2333_v58 = vmul.f32 0.03125, %v2331_v54 }
 0x963   :  { %5215 = vrsqrt.f32 %v2340_v55  ;;  %v2337_v60 = vsub.f32 %v2333_v58, %v2335_v57 }
 0x965   :  { %v2341_v61 = vadd.f32 1e-05, %v2337_v60 }
 0x967   :  { %5217 = vrsqrt.f32 %v2341_v61 }
 0x970   :  { %v5216_v2 = vpop.eup %5215 }
 0x971   :  { %v2344_v4 = vmul.f32 %v5216_v2, %v2338_v20 }
 0x973   :  { %v2350_v16 = vmul.f32 %v2349_v6, %v2344_v4 }
 0x974   :  { %v5218_v14 = vpop.eup %5217 }
 0x975   :  { %v2345_v15 = vmul.f32 %v5218_v14, %v2339_v12  ;;  %v5815_v42 = vadd.f32 %v2355_v17, %v2350_v16 }
 0x977   :  { %v2351_v18 = vmul.f32 %v2349_v6, %v2345_v15 }
 0x979   :  { %v5817_v21 = vadd.f32 %v2355_v17, %v2351_v18 }
 0x97b   :  { %v2358_v24 = vpack.c.bf16 %v5817_v21, %v5815_v42 }
 0x97d   :  { %4984 = vmatmul.mubr.msk.bf16.vlgmr.msra.gmra.mxu1 %vm192_vm2, %v2358_v24 }
 0x97e   :  { %4989 = vmatprep.mubr.msk.bf16.mxu1 %vm5282_vm0, %v5281_v1 }
 0xa3d   :  { %v2414_v25 = vpop.f32.mrf.mxu1 }
 0xa3e   :  { %v2415_v26 = vadd.f32 %v4673_v0, %v2414_v25 }
 0xa3f   :  { %v4985_v3 = vpop.f32.mrf.mxu1 }
 0xa41   :  { %v2417_v44 = vpop.f32.mrf.mxu1 }
 0xa42   :  { %v2418_v28 = vadd.f32 %v4673_v0, %v2417_v44 }
 0xa43   :  { %v4986_v31 = vpop.f32.mrf.mxu1 }
 0xa44   :  { %v5827_v32 = vpack.c.bf16 %v2418_v28, %v2415_v26 }
 0xa46   :  { %2425 = vrot.lane.b32.xlu0 %v5827_v32, %s5286_s15  ;;  %2423 = vrot.lane.b32.xlu1 %v5827_v32, %s5284_s13  ;;  %v2449_v13 = vshrl.u32 %v5827_v32, 16 }
 0xa4a   :  { %2431 = vrot.lane.b32.xlu0 %v5827_v32, %s5288_s17  ;;  %2427 = vrot.lane.b32.xlu1 %v5827_v32, %s5283_s1 }
 0xa4e   :  { %2435 = vrot.lane.b32.xlu0 %v5827_v32, %s5289_s18  ;;  %2429 = vrot.lane.b32.xlu1 %v5827_v32, %s5285_s14 }
 0xa52   :  { %2433 = vrot.lane.b32.xlu1 %v5827_v32, %s5287_s16  ;;  %s5300_s16 = smov [#allocation2]  }
 0xab8   :  { %v2426_v30 = vpop.permute.xlu0 %2425  ;;  %v2424_v27 = vpop.permute.xlu1 %2423 }
 0xab9   :  { %v2447_v5 = vpack.i.b16 %v2424_v27, %v5827_v32  ;;  %v2450_v10 = vshrl.u32 %v2424_v27, 16  ;;  %v2457_v40 = vshrl.u32 %v2426_v30, 16 }
 0xabb   :  { %v2451_v50 = vpack.i.b16 %v2450_v10, %v2449_v13 }
 0xabc   :  { %v2428_v34 = vpop.permute.xlu1 %2427  ;;  %v2432_v35 = vpop.permute.xlu0 %2431 }
 0xabd   :  { %v2466_v37 = vshrl.u32 %v2432_v35, 16  ;;  %v2458_v11 = vshrl.u32 %v2428_v34, 16  ;;  %v2455_v46 = vpack.i.b16 %v2428_v34, %v2426_v30 }
 0xabf   :  { %v2459_v52 = vpack.i.b16 %v2458_v11, %v2457_v40 }
 0xac0   :  { %v2430_v7 = vpop.permute.xlu1 %2429  ;;  %v2436_v38 = vpop.permute.xlu0 %2435 }
 0xac1   :  { %v2463_v36 = vpack.i.b16 %v2432_v35, %v2430_v7  ;;  %v2465_v9 = vshrl.u32 %v2430_v7, 16  ;;  %v2474_v47 = vshrl.u32 %v2436_v38, 16 }
 0xac3   :  { %v2467_v23 = vpack.i.b16 %v2466_v37, %v2465_v9  ;;  %v2493_v43 = vcombine.low %v2447_v5, %v2463_v36  ;;  %v2494_v45 = vcombine.high %v2447_v5, %v2463_v36 }
 0xac4   :  { %v2434_v39 = vpop.permute.xlu1 %2433 }
 0xac5   :  { %v2471_v48 = vpack.i.b16 %v2436_v38, %v2434_v39  ;;  %v2473_v49 = vshrl.u32 %v2434_v39, 16  ;;  %v2501_v57 = vrot.slane %v2493_v43, %v5426_v41  ;;  %v2508_v58 = vrot.slane %v2494_v45, %v5426_v41 }
 0xac6   :  { %v2627_v60 = vcombine.low %v2451_v50, %v2467_v23  ;;  %v2628_v61 = vcombine.high %v2451_v50, %v2467_v23 }
 0xac7   :  { %v2475_v53 = vpack.i.b16 %v2474_v47, %v2473_v49  ;;  %v2509_v54 = vcombine.low %v2455_v46, %v2471_v48  ;;  %v2510_v55 = vcombine.high %v2455_v46, %v2471_v48 }
 0xac8   :  { %v2635_v17 = vrot.slane %v2627_v60, %v5426_v41  ;;  %v2642_v18 = vrot.slane %v2628_v61, %v5426_v41 }
 0xac9   :  { %v2517_v20 = vrot.slane %v2509_v54, %v5426_v41  ;;  %v2524_v2 = vrot.slane %v2510_v55, %v5426_v41  ;;  %v2643_v4 = vcombine.low %v2459_v52, %v2475_v53  ;;  %v2644_v6 = vcombine.high %v2459_v52, %v2475_v53 }
 0xacb   :  { %v2555_v12 = vcombine.low %v2501_v57, %v2517_v20  ;;  %v2556_v14 = vcombine.high %v2501_v57, %v2517_v20  ;;  %v2571_v15 = vcombine.low %v2508_v58, %v2524_v2  ;;  %v2572_v16 = vcombine.high %v2508_v58, %v2524_v2 }
 0xacc   :  { %v2651_v24 = vrot.slane %v2643_v4, %v5426_v41  ;;  %v2658_v25 = vrot.slane %v2644_v6, %v5426_v41 }
 0xacd   :  { %v2563_v0 = vrot.slane %v2555_v12, %v5429_v59  ;;  %v2570_v3 = vrot.slane %v2556_v14, %v5429_v59  ;;  %v2579_v44 = vrot.slane %v2571_v15, %v5429_v59  ;;  %v2586_v26 = vrot.slane %v2572_v16, %v5429_v59 }
 0xace   :  { %v2689_v28 = vcombine.low %v2635_v17, %v2651_v24  ;;  %v2690_v31 = vcombine.high %v2635_v17, %v2651_v24  ;;  %v2705_v30 = vcombine.low %v2642_v18, %v2658_v25  ;;  %v2706_v27 = vcombine.high %v2642_v18, %v2658_v25 }
 0xacf   :  { %v4677_v34 = vcombine.low %v2563_v0, %v2570_v3  ;;  %v4679_v35 = vcombine.high %v2563_v0, %v2570_v3  ;;  %v4685_v38 = vcombine.low %v2579_v44, %v2586_v26  ;;  %v4687_v13 = vcombine.high %v2579_v44, %v2586_v26 }
 0xad0   :  { %v2697_v7 = vrot.slane %v2689_v28, %v5429_v59  ;;  %v2704_v36 = vrot.slane %v2690_v31, %v5429_v59  ;;  %v2713_v9 = vrot.slane %v2705_v30, %v5429_v59  ;;  %v2720_v5 = vrot.slane %v2706_v27, %v5429_v59 }
 0xad1   :  { %v2769_v10 = vrot.slane %v4677_v34, %v5426_v41  ;;  %v2785_v37 = vrot.slane %v4679_v35, %v5426_v41  ;;  %v2887_v50 = vrot.slane %v4685_v38, %v5426_v41  ;;  %v2903_v52 = vrot.slane %v4687_v13, %v5426_v41 }
 0xad2   :  { %v4681_v11 = vcombine.low %v2697_v7, %v2704_v36  ;;  %v4683_v39 = vcombine.high %v2697_v7, %v2704_v36  ;;  %v4689_v40 = vcombine.low %v2713_v9, %v2720_v5  ;;  %v4691_v23 = vcombine.high %v2713_v9, %v2720_v5 }
 0xad3   :  { %v2794_v43 = vcombine.high %v2769_v10, %v2785_v37  ;;  %v2793_v55 = vcombine.low %v2769_v10, %v2785_v37  ;;  %v2912_v4 = vcombine.high %v2887_v50, %v2903_v52  ;;  %v2911_v35 = vcombine.low %v2887_v50, %v2903_v52 }
 0xad4   :  { %v2946_v45 = vrot.slane %v4689_v40, %v5426_v41  ;;  %v2962_v46 = vrot.slane %v4691_v23, %v5426_v41  ;;  %v2828_v47 = vrot.slane %v4681_v11, %v5426_v41  ;;  %v2844_v48 = vrot.slane %v4683_v39, %v5426_v41 }
 0xad5   :  { %v2808_v49 = vrot.slane %v2794_v43, %v5429_v59  ;;  %v2801_v6 = vrot.slane %v2793_v55, %v5429_v59  ;;  %v2926_v0 = vrot.slane %v2912_v4, %v5429_v59  ;;  %v2919_v11 = vrot.slane %v2911_v35, %v5429_v59 }
 0xad6   :  { %v2852_v53 = vcombine.low %v2828_v47, %v2844_v48  ;;  %v2853_v54 = vcombine.high %v2828_v47, %v2844_v48  ;;  %v2971_v57 = vcombine.high %v2946_v45, %v2962_v46  ;;  %v2970_v31 = vcombine.low %v2946_v45, %v2962_v46 }
 0xad7   :  { %v2818_v60 = vcombine.high %v2808_v49, %v5292_v51  ;;  %v3012_v24 = vshrl.u32 %v2808_v49, 16  ;;  %v2817_v26 = vcombine.high %v2801_v6, %v5292_v51  ;;  %v3048_v34 = vshrl.u32 %v2926_v0, 16 }
 0xad8   :  { %v2867_v58 = vrot.slane %v2853_v54, %v5429_v59  ;;  %v2860_v2 = vrot.slane %v2852_v53, %v5429_v59  ;;  %v5876_v12 = vrot.slane %v2971_v57, %v5429_v59  ;;  %v2978_v38 = vrot.slane %v2970_v31, %v5429_v59 }
 0xad9   :  { %v3018_v15 = vshrl.u32 %v2818_v60, 16  ;;  %v3006_v36 = vshrl.u32 %v2817_v26, 16  ;;  %v2936_v13 = vcombine.high %v2926_v0, %v5292_v51  ;;  %v3000_v40 = vshrl.u32 %v2801_v6, 16 }
 0xada   :  { %v3011_v61 = vpack.i.b16 %v2867_v58, %v2808_v49  ;;  %v2877_v20 = vcombine.high %v2867_v58, %v5292_v51  ;;  %v3013_v17 = vshrl.u32 %v2867_v58, 16  ;;  %v2876_v25 = vcombine.high %v2860_v2, %v5292_v51 }
 0xadb   :  { %v3049_v28 = vshrl.u32 %v5876_v12, 16  ;;  %v2999_v30 = vpack.i.b16 %v2860_v2, %v2801_v6  ;;  %v2995_v5 = vcombine.high %v5876_v12, %v5292_v51  ;;  %v3001_v37 = vshrl.u32 %v2860_v2, 16 }
 0xadc   :  { %v3073_v14 = vsel %vm891_vm3, %v3011_v61, 0  ;;  %v3019_v16 = vshrl.u32 %v2877_v20, 16  ;;  %v3014_v44 = vpack.i.b16 %v3013_v17, %v3012_v24  ;;  %v3007_v27 = vshrl.u32 %v2876_v25, 16 }
 0xadd   :  { %4988 = vmatpush3.bf16.xpose.msra.mxu1 %v3073_v14  ;;  %v3050_v9 = vpack.i.b16 %v3049_v28, %v3048_v34  ;;  %v3017_v23 = vpack.i.b16 %v2877_v20, %v2818_v60  ;;  %v3055_v43 = vshrl.u32 %v2995_v5, 16  ;;  %v3002_v45 = vpack.i.b16 %v3001_v37, %v3000_v40 }
 0xade   :  { %v3020_v18 = vpack.i.b16 %v3019_v16, %v3018_v15  ;;  %4993 = vmatprep.subr.bf16.mxu1 %v5281_v1  ;;  %v3119_v7 = vsel %vm891_vm3, %v3014_v44, 0  ;;  %v3008_v10 = vpack.i.b16 %v3007_v27, %v3006_v36  ;;  %v3037_v46 = vshrl.u32 %v2978_v38, 16 }
 0xadf   :  { %v3303_v39 = vsel %vm891_vm3, %v3050_v9, 0  ;;  %v3054_v47 = vshrl.u32 %v2936_v13, 16  ;;  %v3165_v48 = vsel %vm891_vm3, %v3017_v23, 0  ;;  %v3036_v49 = vshrl.u32 %v2919_v11, 16 }
 0xae0   :  { %v3211_v3 = vsel %vm891_vm3, %v3020_v18, 0  ;;  %v2994_v53 = vcombine.high %v2978_v38, %v5292_v51  ;;  %v3047_v55 = vpack.i.b16 %v5876_v12, %v2926_v0  ;;  %v2935_v57 = vcombine.high %v2919_v11, %v5292_v51 }
 0xae1   :  { %5006 = vmatpush3.bf16.xpose.msra.mxu0 %v3211_v3  ;;  %v3056_v50 = vpack.i.b16 %v3055_v43, %v3054_v47  ;;  %v3038_v52 = vpack.i.b16 %v3037_v46, %v3036_v49  ;;  %v3005_v58 = vpack.i.b16 %v2876_v25, %v2817_v26  ;;  %v3053_v4 = vpack.i.b16 %v2995_v5, %v2936_v13 }
 0xae2   :  { %5017 = vmatprep.subr.bf16.mxu0 %v5281_v1  ;;  %v3043_v60 = vshrl.u32 %v2994_v53, 16  ;;  %v3257_v61 = vsel %vm891_vm3, %v3047_v55, 0  ;;  %v3042_v20 = vshrl.u32 %v2935_v57, 16  ;;  %v3035_v6 = vpack.i.b16 %v2978_v38, %v2919_v11 }
 0xae3   :  { %v3395_v54 = vsel %vm891_vm3, %v3056_v50, 0  ;;  %v3349_v12 = vsel %vm891_vm3, %v3053_v4, 0  ;;  %v3041_v14 = vpack.i.b16 %v2994_v53, %v2935_v57 }
 0xae4   :  { %4990 = vmatmul.mubr.msk.bf16.vlgmr.msra.gmra.mxu1 %vm891_vm3, %v2999_v30  ;;  %v3044_v2 = vpack.i.b16 %v3043_v60, %v3042_v20 }
 0xae5   :  { %4994 = vmatpush3.bf16.xpose.msra.mxu1 %v3119_v7  ;;  %4995 = vmatprep.mubr.msk.bf16.mxu1 %vm5282_vm0, %v5281_v1 }
 0xae6   :  { %4999 = vmatprep.subr.bf16.mxu1 %v5281_v1 }
 0xae8   :  { %5008 = vmatmul.mubr.msk.bf16.vlgmr.msra.gmra.mxu0 %vm891_vm3, %v3008_v10 }
 0xae9   :  { %5018 = vmatpush3.bf16.xpose.msra.mxu0 %v3303_v39  ;;  %5019 = vmatprep.mubr.msk.bf16.mxu0 %vm5282_vm0, %v5281_v1 }
 0xaea   :  { %5029 = vmatprep.subr.bf16.mxu0 %v5281_v1 }
 0xaec   :  { %4996 = vmatmul.mubr.msk.bf16.vlgmr.msra.gmra.mxu1 %vm891_vm3, %v3002_v45 }
 0xaed   :  { %5000 = vmatpush3.bf16.xpose.msra.mxu1 %v3165_v48  ;;  %5001 = vmatprep.mubr.msk.bf16.mxu1 %vm5282_vm0, %v5281_v1 }
 0xaee   :  { %5011 = vmatprep.subr.bf16.mxu1 %v5281_v1 }
 0xaf0   :  { %5020 = vmatmul.mubr.msk.bf16.vlgmr.msra.gmra.mxu0 %vm891_vm3, %v3038_v52 }
 0xaf1   :  { %5030 = vmatpush3.bf16.xpose.msra.mxu0 %v3395_v54  ;;  %5031 = vmatprep.mubr.msk.bf16.mxu0 %vm5282_vm0, %v5281_v1 }
 0xaf2   :  { %5041 = vmatprep.subr.bf16.mxu0 %v5281_v1 }
 0xaf4   :  { %5002 = vmatmul.mubr.msk.bf16.vlgmr.msra.gmra.mxu1 %vm891_vm3, %v3005_v58 }
 0xaf5   :  { %5012 = vmatpush3.bf16.xpose.msra.mxu1 %v3257_v61  ;;  %5013 = vmatprep.mubr.msk.bf16.mxu1 %vm5282_vm0, %v5281_v1 }
 0xaf6   :  { %5023 = vmatprep.subr.bf16.mxu1 %v5281_v1 }
 0xaf8   :  { %5032 = vmatmul.mubr.msk.bf16.vlgmr.msra.gmra.mxu0 %vm891_vm3, %v3044_v2 }
 0xaf9   :  { %5043 = vmatprep.mubr.msk.bf16.mxu0 %vm5282_vm0, %v5281_v1 }
 0xafc   :  { %5014 = vmatmul.mubr.msk.bf16.vlgmr.msra.gmra.mxu1 %vm891_vm3, %v3035_v6 }
 0xafd   :  { %5024 = vmatpush3.bf16.xpose.msra.mxu1 %v3349_v12  ;;  %5025 = vmatprep.mubr.msk.bf16.mxu1 %vm5282_vm0, %v5281_v1 }
 0xafe   :  { %5035 = vmatprep.subr.bf16.mxu1 %v5281_v1 }
 0xb04   :  { %5026 = vmatmul.mubr.msk.bf16.vlgmr.msra.gmra.mxu1 %vm891_vm3, %v3041_v14 }
 0xb05   :  { %5037 = vmatprep.mubr.msk.bf16.mxu1 %vm5282_vm0, %v5281_v1 }
 0xba4   :  { %v3109_v15 = vpop.f32.mrf.mxu1 }
 0xba5   :  { %v3437_v16 = vsel %vm891_vm3, %v3109_v15, -inf }
 0xba6   :  { %3438 = vmax.xlane.f32.xlu1 %v3437_v16  ;;  %v4991_v17 = vpop.f32.mrf.mxu1 }
 0xba8   :  { %v3112_v18 = vpop.f32.mrf.mxu1  ;;  %v5931_v24 = vpop.f32.mrf.mxu0 }
 0xba9   :  { %v3446_v25 = vsel %vm891_vm3, %v5931_v24, -inf }
 0xbaa   :  { %v4992_v0 = vpop.f32.mrf.mxu1  ;;  %3447 = vmax.xlane.f32.xlu1 %v3446_v25  ;;  %v5009_v3 = vpop.f32.mrf.mxu0 }
 0xbac   :  { %v3155_v44 = vpop.f32.mrf.mxu1  ;;  %v3250_v26 = vpop.f32.mrf.mxu0 }
 0xbad   :  { %v3440_v28 = vsel %vm891_vm3, %v3155_v44, -inf }
 0xbae   :  { %3441 = vmax.xlane.f32.xlu0 %v3440_v28  ;;  %v4997_v31 = vpop.f32.mrf.mxu1  ;;  %v5010_v30 = vpop.f32.mrf.mxu0 }
 0xbb0   :  { %v3158_v27 = vpop.f32.mrf.mxu1  ;;  %v5936_v34 = vpop.f32.mrf.mxu0 }
 0xbb1   :  { %v3452_v35 = vsel %vm891_vm3, %v5936_v34, -inf }
 0xbb2   :  { %v4998_v7 = vpop.f32.mrf.mxu1  ;;  %3453 = vmax.xlane.f32.xlu1 %v3452_v35  ;;  %v5021_v36 = vpop.f32.mrf.mxu0 }
 0xbb4   :  { %v3201_v9 = vpop.f32.mrf.mxu1  ;;  %v3342_v5 = vpop.f32.mrf.mxu0 }
 0xbb5   :  { %v3443_v10 = vsel %vm891_vm3, %v3201_v9, -inf }
 0xbb6   :  { %3444 = vmax.xlane.f32.xlu0 %v3443_v10  ;;  %v5003_v37 = vpop.f32.mrf.mxu1  ;;  %v5022_v38 = vpop.f32.mrf.mxu0 }
 0xbb8   :  { %v3204_v13 = vpop.f32.mrf.mxu1  ;;  %v3431_v11 = vpop.f32.mrf.mxu0 }
 0xbb9   :  { %v3458_v39 = vsel %vm891_vm3, %v3431_v11, -inf }
 0xbba   :  { %v5004_v40 = vpop.f32.mrf.mxu1  ;;  %3459 = vmax.xlane.f32.xlu1 %v3458_v39  ;;  %v5033_v23 = vpop.f32.mrf.mxu0 }
 0xbbc   :  { %v3293_v43 = vpop.f32.mrf.mxu1  ;;  %v3434_v45 = vpop.f32.mrf.mxu0 }
 0xbbd   :  { %v3449_v46 = vsel %vm891_vm3, %v3293_v43, -inf }
 0xbbe   :  { %3450 = vmax.xlane.f32.xlu0 %v3449_v46  ;;  %v5015_v47 = vpop.f32.mrf.mxu1  ;;  %v5034_v48 = vpop.f32.mrf.mxu0 }
 0xbc0   :  { %v3296_v49 = vpop.f32.mrf.mxu1 }
 0xbc2   :  { %v5016_v50 = vpop.f32.mrf.mxu1 }
 0xbc4   :  { %v3385_v52 = vpop.f32.mrf.mxu1 }
 0xbc5   :  { %v3455_v53 = vsel %vm891_vm3, %v3385_v52, -inf }
 0xbc6   :  { %3456 = vmax.xlane.f32.xlu0 %v3455_v53  ;;  %v5027_v54 = vpop.f32.mrf.mxu1 }
 0xbc8   :  { %v3388_v55 = vpop.f32.mrf.mxu1 }
 0xbca   :  { %v5028_v57 = vpop.f32.mrf.mxu1 }
 0xbcb   :  { %2439 = vrot.lane.b32.xlu1 %v5827_v32, %s5293_s19 }
 0xbdc   :  { %2437 = vrot.lane.b32.xlu0 %v5827_v32, %s5294_s20 }
 0xc2f   :  { %v3439_v58 = vpop.xlane.xlu1 %3438 }
 0xc30   :  { %v3461_v60 = vsub.f32 %v3109_v15, %v3439_v58 }
 0xc32   :  { %v3469_v61 = vmul.f32 1.442695, %v3461_v60 }
 0xc33   :  { %v3448_v15 = vpop.xlane.xlu1 %3447 }
 0xc34   :  { %5219 = vpow2.f32 %v3469_v61  ;;  %v3464_v18 = vsub.f32 %v5931_v24, %v3448_v15 }
 0xc36   :  { %v3475_v0 = vmul.f32 1.442695, %v3464_v18 }
 0xc37   :  { %v3442_v20 = vpop.xlane.xlu0 %3441 }
 0xc38   :  { %v3462_v2 = vsub.f32 %v3155_v44, %v3442_v20 }
 0xc3a   :  { %v3471_v4 = vmul.f32 1.442695, %v3462_v2 }
 0xc3b   :  { %v3454_v30 = vpop.xlane.xlu1 %3453 }
 0xc3c   :  { %5221 = vpow2.f32 %v3471_v4  ;;  %v3466_v35 = vsub.f32 %v5936_v34, %v3454_v30 }
 0xc3d   :  { %5223 = vpow2.f32 %v3475_v0 }
 0xc3e   :  { %v3479_v5 = vmul.f32 1.442695, %v3466_v35 }
 0xc3f   :  { %v3445_v17 = vpop.xlane.xlu0 %3444 }
 0xc40   :  { %v3463_v26 = vsub.f32 %v3201_v9, %v3445_v17 }
 0xc41   :  { %v5948_v6 = vpop.eup %5219 }
 0xc42   :  { %v3485_v12 = vsel %vm891_vm3, %v5948_v6, 0.0  ;;  %v3473_v27 = vmul.f32 1.442695, %v3463_v26 }
 0xc43   :  { %3486 = vadd.xlane.f32.xlu0 %v3485_v12  ;;  %v3460_v36 = vpop.xlane.xlu1 %3459 }
 0xc47   :  { %v3451_v25 = vpop.xlane.xlu0 %3450  ;;  %v2440_v47 = vpop.permute.xlu1 %2439 }
 0xc48   :  { %v3465_v3 = vsub.f32 %v3293_v43, %v3451_v25  ;;  %v2482_v54 = vshrl.u32 %v2440_v47, 16 }
 0xc49   :  { %v5952_v14 = vpop.eup %5221 }
 0xc4a   :  { %v3488_v16 = vsel %vm891_vm3, %v5952_v14, 0.0  ;;  %v3477_v28 = vmul.f32 1.442695, %v3465_v3  ;;  %v5962_v10 = vpop.eup %5223 }
 0xc4b   :  { %3489 = vadd.xlane.f32.xlu1 %v3488_v16  ;;  %v3494_v9 = vsel %vm891_vm3, %v5962_v10, 0.0 }
 0xc4c   :  { %5225 = vpow2.f32 %v3477_v28 }
 0xc4d   :  { %5227 = vpow2.f32 %v3473_v27 }
 0xc4f   :  { %v3457_v44 = vpop.xlane.xlu0 %3456 }
 0xc50   :  { %v3467_v31 = vsub.f32 %v3385_v52, %v3457_v44 }
 0xc52   :  { %v3481_v7 = vmul.f32 1.442695, %v3467_v31 }
 0xc53   :  { %v2438_v46 = vpop.permute.xlu0 %2437 }
 0xc54   :  { %5229 = vpow2.f32 %v3481_v7  ;;  %v2481_v50 = vshrl.u32 %v2438_v46, 16  ;;  %v5986_v53 = vpack.i.b16 %v2440_v47, %v2438_v46 }
 0xc55   :  { %5231 = vpow2.f32 %v3479_v5 }
 0xc56   :  { %v2483_v61 = vpack.i.b16 %v2482_v54, %v2481_v50  ;;  %v2532_v20 = vrot.slane %v5986_v53, %v5426_v41 }
 0xc58   :  { %v2666_v15 = vrot.slane %v2483_v61, %v5426_v41 }
 0xc59   :  { %2443 = vrot.lane.b32.xlu0 %v5827_v32, %s5296_s22  ;;  %v5966_v37 = vpop.eup %5225 }
 0xc5a   :  { %v5968_v38 = vpop.eup %5227  ;;  %v3497_v34 = vsel %vm891_vm3, %v5966_v37, 0.0 }
 0xc5b   :  { %v3491_v39 = vsel %vm891_vm3, %v5968_v38, 0.0 }
 0xc5c   :  { %2441 = vrot.lane.b32.xlu1 %v5827_v32, %s5295_s21  ;;  %v3468_v32 = vsub.f32 %v3431_v11, %v3460_v36 }
 0xc5e   :  { %v3483_v24 = vmul.f32 1.442695, %v3468_v32 }
 0xc60   :  { %5233 = vpow2.f32 %v3483_v24 }
 0xc61   :  { %v5972_v13 = vpop.eup %5229 }
 0xc62   :  { %v3503_v11 = vsel %vm891_vm3, %v5972_v13, 0.0  ;;  %v5978_v40 = vpop.eup %5231 }
 0xc63   :  { %v3500_v23 = vsel %vm891_vm3, %v5978_v40, 0.0 }
 0xc6d   :  { %v5982_v43 = vpop.eup %5233 }
 0xc6e   :  { %v3506_v45 = vsel %vm891_vm3, %v5982_v43, 0.0 }
 0xc78   :  { %3495 = vadd.xlane.f32.xlu0 %v3494_v9 }
 0xc7c   :  { %3498 = vadd.xlane.f32.xlu0 %v3497_v34 }
 0xc80   :  { %3504 = vadd.xlane.f32.xlu0 %v3503_v11  ;;  %3492 = vadd.xlane.f32.xlu1 %v3491_v39 }
 0xc84   :  { %3501 = vadd.xlane.f32.xlu1 %v3500_v23 }
 0xc88   :  { %3507 = vadd.xlane.f32.xlu1 %v3506_v45 }
 0xccc   :  { %v3487_v48 = vpop.xlane.xlu0 %3486 }
 0xccd   :  { %5235 = vrcp.f32 %v3487_v48 }
 0xcd0   :  { %v2444_v52 = vpop.permute.xlu0 %2443 }
 0xcd1   :  { %v2490_v57 = vshrl.u32 %v2444_v52, 16 }
 0xcd4   :  { %v3490_v49 = vpop.xlane.xlu1 %3489 }
 0xcd5   :  { %5237 = vrcp.f32 %v3490_v49 }
 0xcd8   :  { %v2442_v55 = vpop.permute.xlu1 %2441 }
 0xcd9   :  { %v2487_v58 = vpack.i.b16 %v2444_v52, %v2442_v55  ;;  %v2489_v60 = vshrl.u32 %v2442_v55, 16  ;;  %v2659_v52 = vcombine.high %v2483_v61, %v5596_v19 }
 0xcda   :  { %v5236_v9 = vpop.eup %5235 }
 0xcdb   :  { %v2491_v2 = vpack.i.b16 %v2490_v57, %v2489_v60  ;;  %v2547_v4 = vrot.slane %v2487_v58, %v5426_v41  ;;  %v3517_v46 = vmul.f32 %v5236_v9, %v5948_v6  ;;  %v2540_v54 = vcombine.high %v2487_v58, %v5596_v19 }
 0xcdc   :  { %v2525_v6 = vcombine.high %v5986_v53, %v5596_v19 }
 0xcdd   :  { %v2587_v12 = vcombine.low %v2532_v20, %v2547_v4  ;;  %v2588_v16 = vcombine.high %v2532_v20, %v2547_v4  ;;  %v2681_v17 = vrot.slane %v2491_v2, %v5426_v41  ;;  %v2674_v45 = vcombine.high %v2491_v2, %v5596_v19 }
 0xcde   :  { %v2554_v61 = vrot.slane %v2540_v54, %v5426_v41  ;;  %v2539_v19 = vrot.slane %v2525_v6, %v5426_v41 }
 0xcdf   :  { %v2595_v18 = vrot.slane %v2587_v12, %v5429_v59  ;;  %v2602_v25 = vrot.slane %v2588_v16, %v5429_v59  ;;  %v2721_v0 = vcombine.low %v2666_v15, %v2681_v17  ;;  %v2722_v3 = vcombine.high %v2666_v15, %v2681_v17 }
 0xce0   :  { %v2688_v2 = vrot.slane %v2674_v45, %v5426_v41  ;;  %v3525_v15 = vpack.c.bf16 %v3517_v46, %v3517_v46 }
 0xce1   :  { %v4678_v44 = vcombine.low %v2595_v18, %v2602_v25  ;;  %v4680_v26 = vcombine.high %v2595_v18, %v2602_v25  ;;  %v2729_v28 = vrot.slane %v2721_v0, %v5429_v59  ;;  %v2736_v31 = vrot.slane %v2722_v3, %v5429_v59 }
 0xce2   :  { %v5238_v39 = vpop.eup %5237  ;;  %v2603_v3 = vcombine.low %v2539_v19, %v2554_v61 }
 0xce3   :  { %v2776_v30 = vrot.slane %v4678_v44, %v5426_v41  ;;  %v2792_v27 = vrot.slane %v4680_v26, %v5426_v41  ;;  %v4682_v35 = vcombine.low %v2729_v28, %v2736_v31  ;;  %v4684_v7 = vcombine.high %v2729_v28, %v2736_v31 }
 0xce4   :  { %v3518_v55 = vmul.f32 %v5238_v39, %v5952_v14  ;;  %v2673_v14 = vrot.slane %v2659_v52, %v5426_v41  ;;  %v2604_v44 = vcombine.high %v2539_v19, %v2554_v61  ;;  %v2611_v31 = vrot.slane %v2603_v3, %v5429_v59 }
 0xce5   :  { %v2809_v36 = vcombine.low %v2776_v30, %v2792_v27  ;;  %v2835_v5 = vrot.slane %v4682_v35, %v5426_v41  ;;  %v2851_v32 = vrot.slane %v4684_v7, %v5426_v41 }
 0xce6   :  { %v3526_v18 = vpack.c.bf16 %v3518_v55, %v3518_v55  ;;  %v2737_v53 = vcombine.low %v2673_v14, %v2688_v2  ;;  %v2738_v25 = vcombine.high %v2673_v14, %v2688_v2  ;;  %v2618_v30 = vrot.slane %v2604_v44, %v5429_v59 }
 0xce7   :  { %v2816_v24 = vrot.slane %v2809_v36, %v5429_v59  ;;  %v2868_v34 = vcombine.low %v2835_v5, %v2851_v32 }
 0xce8   :  { %v2745_v26 = vrot.slane %v2737_v53, %v5429_v59  ;;  %v2752_v28 = vrot.slane %v2738_v25, %v5429_v59  ;;  %v4686_v7 = vcombine.low %v2611_v31, %v2618_v30  ;;  %v4688_v36 = vcombine.high %v2611_v31, %v2618_v30 }
 0xce9   :  { %v2819_v11 = vcombine.high %v2816_v24, %v5292_v51  ;;  %v2875_v23 = vrot.slane %v2868_v34, %v5429_v59  ;;  %v3024_v48 = vshrl.u32 %v2816_v24, 16 }
 0xcea   :  { %v4690_v27 = vcombine.low %v2745_v26, %v2752_v28  ;;  %v4692_v35 = vcombine.high %v2745_v26, %v2752_v28  ;;  %v2894_v9 = vrot.slane %v4686_v7, %v5426_v41  ;;  %v2910_v34 = vrot.slane %v4688_v36, %v5426_v41 }
 0xceb   :  { %v3023_v47 = vpack.i.b16 %v2875_v23, %v2816_v24  ;;  %v3025_v49 = vshrl.u32 %v2875_v23, 16  ;;  %v2878_v50 = vcombine.high %v2875_v23, %v5292_v51  ;;  %v3030_v57 = vshrl.u32 %v2819_v11, 16 }
 0xcec   :  { %v2953_v5 = vrot.slane %v4690_v27, %v5426_v41  ;;  %v2969_v32 = vrot.slane %v4692_v35, %v5426_v41  ;;  %v2927_v39 = vcombine.low %v2894_v9, %v2910_v34  ;;  %v5165_v27 = vld [vmem:[%s6224_s5 + $0x18] sm:$0xff]  }
 0xced   :  { %v3537_v60 = vsel %vm1359_vm4, %v3023_v47, 0  ;;  %v3026_v20 = vpack.i.b16 %v3025_v49, %v3024_v48  ;;  %v3029_v4 = vpack.i.b16 %v2878_v50, %v2819_v11  ;;  %v3031_v12 = vshrl.u32 %v2878_v50, 16 }
 0xcee   :  { %5036 = vmatpush3.bf16.msra.mxu1 %v3537_v60  ;;  %v2986_v11 = vcombine.low %v2953_v5, %v2969_v32  ;;  %v2934_v46 = vrot.slane %v2927_v39, %v5429_v59 }
 0xcef   :  { %v3583_v16 = vsel %vm1359_vm4, %v3026_v20, 0  ;;  %5047 = vmatprep.subr.bf16.mxu1 %v5281_v1  ;;  %v3032_v58 = vpack.i.b16 %v3031_v12, %v3030_v57  ;;  %v3629_v17 = vsel %vm1359_vm4, %v3029_v4, 0 }
 0xcf0   :  { %5042 = vmatpush3.bf16.msra.mxu0 %v3583_v16  ;;  %v2993_v23 = vrot.slane %v2986_v11, %v5429_v59  ;;  %v3060_v50 = vshrl.u32 %v2934_v46, 16  ;;  %v2937_v6 = vcombine.high %v2934_v46, %v5292_v51 }
 0xcf1   :  { %5038 = vmatmul.mubr.msk.bf16.vlgmr.msra.gmra.mxu1 %vm891_vm3, %v3525_v15  ;;  %5053 = vmatprep.subr.bf16.mxu0 %v5281_v1  ;;  %v3675_v0 = vsel %vm1359_vm4, %v3032_v58, 0 }
 0xcf2   :  { %5048 = vmatpush3.bf16.msra.mxu1 %v3629_v17  ;;  %5049 = vmatprep.mubr.msk.bf16.mxu1 %vm5282_vm0, %v5281_v1  ;;  %v3061_v48 = vshrl.u32 %v2993_v23, 16  ;;  %v2996_v12 = vcombine.high %v2993_v23, %v5292_v51  ;;  %v3059_v15 = vpack.i.b16 %v2993_v23, %v2934_v46  ;;  %v3066_v58 = vshrl.u32 %v2937_v6, 16 }
 0xcf3   :  { %5044 = vmatmul.mubr.msk.bf16.vlgmr.msra.gmra.mxu0 %vm891_vm3, %v3526_v18  ;;  %5059 = vmatprep.subr.bf16.mxu1 %v5281_v1 }
 0xcf4   :  { %5054 = vmatpush3.bf16.msra.mxu0 %v3675_v0  ;;  %5055 = vmatprep.mubr.msk.bf16.mxu0 %vm5282_vm0, %v5281_v1  ;;  %v3062_v55 = vpack.i.b16 %v3061_v48, %v3060_v50  ;;  %v3067_v2 = vshrl.u32 %v2996_v12, 16  ;;  %v3721_v53 = vsel %vm1359_vm4, %v3059_v15, 0 }
 0xcf5   :  { %5065 = vmatprep.subr.bf16.mxu0 %v5281_v1 }
 0xcf6   :  { %v3767_v4 = vsel %vm1359_vm4, %v3062_v55, 0  ;;  %v3068_v19 = vpack.i.b16 %v3067_v2, %v3066_v58 }
 0xcf8   :  { %v3859_v3 = vsel %vm1359_vm4, %v3068_v19, 0 }
 0xd01   :  { %v3496_v24 = vpop.xlane.xlu0 %3495 }
 0xd02   :  { %5239 = vrcp.f32 %v3496_v24 }
 0xd05   :  { %v3499_v47 = vpop.xlane.xlu0 %3498 }
 0xd09   :  { %v3493_v45 = vpop.xlane.xlu1 %3492  ;;  %v3505_v20 = vpop.xlane.xlu0 %3504 }
 0xd0a   :  { %5241 = vrcp.f32 %v3493_v45 }
 0xd0d   :  { %v3502_v49 = vpop.xlane.xlu1 %3501 }
 0xd0e   :  { %5243 = vrcp.f32 %v3502_v49 }
 0xd0f   :  { %v5240_v52 = vpop.eup %5239  ;;  %5245 = vrcp.f32 %v3499_v47 }
 0xd10   :  { %v3520_v54 = vmul.f32 %v5240_v52, %v5962_v10 }
 0xd11   :  { %v3508_v57 = vpop.xlane.xlu1 %3507 }
 0xd12   :  { %5247 = vrcp.f32 %v3508_v57  ;;  %v3528_v60 = vpack.c.bf16 %v3520_v54, %v3520_v54 }
 0xd13   :  { %5249 = vrcp.f32 %v3505_v20 }
 0xd14   :  { %5056 = vmatmul.mubr.msk.bf16.vlgmr.msra.gmra.mxu0 %vm891_vm3, %v3528_v60 }
 0xd15   :  { %5066 = vmatpush3.bf16.msra.mxu0 %v3767_v4  ;;  %5067 = vmatprep.mubr.msk.bf16.mxu0 %vm5282_vm0, %v5281_v1 }
 0xd16   :  { %5077 = vmatprep.subr.bf16.mxu0 %v5281_v1 }
 0xd17   :  { %v5242_v10 = vpop.eup %5241 }
 0xd18   :  { %v3519_v16 = vmul.f32 %v5242_v10, %v5968_v38 }
 0xd1a   :  { %v3527_v61 = vpack.c.bf16 %v3519_v16, %v3519_v16 }
 0xd1b   :  { %v5244_v14 = vpop.eup %5243 }
 0xd1c   :  { %v5246_v17 = vpop.eup %5245  ;;  %v3522_v18 = vmul.f32 %v5244_v14, %v5978_v40  ;;  %5050 = vmatmul.mubr.msk.bf16.vlgmr.msra.gmra.mxu1 %vm891_vm3, %v3527_v61  ;;  %v3065_v40 = vpack.i.b16 %v2996_v12, %v2937_v6 }
 0xd1d   :  { %5060 = vmatpush3.bf16.msra.mxu1 %v3721_v53  ;;  %5061 = vmatprep.mubr.msk.bf16.mxu1 %vm5282_vm0, %v5281_v1  ;;  %v3521_v38 = vmul.f32 %v5246_v17, %v5966_v37 }
 0xd1e   :  { %v3530_v25 = vpack.c.bf16 %v3522_v18, %v3522_v18  ;;  %5071 = vmatprep.subr.bf16.mxu1 %v5281_v1  ;;  %v3813_v31 = vsel %vm1359_vm4, %v3065_v40, 0 }
 0xd1f   :  { %v5248_v0 = vpop.eup %5247  ;;  %v3529_v26 = vpack.c.bf16 %v3521_v38, %v3521_v38 }
 0xd20   :  { %5068 = vmatmul.mubr.msk.bf16.vlgmr.msra.gmra.mxu0 %vm891_vm3, %v3530_v25  ;;  %v3524_v44 = vmul.f32 %v5248_v0, %v5982_v43  ;;  %v5250_v28 = vpop.eup %5249 }
 0xd21   :  { %5078 = vmatpush3.bf16.msra.mxu0 %v3859_v3  ;;  %5079 = vmatprep.mubr.msk.bf16.mxu0 %vm5282_vm0, %v5281_v1  ;;  %v3523_v30 = vmul.f32 %v5250_v28, %v5972_v13 }
 0xd22   :  { %5091 = vmatprep.subr.bf16.mxu0 %v5281_v1  ;;  %v3532_v37 = vpack.c.bf16 %v3524_v44, %v3524_v44 }
 0xd23   :  { %v3531_v43 = vpack.c.bf16 %v3523_v30, %v3523_v30 }
 0xd24   :  { %5062 = vmatmul.mubr.msk.bf16.vlgmr.msra.gmra.mxu1 %vm891_vm3, %v3529_v26 }
 0xd25   :  { %5072 = vmatpush3.bf16.msra.mxu1 %v3813_v31  ;;  %5073 = vmatprep.mubr.msk.bf16.mxu1 %vm5282_vm0, %v5281_v1 }
 0xd26   :  { %5083 = vmatprep.subr.bf16.mxu1 %v5281_v1 }
 0xd28   :  { %5080 = vmatmul.mubr.msk.bf16.vlgmr.msra.gmra.mxu0 %vm891_vm3, %v3532_v37 }
 0xd29   :  { %5095 = vmatprep.mubr.msk.bf16.mxu0 %vm5282_vm0, %v5281_v1 }
 0xd2c   :  { %5074 = vmatmul.mubr.msk.bf16.vlgmr.msra.gmra.mxu1 %vm891_vm3, %v3531_v43 }
 0xd2d   :  { %5087 = vmatprep.mubr.msk.bf16.mxu1 %vm5282_vm0, %v5281_v1  ;;  %5084 = vmatpush3.bf16.msra.mxu1 %v5165_v27 }
 0xd2e   :  { %5085 = vmatprep.subr.bf16.mxu1 %v5281_v1 }
 0xdb1   :  { %v3573_v13 = vpop.f32.mrf.mxu1 }
 0xdb2   :  { %v3901_v46 = vpack.c.bf16 %v3573_v13, %v3573_v13 }
 0xdb3   :  { %v5039_v35 = vpop.f32.mrf.mxu1  ;;  %v3619_v7 = vpop.f32.mrf.mxu0 }
 0xdb4   :  { %v3935_v47 = vpack.c.bf16 %v3619_v7, %v3619_v7  ;;  %v3908_v54 = vrot.slane %v3901_v46, %v5426_v41 }
 0xdb5   :  { %v3576_v36 = vpop.f32.mrf.mxu1  ;;  %v5045_v5 = vpop.f32.mrf.mxu0 }
 0xdb6   :  { %v3942_v60 = vrot.slane %v3935_v47, %v5426_v41 }
 0xdb7   :  { %v5040_v32 = vpop.f32.mrf.mxu1  ;;  %v3622_v24 = vpop.f32.mrf.mxu0 }
 0xdb9   :  { %v5046_v9 = vpop.f32.mrf.mxu0 }
 0xdd4   :  { %v3711_v34 = vpop.f32.mrf.mxu0 }
 0xdd5   :  { %v3943_v45 = vpack.c.bf16 %v3711_v34, %v3711_v34 }
 0xdd6   :  { %v5057_v11 = vpop.f32.mrf.mxu0 }
 0xdd7   :  { %v3950_v50 = vrot.slane %v3943_v45, %v5426_v41 }
 0xdd8   :  { %v3714_v39 = vpop.f32.mrf.mxu0 }
 0xdd9   :  { %v3951_v10 = vcombine.low %v3942_v60, %v3950_v50  ;;  %v3952_v2 = vcombine.high %v3942_v60, %v3950_v50 }
 0xdda   :  { %v5058_v23 = vpop.f32.mrf.mxu0 }
 0xddb   :  { %v3959_v18 = vrot.slane %v3951_v10, %v5429_v59  ;;  %v3966_v19 = vrot.slane %v3952_v2, %v5429_v59 }
 0xddc   :  { %v3665_v48 = vpop.f32.mrf.mxu1 }
 0xddd   :  { %v3909_v49 = vpack.c.bf16 %v3665_v48, %v3665_v48  ;;  %v3967_v28 = vcombine.high %v3959_v18, %v5292_v51  ;;  %v3968_v31 = vcombine.high %v3966_v19, %v5292_v51  ;;  %v4042_v45 = vshrl.u32 %v3959_v18, 16 }
 0xdde   :  { %v5051_v52 = vpop.f32.mrf.mxu1  ;;  %v4058_v47 = vshrl.u32 %v3966_v19, 16 }
 0xddf   :  { %v3916_v55 = vrot.slane %v3909_v49, %v5426_v41  ;;  %v4050_v46 = vshrl.u32 %v3967_v28, 16  ;;  %v4066_v49 = vshrl.u32 %v3968_v31, 16 }
 0xde0   :  { %v3803_v57 = vpop.f32.mrf.mxu0  ;;  %v3668_v20 = vpop.f32.mrf.mxu1 }
 0xde1   :  { %v3917_v4 = vcombine.low %v3908_v54, %v3916_v55  ;;  %v3918_v12 = vcombine.high %v3908_v54, %v3916_v55  ;;  %v4003_v25 = vpack.c.bf16 %v3803_v57, %v3803_v57 }
 0xde2   :  { %v5069_v6 = vpop.f32.mrf.mxu0  ;;  %v5052_v16 = vpop.f32.mrf.mxu1 }
 0xde3   :  { %v3925_v58 = vrot.slane %v3917_v4, %v5429_v59  ;;  %v3932_v14 = vrot.slane %v3918_v12, %v5429_v59  ;;  %v4010_v27 = vrot.slane %v4003_v25, %v5426_v41 }
 0xde4   :  { %v3806_v15 = vpop.f32.mrf.mxu0  ;;  %v3757_v61 = vpop.f32.mrf.mxu1 }
 0xde5   :  { %v3933_v38 = vcombine.high %v3925_v58, %v5292_v51  ;;  %v3934_v3 = vcombine.high %v3932_v14, %v5292_v51  ;;  %v4041_v30 = vshrl.u32 %v3925_v58, 16  ;;  %v4057_v43 = vshrl.u32 %v3932_v14, 16 }
 0xde6   :  { %v5070_v17 = vpop.f32.mrf.mxu0  ;;  %v5063_v53 = vpop.f32.mrf.mxu1  ;;  %v3969_v32 = vpack.c.bf16 %v3757_v61, %v3757_v61  ;;  %v4039_v50 = vpack.i.b16 %v3959_v18, %v3925_v58  ;;  %v4055_v57 = vpack.i.b16 %v3966_v19, %v3932_v14 }
 0xde7   :  { %v4047_v7 = vpack.i.b16 %v3967_v28, %v3933_v38  ;;  %v4049_v36 = vshrl.u32 %v3933_v38, 16  ;;  %v4063_v5 = vpack.i.b16 %v3968_v31, %v3934_v3  ;;  %v4065_v9 = vshrl.u32 %v3934_v3, 16 }
 0xde8   :  { %v3895_v0 = vpop.f32.mrf.mxu0  ;;  %v3760_v40 = vpop.f32.mrf.mxu1  ;;  %v4043_v55 = vpack.i.b16 %v4042_v45, %v4041_v30  ;;  %v4059_v60 = vpack.i.b16 %v4058_v47, %v4057_v43  ;;  %v3976_v20 = vrot.slane %v3969_v32, %v5426_v41  ;;  %v4101_v17 = vcombine.low %v4039_v50, %v4055_v57  ;;  %v5166_v50 = vld [vmem:[%s6224_s5 + $0x10] sm:$0xff]   ;;  %s6233_s5 = smov 24  }
 0xde9   :  { %v4011_v44 = vpack.c.bf16 %v3895_v0, %v3895_v0  ;;  %v4051_v12 = vpack.i.b16 %v4050_v46, %v4049_v36  ;;  %v4067_v6 = vpack.i.b16 %v4066_v49, %v4065_v9  ;;  %v4109_v2 = vcombine.low %v4047_v7, %v4063_v5  ;;  %5086 = vmatpush3.bf16.msra.mxu1 %v5166_v50 }
 0xdea   :  { %v5081_v26 = vpop.f32.mrf.mxu0  ;;  %v5064_v37 = vpop.f32.mrf.mxu1  ;;  %v4151_v14 = vcombine.low %v4043_v55, %v4059_v60  ;;  %v4108_v9 = vrot.slane %v4101_v17, %v5426_v41  ;;  %5099 = vmatprep.subr.bf16.mxu1 %v5281_v1 }
 0xdeb   :  { %v4018_v13 = vrot.slane %v4011_v44, %v5426_v41  ;;  %v4116_v0 = vrot.slane %v4109_v2, %v5426_v41  ;;  %v4159_v38 = vcombine.low %v4051_v12, %v4067_v6 }
 0xdec   :  { %v3898_v35 = vpop.f32.mrf.mxu0  ;;  %v3849_v24 = vpop.f32.mrf.mxu1  ;;  %v4158_v47 = vrot.slane %v4151_v14, %v5426_v41 }
 0xded   :  { %v4019_v34 = vcombine.low %v4010_v27, %v4018_v13  ;;  %v4020_v11 = vcombine.high %v4010_v27, %v4018_v13  ;;  %v3977_v39 = vpack.c.bf16 %v3849_v24, %v3849_v24  ;;  %v4133_v46 = vcombine.low %v4108_v9, %v4116_v0  ;;  %v5170_v9 = vld [vmem:[%s6227_s8 + $0x70] sm:$0xff]  }
 0xdee   :  { %v5082_v23 = vpop.f32.mrf.mxu0  ;;  %v5075_v48 = vpop.f32.mrf.mxu1 }
 0xdef   :  { %v4027_v52 = vrot.slane %v4019_v34, %v5429_v59  ;;  %v3984_v54 = vrot.slane %v3977_v39, %v5426_v41  ;;  %v4034_v10 = vrot.slane %v4020_v11, %v5429_v59  ;;  %v4140_v57 = vrot.slane %v4133_v46, %v5429_v59 }
 0xdf0   :  { %v3852_v4 = vpop.f32.mrf.mxu1 }
 0xdf1   :  { %v3985_v16 = vcombine.low %v3976_v20, %v3984_v54  ;;  %v3986_v15 = vcombine.high %v3976_v20, %v3984_v54  ;;  %v4035_v58 = vcombine.high %v4027_v52, %v5292_v51  ;;  %v4036_v19 = vcombine.high %v4034_v10, %v5292_v51 }
 0xdf2   :  { %v5076_v61 = vpop.f32.mrf.mxu1  ;;  %v4074_v25 = vshrl.u32 %v4027_v52, 16  ;;  %v4090_v31 = vshrl.u32 %v4034_v10, 16 }
 0xdf3   :  { %v3993_v18 = vrot.slane %v3985_v16, %v5429_v59  ;;  %v4000_v53 = vrot.slane %v3986_v15, %v5429_v59  ;;  %v4082_v28 = vshrl.u32 %v4035_v58, 16  ;;  %v4098_v7 = vshrl.u32 %v4036_v19, 16 }
 0xdf5   :  { %v4001_v3 = vcombine.high %v3993_v18, %v5292_v51  ;;  %v4002_v40 = vcombine.high %v4000_v53, %v5292_v51  ;;  %v4071_v44 = vpack.i.b16 %v4027_v52, %v3993_v18  ;;  %v4073_v26 = vshrl.u32 %v3993_v18, 16 }
 0xdf6   :  { %v4087_v37 = vpack.i.b16 %v4034_v10, %v4000_v53  ;;  %v4089_v30 = vshrl.u32 %v4000_v53, 16  ;;  %v4166_v51 = vrot.slane %v4159_v38, %v5426_v41 }
 0xdf7   :  { %v4075_v43 = vpack.i.b16 %v4074_v25, %v4073_v26  ;;  %v4079_v27 = vpack.i.b16 %v4035_v58, %v4001_v3  ;;  %v4081_v13 = vshrl.u32 %v4001_v3, 16  ;;  %v4095_v35 = vpack.i.b16 %v4036_v19, %v4002_v40 }
 0xdf8   :  { %v4091_v36 = vpack.i.b16 %v4090_v31, %v4089_v30  ;;  %v4097_v5 = vshrl.u32 %v4002_v40, 16  ;;  %v4117_v32 = vcombine.low %v4071_v44, %v4087_v37  ;;  %v4183_v55 = vcombine.low %v4158_v47, %v4166_v51  ;;  %v6130_v40 = vld [vmem:[%s6228_s9 + $0x8] sm:$0x3f]  ;;  %v5173_v51 = vld [vmem:[%s6227_s8 + $0x58] sm:$0xff]   ;;  %s4611_s9 = sshll.u32 %s5300_s16, 4  ;;  %s4612_s9 = int_to_ptr.vmem [resolvable:$true] %s4611_s9 }
 0xdf9   :  { %v4083_v24 = vpack.i.b16 %v4082_v28, %v4081_v13  ;;  %v4125_v34 = vcombine.low %v4079_v27, %v4095_v35  ;;  %v4229_v44 = vrot.slane %v6130_v40, %v2053_v22  ;;  %s5259_s17 = scalar_lea.vmem %s4612_s9, 32  ;;  %p5264_p1 = scmp.lt.s32.totalorder %s4612_s9, %s4612_s9 }
 0xdfa   :  { %v4099_v11 = vpack.i.b16 %v4098_v7, %v4097_v5  ;;  %v4167_v39 = vcombine.low %v4075_v43, %v4091_v36  ;;  %v4124_v23 = vrot.slane %v4117_v32, %v5426_v41  ;;  %v4190_v12 = vrot.slane %v4183_v55, %v5429_v59  ;;  %p5260_p0 = scmp.ne.s32.totalorder %s4612_s9, %s5259_s17  ;;  %p5265_p2 = scmp.lt.s32.totalorder %s5259_s17, %s5259_s17 }
 0xdfb   :  { %v4132_v45 = vrot.slane %v4125_v34, %v5426_v41  ;;  %v5171_v34 = vld [vmem:[%s6227_s8 + $0x68] sm:$0xff]  }
 0xdfc   :  { %v4175_v48 = vcombine.low %v4083_v24, %v4099_v11  ;;  %v4174_v52 = vrot.slane %v4167_v39, %v5426_v41  ;;  %v5168_v24 = vld [vmem:[%s6225_s6 + $0x10] sm:$0xff]   ;;  %v5172_v11 = vld [vmem:[%s6227_s8 + $0x60] sm:$0xff]   ;;  %p5266_p3 = por %p5265_p2, %p5264_p1 }
 0xdfd   :  { %v4141_v49 = vcombine.low %v4124_v23, %v4132_v45 }
 0xdfe   :  { %v4182_v54 = vrot.slane %v4175_v48, %v5426_v41  ;;  %p5267_p4 = pnand %p5266_p3, %p5260_p0 }
 0xdff   :  { %v4148_v60 = vrot.slane %v4141_v49, %v5429_v59 }
 0xe00   :  { %v4191_v20 = vcombine.low %v4174_v52, %v4182_v54 }
 0xe01   :  { %v4149_v4 = vcombine.low %v4140_v57, %v4148_v60  ;;  %v4150_v10 = vcombine.high %v4140_v57, %v4148_v60 }
 0xe02   :  { %v4198_v6 = vrot.slane %v4191_v20, %v5429_v59 }
 0xe03   :  { %v4204_v15 = vshrl.u32 %v4149_v4, 16  ;;  %v4210_v53 = vshrl.u32 %v4150_v10, 16 }
 0xe04   :  { %v4200_v2 = vcombine.high %v4190_v12, %v4198_v6  ;;  %v4199_v16 = vcombine.low %v4190_v12, %v4198_v6 }
 0xe06   :  { %v4209_v61 = vpack.i.b16 %v4200_v2, %v4150_v10  ;;  %v4205_v41 = vshrl.u32 %v4199_v16, 16  ;;  %v4211_v58 = vshrl.u32 %v4200_v2, 16  ;;  %v4203_v17 = vpack.i.b16 %v4199_v16, %v4149_v4 }
 0xe07   :  { %v4320_v10 = vrot.slane %v6130_v40, %v2145_v56  ;;  %v5174_v56 = vld [vmem:[%s6227_s8 + $0x50] sm:$0xff]  }
 0xe08   :  { %4215 = vrot.lane.b32.xlu1 %v4209_v61, %s5297_s25  ;;  %v4206_v18 = vpack.i.b16 %v4205_v41, %v4204_v15  ;;  %v4212_v14 = vpack.i.b16 %v4211_v58, %v4210_v53  ;;  %v4326_v41 = vrot.slane %v6130_v40, %v2151_v62  ;;  %v5175_v62 = vld [vmem:[%s6227_s8 + $0x48] sm:$0xff]  }
 0xe0a   :  { %4213 = vrot.lane.b32.xlu0 %v4206_v18, %s5298_s26 }
 0xe0c   :  { %4217 = vrot.lane.b32.xlu1 %v4212_v14, %s6233_s5  ;;  %v5176_v14 = vld [vmem:[%s6227_s8 + $0x40] sm:$0xff]  }
 0xe7a   :  { %v4216_v19 = vpop.permute.xlu1 %4215 }
 0xe7c   :  { %v4214_v25 = vpop.permute.xlu0 %4213 }
 0xe7d   :  { %v4221_v59 = vsel %vm891_vm3, %v4203_v17, %v4214_v25 }
 0xe7e   :  { %v4218_v0 = vpop.permute.xlu1 %4217  ;;  %v4223_v38 = vsel %vm126_vm1, %v4221_v59, %v4216_v19  ;;  %v4712_v19 = vld [vmem:[%s6226_s7 + $0x1] ss:$0 sm:$0xff] }
 0xe7f   :  { %v4225_v3 = vsel %vm2048_vm5, %v4223_v38, %v4218_v0 }
 0xe80   :  { %5088 = vmatmul.mubr.msk.bf16.vlgmr.msra.gmra.mxu1 %vm192_vm2, %v4225_v3 }
 0xe81   :  { %5115 = vmatprep.mubr.msk.bf16.mxu1 %vm5282_vm0, %v5281_v1 }
 0xf40   :  { %v4278_v26 = vpop.f32.mrf.mxu1 }
 0xf41   :  { %v4279_v28 = vadd.f32 %v4278_v26, %v4229_v44 }
 0xf42   :  { %v5089_v31 = vpop.f32.mrf.mxu1 }
 0xf43   :  { %v4285_v37 = vadd.f32 %v4279_v28, %v5815_v42  ;;  %v5167_v42 = vld [vmem:[%s6225_s6 + $0x18] sm:$0xff]  }
 0xf44   :  { %v4281_v30 = vpop.f32.mrf.mxu1  ;;  %5092 = vmatpush3.bf16.msra.mxu0 %v5167_v42 }
 0xf45   :  { %v4282_v43 = vadd.f32 %v4281_v30, %v4229_v44  ;;  %v4287_v27 = vsel %vm192_vm2, %v4285_v37, 0.0  ;;  %v4295_v13 = vmul.f32 %v4285_v37, %v4285_v37  ;;  %5093 = vmatprep.subr.bf16.mxu0 %v5281_v1 }
 0xf46   :  { %4288 = vadd.xlane.f32.xlu0 %v4287_v27  ;;  %v5090_v35 = vpop.f32.mrf.mxu1 }
 0xf47   :  { %v4286_v7 = vadd.f32 %v4282_v43, %v5817_v21  ;;  %v4297_v36 = vsel %vm192_vm2, %v4295_v13, 0.0  ;;  %v5169_v21 = vld [vmem:[%s6227_s8 + $0x78] sm:$0xff]  }
 0xf48   :  { %5094 = vmatpush3.bf16.msra.mxu0 %v5168_v24  ;;  %5100 = vmatpush3.bf16.msra.mxu1 %v5169_v21 }
 0xf49   :  { %v4290_v5 = vsel %vm192_vm2, %v4286_v7, 0.0  ;;  %v4296_v32 = vmul.f32 %v4286_v7, %v4286_v7  ;;  %5119 = vmatprep.subr.bf16.mxu0 %v5281_v1  ;;  %5101 = vmatprep.subr.bf16.mxu1 %v5281_v1 }
 0xf4a   :  { %4298 = vadd.xlane.f32.xlu0 %v4297_v36  ;;  %4291 = vadd.xlane.f32.xlu1 %v4290_v5 }
 0xf4b   :  { %v4300_v22 = vsel %vm192_vm2, %v4296_v32, 0.0 }
 0xf4c   :  { %5102 = vmatpush3.bf16.msra.mxu1 %v5170_v9  ;;  %v5177_v9 = vld [vmem:[%s6229_s10 + $0x8] sm:$0xff]  }
 0xf4d   :  { %5103 = vmatprep.subr.bf16.mxu1 %v5281_v1 }
 0xf4e   :  { %4301 = vadd.xlane.f32.xlu0 %v4300_v22 }
 0xf50   :  { %5104 = vmatpush3.bf16.msra.mxu1 %v5171_v34  ;;  %v5178_v34 = vld [vmem:[%s6229_s10] sm:$0xff]  }
 0xf51   :  { %5105 = vmatprep.subr.bf16.mxu1 %v5281_v1 }
 0xf54   :  { %5106 = vmatpush3.bf16.msra.mxu1 %v5172_v11 }
 0xf55   :  { %5107 = vmatprep.subr.bf16.mxu1 %v5281_v1 }
 0xf58   :  { %5108 = vmatpush3.bf16.msra.mxu1 %v5173_v51 }
 0xf59   :  { %5109 = vmatprep.subr.bf16.mxu1 %v5281_v1 }
 0xf5c   :  { %5110 = vmatpush3.bf16.msra.mxu1 %v5174_v56 }
 0xf5d   :  { %5111 = vmatprep.subr.bf16.mxu1 %v5281_v1 }
 0xf60   :  { %5112 = vmatpush3.bf16.msra.mxu1 %v5175_v62 }
 0xf61   :  { %5113 = vmatprep.subr.bf16.mxu1 %v5281_v1 }
 0xf64   :  { %5114 = vmatpush3.bf16.msra.mxu1 %v5176_v14 }
 0xfcf   :  { %v4289_v39 = vpop.xlane.xlu0 %4288 }
 0xfd0   :  { %v4293_v23 = vmul.f32 0.03125, %v4289_v39 }
 0xfd2   :  { %v4305_v47 = vmul.f32 %v4293_v23, %v4293_v23  ;;  %v4309_v4 = vsub.f32 %v4285_v37, %v4293_v23  ;;  %v4398_v37 = vrot.slane %v6130_v40, %v2223_v33 }
 0xfd3   :  { %v4299_v45 = vpop.xlane.xlu0 %4298  ;;  %v4292_v46 = vpop.xlane.xlu1 %4291 }
 0xfd4   :  { %v4303_v48 = vmul.f32 0.03125, %v4299_v45  ;;  %v4294_v49 = vmul.f32 0.03125, %v4292_v46 }
 0xfd6   :  { %v4307_v50 = vsub.f32 %v4303_v48, %v4305_v47  ;;  %v4306_v55 = vmul.f32 %v4294_v49, %v4294_v49  ;;  %v4310_v2 = vsub.f32 %v4286_v7, %v4294_v49 }
 0xfd7   :  { %v4302_v52 = vpop.xlane.xlu0 %4301 }
 0xfd8   :  { %v4311_v54 = vadd.f32 1e-05, %v4307_v50  ;;  %v4304_v57 = vmul.f32 0.03125, %v4302_v52 }
 0xfda   :  { %5251 = vrsqrt.f32 %v4311_v54  ;;  %v4308_v60 = vsub.f32 %v4304_v57, %v4306_v55 }
 0xfdc   :  { %v4312_v20 = vadd.f32 1e-05, %v4308_v60 }
 0xfde   :  { %5253 = vrsqrt.f32 %v4312_v20 }
 0xfe7   :  { %v5252_v12 = vpop.eup %5251 }
 0xfe8   :  { %v4315_v6 = vmul.f32 %v5252_v12, %v4309_v4  ;;  %v4529_v12 = vrot.slane %v6130_v40, %v2354_v8 }
 0xfea   :  { %v4321_v61 = vmul.f32 %v4320_v10, %v4315_v6 }
 0xfeb   :  { %v5254_v16 = vpop.eup %5253 }
 0xfec   :  { %v4316_v15 = vmul.f32 %v5254_v16, %v4310_v2  ;;  %v4327_v17 = vadd.f32 %v4326_v41, %v4321_v61 }
 0xfee   :  { %v4322_v58 = vmul.f32 %v4320_v10, %v4316_v15 }
 0xff0   :  { %v4328_v18 = vadd.f32 %v4326_v41, %v4322_v58 }
 0xff2   :  { %v4329_v53 = vpack.c.bf16 %v4328_v18, %v4327_v17 }
 0xff4   :  { %5096 = vmatmul.mubr.msk.bf16.vlgmr.msra.gmra.mxu0 %vm192_vm2, %v4329_v53 }
 0xff5   :  { %5123 = vmatprep.mubr.msk.bf16.mxu0 %vm5282_vm0, %v5281_v1  ;;  %5120 = vmatpush3.bf16.msra.mxu0 %v5177_v9 }
 0xff6   :  { %5121 = vmatprep.subr.bf16.mxu0 %v5281_v1  ;;  %v4523_v1 = vrot.slane %v6130_v40, %v2348_v63 }
 0xff9   :  { %5122 = vmatpush3.bf16.msra.mxu0 %v5178_v34 }
0x10b4   :  { %v4385_v25 = vpop.f32.mrf.mxu0 }
0x10b5   :  { %v4386_v0 = vadd.f32 %v4712_v19, %v4385_v25 }
0x10b6   :  { %v5097_v59 = vpop.f32.mrf.mxu0 }
0x10b7   :  { %v4392_v26 = vmax.f32 %v4386_v0, 0.0 }
0x10b8   :  { %v4388_v38 = vpop.f32.mrf.mxu0 }
0x10b9   :  { %v4389_v3 = vadd.f32 %v4712_v19, %v4388_v38 }
0x10ba   :  { %v5098_v44 = vpop.f32.mrf.mxu0 }
0x10bb   :  { %v4393_v28 = vmax.f32 %v4389_v3, 0.0 }
0x10bd   :  { %v4394_v31 = vpack.c.bf16 %v4393_v28, %v4392_v26 }
0x10bf   :  { %5116 = vmatmul.mubr.bf16.vlgmr.msra.gmra.mxu1 %v4394_v31 }
0x117f   :  { %v4481_v30 = vpop.f32.mrf.mxu1 }
0x1180   :  { %v4482_v43 = vadd.f32 %v4481_v30, %v4398_v37 }
0x1181   :  { %v5117_v27 = vpop.f32.mrf.mxu1 }
0x1182   :  { %v4488_v13 = vadd.f32 %v4482_v43, %v4327_v17 }
0x1183   :  { %v4484_v35 = vpop.f32.mrf.mxu1 }
0x1184   :  { %v4485_v7 = vadd.f32 %v4484_v35, %v4398_v37  ;;  %v4490_v36 = vsel %vm192_vm2, %v4488_v13, 0.0  ;;  %v4498_v5 = vmul.f32 %v4488_v13, %v4488_v13 }
0x1185   :  { %4491 = vadd.xlane.f32.xlu1 %v4490_v36  ;;  %v5118_v32 = vpop.f32.mrf.mxu1 }
0x1186   :  { %v4489_v22 = vadd.f32 %v4485_v7, %v4328_v18  ;;  %v4500_v42 = vsel %vm192_vm2, %v4498_v5, 0.0 }
0x1188   :  { %v4493_v24 = vsel %vm192_vm2, %v4489_v22, 0.0  ;;  %v4499_v21 = vmul.f32 %v4489_v22, %v4489_v22 }
0x1189   :  { %4501 = vadd.xlane.f32.xlu1 %v4500_v42  ;;  %4494 = vadd.xlane.f32.xlu0 %v4493_v24 }
0x118a   :  { %v4503_v33 = vsel %vm192_vm2, %v4499_v21, 0.0 }
0x118d   :  { %4504 = vadd.xlane.f32.xlu0 %v4503_v33 }
0x120e   :  { %v4492_v11 = vpop.xlane.xlu1 %4491 }
0x120f   :  { %v4496_v51 = vmul.f32 0.03125, %v4492_v11 }
0x1211   :  { %v4508_v45 = vmul.f32 %v4496_v51, %v4496_v51  ;;  %v4512_v60 = vsub.f32 %v4488_v13, %v4496_v51 }
0x1212   :  { %v4502_v39 = vpop.xlane.xlu1 %4501  ;;  %v4495_v23 = vpop.xlane.xlu0 %4494 }
0x1213   :  { %v4506_v46 = vmul.f32 0.03125, %v4502_v39  ;;  %v4497_v47 = vmul.f32 0.03125, %v4495_v23 }
0x1215   :  { %v4510_v48 = vsub.f32 %v4506_v46, %v4508_v45  ;;  %v4509_v52 = vmul.f32 %v4497_v47, %v4497_v47  ;;  %v4513_v10 = vsub.f32 %v4489_v22, %v4497_v47 }
0x1216   :  { %v4505_v49 = vpop.xlane.xlu0 %4504 }
0x1217   :  { %v4514_v50 = vadd.f32 1e-05, %v4510_v48  ;;  %v4507_v54 = vmul.f32 0.03125, %v4505_v49 }
0x1219   :  { %5255 = vrsqrt.f32 %v4514_v50  ;;  %v4511_v55 = vsub.f32 %v4507_v54, %v4509_v52 }
0x121b   :  { %v4515_v57 = vadd.f32 1e-05, %v4511_v55 }
0x121d   :  { %5257 = vrsqrt.f32 %v4515_v57 }
0x1226   :  { %v5256_v20 = vpop.eup %5255 }
0x1227   :  { %v4518_v4 = vmul.f32 %v5256_v20, %v4512_v60 }
0x1229   :  { %v4524_v6 = vmul.f32 %v4523_v1, %v4518_v4 }
0x122a   :  { %v5258_v2 = vpop.eup %5257 }
0x122b   :  { %v4519_v16 = vmul.f32 %v5258_v2, %v4513_v10  ;;  %v4530_v15 = vadd.f32 %v4529_v12, %v4524_v6 }
0x122d   :  { %v4525_v61 = vmul.f32 %v4523_v1, %v4519_v16  ;;  %v4532_v41 = vpack.c.bf16 %v4530_v15, %v4530_v15 }
0x122f   :  { %v4531_v58 = vadd.f32 %v4529_v12, %v4525_v61  ;;  %v4542_v18 = vunpack.c.l.b16 %v4532_v41 }
0x1231   :  { %v4533_v17 = vpack.c.bf16 %v4531_v58, %v4531_v58  ;;  %v4544_v63 = vrot.slane %v4542_v18, 7 }
0x1233   :  { %v4543_v53 = vunpack.c.l.b16 %v4533_v17 }
0x1235   :  { %v4545_v56 = vrot.slane %v4543_v53, 6 }
0x1237   :  { %v4547_v62 = vsel %vm4546_vm6, %v4545_v56, %v4544_v63 }
0x1238   :  { %v4548_v14 = vpack.c.b16 %v4547_v62, %v4547_v62 }
0x123a   :  { %5124 = vmatmul.mubr.msk.bf16.vlgmr.msra.gmra.mxu0 %vm192_vm2, %v4548_v14 }
0x12fa   :  { %v4598_v8 = vpop.f32.mrf.mxu0 }
0x12fb   :  { %v4599_v40 = vadd.f32 %v4724_v29, %v4598_v8 }
0x12fc   :  { %v5125_v19 = vpop.f32.mrf.mxu0 }
0x12fd   :  { %4604 = vst [vmem:[#allocation2] sm:$0x3] %v4599_v40 }
0x12fe   :  { %v4601_v25 = vpop.f32.mrf.mxu0 }
0x12ff   :  { %5270 = shalt.err (!%p5267_p4)
}
0x1300   :  { %4614 = dma.vmem_to_hbm [thread:$0]  %s4612_s9, 32, %s6231_s12, [#allocation3]   ;;  %v5126_v59 = vpop.f32.mrf.mxu0 }
0x1301   :  { %5279 = dma.done.wait [#allocation3], 32  }
0x1302   :  { %5280 = vsyncadd [#allocation3], 4294967264 }
0x1303   :  { %4618 = vsyncpa [#allocation3], 1 }

</bundles_post_ra>
